<compile_context>
chip_gen: v7x
topology: tpu7x:2x2x1
jax: 0.10.0
libtpu: 0.0.40
codegen_flags: <defaults>
</compile_context>

<pallas_src>
from functools import partial

import jax
import jax.numpy as jnp
from jax.experimental import pallas as pl
from jax.experimental.pallas import tpu as pltpu

BN_EPS = 1e-5
_LANES = 128
_VMEM_LIMIT = 48 * 1024 * 1024


# ---------------------------------------------------------------------------
# Pallas kernels
# ---------------------------------------------------------------------------
def conv_stats_kernel(xp_ref, w_ref, y_ref, stats_ref):
    """3x3 conv (stride=1, pad pre-applied) as 9 accumulated tap GEMMs,
    plus per-(image, H-tile) partial BatchNorm statistics.

    xp_ref:    (1, H+2, W+2, Cp)  bf16  padded input slab for this image
    w_ref:     (9*Cp, Cp)         bf16  weights, row = (ky*3+kx)*Cp + cin
    y_ref:     (1, tile_h, W, Cp) bf16  raw conv output tile
    stats_ref: (1, 1, 2, Cp)      f32   [sum, sum_sq] partials for this tile
    """
    t = pl.program_id(1)
    _, tile_h, w_out, cp = y_ref.shape
    m = tile_h * w_out
    row0 = pl.multiple_of(t * tile_h, tile_h)

    # Accumulate per-tap GEMMs (K = Cp each); no (M, 9*Cp) patch materialization.
    # TODO(synk): dx=1,2 taps are sublane-offset loads; a pltpu.roll-based shift
    # (XLU slot) could shave the relayout cost further.
    acc = jnp.zeros((m, cp), jnp.float32)
    for k in range(9):
        dy, dx = divmod(k, 3)
        tap = xp_ref[0, pl.ds(row0 + dy, tile_h), dx:dx + w_out, :].reshape(m, cp)
        acc = acc + jnp.dot(tap, w_ref[k * cp:(k + 1) * cp, :],
                            preferred_element_type=jnp.float32)

    # Store conv output in bf16 (stats taken from f32 acc below, before the cast).
    y_ref[...] = acc.reshape(1, tile_h, w_out, cp).astype(y_ref.dtype)

    # Partial BN statistics for this (image, tile); global reduction finishes in XLA.
    psum = jnp.sum(acc, axis=0, keepdims=True)        # (1, Cp)
    psq = jnp.sum(acc * acc, axis=0, keepdims=True)   # (1, Cp)
    stats_ref[...] = jnp.concatenate([psum, psq], axis=0)[None, None]


def bn_relu_pad_kernel(x_ref, scale_ref, shift_ref, o_ref):
    """y = relu(scale*x + shift), written into a zero-halo padded bf16 buffer.

    x_ref: (1, H, W, Cp) bf16 conv raw;  o_ref: (1, H+2, W+2, Cp) bf16.
    """
    _, h, w, cp = x_ref.shape
    o_ref[...] = jnp.zeros_like(o_ref)                               # halo zeros
    y = x_ref[...].astype(jnp.float32) * scale_ref[...] + shift_ref[...]
    o_ref[:, 1:h + 1, 1:w + 1, :] = jnp.maximum(y, 0.0).astype(o_ref.dtype)


def bn_add_relu_kernel(x_ref, scale_ref, shift_ref, res_ref, o_ref):
    """y = relu(scale*x + shift + identity); identity read from padded slab interior.

    x_ref: (1, H, W, Cp) bf16;  res_ref: (1, H+2, W+2, Cp) bf16 (the conv1 input slab).
    """
    _, h, w, cp = x_ref.shape
    y = x_ref[...].astype(jnp.float32) * scale_ref[...] + shift_ref[...]
    iden = res_ref[:, 1:h + 1, 1:w + 1, :].astype(jnp.float32)
    o_ref[...] = jnp.maximum(y + iden, 0.0).astype(o_ref.dtype)


# ---------------------------------------------------------------------------
# pallas_call wrappers
# ---------------------------------------------------------------------------
def _conv3x3_stats(x_pad, w_mat, tile_h):
    n, hp, wp, cp = x_pad.shape
    h, w = hp - 2, wp - 2
    num_t = h // tile_h
    return pl.pallas_call(
        conv_stats_kernel,
        grid=(n, num_t),
        in_specs=[
            pl.BlockSpec((1, hp, wp, cp), lambda i, t: (i, 0, 0, 0)),
            pl.BlockSpec((9 * cp, cp), lambda i, t: (0, 0)),
        ],
        out_specs=[
            pl.BlockSpec((1, tile_h, w, cp), lambda i, t: (i, t, 0, 0)),
            pl.BlockSpec((1, 1, 2, cp), lambda i, t: (i, t, 0, 0)),
        ],
        out_shape=[
            jax.ShapeDtypeStruct((n, h, w, cp), jnp.bfloat16),
            jax.ShapeDtypeStruct((n, num_t, 2, cp), jnp.float32),
        ],
        compiler_params=pltpu.CompilerParams(
            dimension_semantics=("parallel", "parallel"),
            vmem_limit_bytes=_VMEM_LIMIT,
        ),
    )(x_pad, w_mat)


def _bn_relu_pad(conv_raw, scale, shift):
    """bn+relu epilogue; emits the already-padded bf16 activation for the next conv."""
    n, h, w, cp = conv_raw.shape
    return pl.pallas_call(
        bn_relu_pad_kernel,
        grid=(n,),
        in_specs=[
            pl.BlockSpec((1, h, w, cp), lambda i: (i, 0, 0, 0)),
            pl.BlockSpec((1, cp), lambda i: (0, 0)),
            pl.BlockSpec((1, cp), lambda i: (0, 0)),
        ],
        out_specs=pl.BlockSpec((1, h + 2, w + 2, cp), lambda i: (i, 0, 0, 0)),
        out_shape=jax.ShapeDtypeStruct((n, h + 2, w + 2, cp), jnp.bfloat16),
        compiler_params=pltpu.CompilerParams(
            dimension_semantics=("parallel",),
            vmem_limit_bytes=_VMEM_LIMIT,
        ),
    )(conv_raw, scale, shift)


def _bn_add_relu(conv_raw, scale, shift, x_pad, out_dtype):
    """bn + residual (from x_pad interior) + relu; whole-image streaming blocks."""
    n, h, w, cp = conv_raw.shape
    return pl.pallas_call(
        bn_add_relu_kernel,
        grid=(n,),
        in_specs=[
            pl.BlockSpec((1, h, w, cp), lambda i: (i, 0, 0, 0)),
            pl.BlockSpec((1, cp), lambda i: (0, 0)),
            pl.BlockSpec((1, cp), lambda i: (0, 0)),
            pl.BlockSpec((1, h + 2, w + 2, cp), lambda i: (i, 0, 0, 0)),
        ],
        out_specs=pl.BlockSpec((1, h, w, cp), lambda i: (i, 0, 0, 0)),
        out_shape=jax.ShapeDtypeStruct((n, h, w, cp), out_dtype),
        compiler_params=pltpu.CompilerParams(
            dimension_semantics=("parallel",),
            vmem_limit_bytes=_VMEM_LIMIT,
        ),
    )(conv_raw, scale, shift, x_pad)


# ---------------------------------------------------------------------------
# Glue (layout only) + parameter prep
# ---------------------------------------------------------------------------
def _round_up(x, m):
    return (x + m - 1) // m * m


def _pick_tile_h(h, w, target_rows=2048):
    """Largest divisor of H keeping tile_h*W <= target; prefer multiple-of-8 GEMM M."""
    divs = [d for d in range(1, h + 1) if h % d == 0 and d * w <= target_rows]
    if not divs:
        return 1
    aligned = [d for d in divs if (d * w) % 8 == 0]
    return max(aligned) if aligned else max(divs)


def _prep_conv_weight(w_oihw, cp):
    """PyTorch (Cout, Cin, 3, 3) -> (9*Cp, Cp) bf16, row = (ky*3+kx)*Cp + cin."""
    cout, cin, kh, kw = w_oihw.shape
    wt = jnp.transpose(w_oihw, (2, 3, 1, 0))                      # (3, 3, Cin, Cout)
    wt = jnp.pad(wt, ((0, 0), (0, 0), (0, cp - cin), (0, cp - cout)))
    return wt.reshape(kh * kw * cp, cp).astype(jnp.bfloat16)


def _bn_scale_shift(stats, gamma_p, beta_p, count):
    """Finish two-pass BN: fold global batch stats into per-channel scale/shift.

    gamma_p/beta_p MUST be zero in padded lanes so padded channels map to 0.
    TODO(synk): E[x^2]-E[x]^2 can cancel for large-mean channels; a mean-shifted
    / Welford combine in this (cheap) XLA finish would be more robust.
    """
    total = jnp.sum(stats, axis=(0, 1))                           # (2, Cp)
    mean = total[0] / count
    var = jnp.maximum(total[1] / count - mean * mean, 0.0)
    inv = jax.lax.rsqrt(var + BN_EPS)
    scale = gamma_p * inv
    shift = beta_p - mean * scale
    return scale.reshape(1, -1), shift.reshape(1, -1)


def init_basic_block_params(key, inplanes, planes):
    """Deterministic synthetic parameters (shapes follow BasicBlock.__init__)."""
    k1, k2 = jax.random.split(key)
    return {
        "conv1_w": jax.random.normal(k1, (planes, inplanes, 3, 3), jnp.float32) * 0.1,
        "conv2_w": jax.random.normal(k2, (planes, planes, 3, 3), jnp.float32) * 0.1,
        "bn1_gamma": jnp.ones((planes,), jnp.float32),
        "bn1_beta": jnp.zeros((planes,), jnp.float32),
        "bn2_gamma": jnp.ones((planes,), jnp.float32),
        "bn2_beta": jnp.zeros((planes,), jnp.float32),
    }


@partial(jax.jit, static_argnames=("tile_h",))
def basic_block_forward(x_nchw, params, tile_h=None):
    # TODO(synk): stride>1 / downsample path not instantiated (module defaults are
    # stride=1, downsample=None), so inplanes must equal planes.
    n, c, h, w = x_nchw.shape
    planes = params["conv1_w"].shape[0]
    assert c == planes, "identity residual requires inplanes == planes"
    cp = _round_up(planes, _LANES)
    if tile_h is None:
        tile_h = _pick_tile_h(h, w)
    if h % tile_h:
        raise ValueError(f"tile_h={tile_h} must divide H={h}")
    m_total = float(n * h * w)

    # Entry layout glue (one pass): NCHW->NHWC, channel pad to 128 lanes, 3x3 halo
    # pad, bf16.  This single bf16 slab feeds conv1 AND supplies the residual.
    x_nhwc = jnp.transpose(x_nchw, (0, 2, 3, 1))
    x_pad = jnp.pad(x_nhwc, ((0, 0), (1, 1), (1, 1), (0, cp - c))).astype(jnp.bfloat16)

    w1 = _prep_conv_weight(params["conv1_w"], cp)
    w2 = _prep_conv_weight(params["conv2_w"], cp)
    g1 = jnp.pad(params["bn1_gamma"], (0, cp - planes))   # padded lanes stay 0
    b1 = jnp.pad(params["bn1_beta"], (0, cp - planes))
    g2 = jnp.pad(params["bn2_gamma"], (0, cp - planes))
    b2 = jnp.pad(params["bn2_beta"], (0, cp - planes))

    # conv1 (9 accumulated tap GEMMs) + per-tile BN1 stats
    conv1_raw, stats1 = _conv3x3_stats(x_pad, w1, tile_h)
    scale1, shift1 = _bn_scale_shift(stats1, g1, b1, m_total)
    # bn1 + relu, written straight into the padded bf16 slab for conv2 (no XLA pad)
    y1_pad = _bn_relu_pad(conv1_raw, scale1, shift1)

    # conv2 + per-tile BN2 stats
    conv2_raw, stats2 = _conv3x3_stats(y1_pad, w2, tile_h)
    scale2, shift2 = _bn_scale_shift(stats2, g2, b2, m_total)
    # bn2 + residual (read from x_pad interior) + relu
    out = _bn_add_relu(conv2_raw, scale2, shift2, x_pad, jnp.float32)

    out = out[..., :planes]
    # TODO(synk): for a chain of blocks keep activations NHWC/channel-padded and
    # skip this exit transpose; kept here to match the module's NCHW interface.
    return jnp.transpose(out, (0, 3, 1, 2))


# ---------------------------------------------------------------------------
# Pure-JAX references (validation only)
# ---------------------------------------------------------------------------
def _conv_ref(x_nhwc, w_oihw, dtype):
    w_hwio = jnp.transpose(w_oihw, (2, 3, 1, 0)).astype(dtype)
    return jax.lax.conv_general_dilated(
        x_nhwc.astype(dtype), w_hwio, window_strides=(1, 1),
        padding=((1, 1), (1, 1)), dimension_numbers=("NHWC", "HWIO", "NHWC"),
        preferred_element_type=jnp.float32)


def _reference_forward(x_nchw, params):
    """Pure-f32 module semantics (BatchNorm2d training-mode batch stats)."""
    def bn(y, g, b):
        mean = jnp.mean(y, axis=(0, 1, 2), keepdims=True)
        var = jnp.mean(jnp.square(y - mean), axis=(0, 1, 2), keepdims=True)
        return ((y - mean) * jax.lax.rsqrt(var + BN_EPS)
                * g.reshape(1, 1, 1, -1) + b.reshape(1, 1, 1, -1))

    x = jnp.transpose(x_nchw, (0, 2, 3, 1)).astype(jnp.float32)
    out = jax.nn.relu(bn(_conv_ref(x, params["conv1_w"], jnp.float32),
                         params["bn1_gamma"], params["bn1_beta"]))
    out = bn(_conv_ref(out, params["conv2_w"], jnp.float32),
             params["bn2_gamma"], params["bn2_beta"])
    out = jax.nn.relu(out + x)
    return jnp.transpose(out, (0, 3, 1, 2))


def _reference_matched(x_nchw, params):
    """Mirrors the kernel's precision: bf16 MXU operands, f32 accumulation/stats,
    bf16 storage of conv outputs and activations, bf16 residual."""
    def bn_apply(y_f32, g, b):
        mean = jnp.mean(y_f32, axis=(0, 1, 2))
        var = jnp.maximum(jnp.mean(y_f32 * y_f32, axis=(0, 1, 2)) - mean * mean, 0.0)
        scale = g * jax.lax.rsqrt(var + BN_EPS)
        shift = b - mean * scale
        yq = y_f32.astype(jnp.bfloat16).astype(jnp.float32)   # conv raw stored as bf16
        return yq * scale + shift

    x = jnp.transpose(x_nchw, (0, 2, 3, 1)).astype(jnp.float32)
    xb = x.astype(jnp.bfloat16)
    y1 = jax.nn.relu(bn_apply(_conv_ref(xb, params["conv1_w"], jnp.bfloat16),
                              params["bn1_gamma"], params["bn1_beta"]))
    y1b = y1.astype(jnp.bfloat16)
    y2 = bn_apply(_conv_ref(y1b, params["conv2_w"], jnp.bfloat16),
                  params["bn2_gamma"], params["bn2_beta"])
    out = jax.nn.relu(y2 + xb.astype(jnp.float32))
    return jnp.transpose(out, (0, 3, 1, 2))


if __name__ == "__main__":
    key = jax.random.PRNGKey(0)
    kx, kp = jax.random.split(key)

    inplanes = planes = 8
    x = jax.random.normal(kx, (2, inplanes, 16, 16), jnp.float32)  # NCHW like PyTorch
    params = init_basic_block_params(kp, inplanes, planes)

    out = basic_block_forward(x, params, tile_h=8)   # 2 H-tiles: exercises tiled stats
    jax.block_until_ready(out)
    assert out.shape == (2, planes, 16, 16), out.shape

    ref_matched = _reference_matched(x, params)      # precision-matched reference
    ref_f32 = _reference_forward(x, params)          # pure-f32 sanity reference
    err_m = float(jnp.max(jnp.abs(out - ref_matched)))
    err_f = float(jnp.max(jnp.abs(out - ref_f32)))
    assert err_m < 2e-2, f"mismatch vs precision-matched reference: {err_m}"
    assert err_f < 2e-1, f"mismatch vs f32 reference: {err_f}"

    print("KERNEL_OK")
</pallas_src>

<mosaic_0001>
module attributes {stable_mosaic.version = 11 : i64} {
  func.func @bn_relu_pad_kernel(%arg0: i32, %arg1: memref<1x16x16x128xbf16, #tpu.memory_space<vmem>>, %arg2: memref<1x128xf32, #tpu.memory_space<vmem>>, %arg3: memref<1x128xf32, #tpu.memory_space<vmem>>, %arg4: memref<1x18x18x128xbf16, #tpu.memory_space<vmem>>) attributes {dimension_semantics = [#tpu.dimension_semantics<parallel>], iteration_bounds = array<i64: 2>, scalar_prefetch = 0 : i64, scratch_operands = 0 : i64, tpu.core_type = #tpu.core_type<tc>, window_params = [{transform_indices = @transform_0, window_bounds = array<i64: 1, 16, 16, 128>}, {pipeline_mode = #tpu.pipeline_mode<synchronous>, transform_indices = @transform_1, window_bounds = array<i64: 1, 128>}, {pipeline_mode = #tpu.pipeline_mode<synchronous>, transform_indices = @transform_2, window_bounds = array<i64: 1, 128>}, {transform_indices = @transform_3, window_bounds = array<i64: 1, 18, 18, 128>}]} {
    %cst = arith.constant 0.000000e+00 : bf16
    %0 = vector.broadcast %cst : bf16 to vector<1x18x18x128xbf16>
    %c0 = arith.constant 0 : index
    %c0_0 = arith.constant 0 : index
    %c0_1 = arith.constant 0 : index
    %c0_2 = arith.constant 0 : index
    %1 = vector.load %arg4[%c0, %c0_0, %c0_1, %c0_2] : memref<1x18x18x128xbf16, #tpu.memory_space<vmem>>, vector<1x18x18x128xbf16>
    tpu.vector_store %arg4[%c0, %c0_0, %c0_1, %c0_2], %0 {strides = array<i32>} : memref<1x18x18x128xbf16, #tpu.memory_space<vmem>>, vector<1x18x18x128xbf16>,
    %c0_3 = arith.constant 0 : index
    %c0_4 = arith.constant 0 : index
    %c0_5 = arith.constant 0 : index
    %c0_6 = arith.constant 0 : index
    %2 = vector.load %arg1[%c0_3, %c0_4, %c0_5, %c0_6] : memref<1x16x16x128xbf16, #tpu.memory_space<vmem>>, vector<1x16x16x128xbf16>
    %3 = arith.extf %2 : vector<1x16x16x128xbf16> to vector<1x16x16x128xf32>
    %c0_7 = arith.constant 0 : index
    %c0_8 = arith.constant 0 : index
    %4 = vector.load %arg2[%c0_7, %c0_8] : memref<1x128xf32, #tpu.memory_space<vmem>>, vector<1x128xf32>
    %5 = vector.shape_cast %4 : vector<1x128xf32> to vector<1x1x1x128xf32>
    %6 = vector.broadcast %5 : vector<1x1x1x128xf32> to vector<1x16x16x128xf32>
    %7 = arith.mulf %3, %6 : vector<1x16x16x128xf32>
    %c0_9 = arith.constant 0 : index
    %c0_10 = arith.constant 0 : index
    %8 = vector.load %arg3[%c0_9, %c0_10] : memref<1x128xf32, #tpu.memory_space<vmem>>, vector<1x128xf32>
    %9 = vector.shape_cast %8 : vector<1x128xf32> to vector<1x1x1x128xf32>
    %10 = vector.broadcast %9 : vector<1x1x1x128xf32> to vector<1x16x16x128xf32>
    %11 = arith.addf %7, %10 : vector<1x16x16x128xf32>
    %cst_11 = arith.constant 0.000000e+00 : f32
    %12 = vector.broadcast %cst_11 : f32 to vector<1x16x16x128xf32>
    %13 = arith.maximumf %11, %12 : vector<1x16x16x128xf32>
    %14 = arith.truncf %13 : vector<1x16x16x128xf32> to vector<1x16x16x128xbf16>
    %c0_12 = arith.constant 0 : index
    %c1 = arith.constant 1 : index
    %c1_13 = arith.constant 1 : index
    %c0_14 = arith.constant 0 : index
    %15 = vector.load %arg4[%c0_12, %c1, %c1_13, %c0_14] : memref<1x18x18x128xbf16, #tpu.memory_space<vmem>>, vector<1x16x16x128xbf16>
    tpu.vector_store %arg4[%c0_12, %c1, %c1_13, %c0_14], %14 {strides = array<i32>} : memref<1x18x18x128xbf16, #tpu.memory_space<vmem>>, vector<1x16x16x128xbf16>,
    return
  }
  func.func @transform_0(%arg0: i32) -> (i32, i32, i32, i32) {
    %c0_i32 = arith.constant 0 : i32
    %c0_i32_0 = arith.constant 0 : i32
    %c0_i32_1 = arith.constant 0 : i32
    %c0_i32_2 = arith.constant 0 : i32
    return %arg0, %c0_i32, %c0_i32_0, %c0_i32_1 : i32, i32, i32, i32
  }
  func.func @transform_1(%arg0: i32) -> (i32, i32) {
    %c0_i32 = arith.constant 0 : i32
    %c0_i32_0 = arith.constant 0 : i32
    %c0_i32_1 = arith.constant 0 : i32
    return %c0_i32, %c0_i32_0 : i32, i32
  }
  func.func @transform_2(%arg0: i32) -> (i32, i32) {
    %c0_i32 = arith.constant 0 : i32
    %c0_i32_0 = arith.constant 0 : i32
    %c0_i32_1 = arith.constant 0 : i32
    return %c0_i32, %c0_i32_0 : i32, i32
  }
  func.func @transform_3(%arg0: i32) -> (i32, i32, i32, i32) {
    %c0_i32 = arith.constant 0 : i32
    %c0_i32_0 = arith.constant 0 : i32
    %c0_i32_1 = arith.constant 0 : i32
    %c0_i32_2 = arith.constant 0 : i32
    return %arg0, %c0_i32, %c0_i32_0, %c0_i32_1 : i32, i32, i32, i32
  }
}

module attributes {stable_mosaic.version = 11 : i64} {
  func.func @bn_add_relu_kernel(%arg0: i32, %arg1: memref<1x16x16x128xbf16, #tpu.memory_space<vmem>>, %arg2: memref<1x128xf32, #tpu.memory_space<vmem>>, %arg3: memref<1x128xf32, #tpu.memory_space<vmem>>, %arg4: memref<1x18x18x128xbf16, #tpu.memory_space<vmem>>, %arg5: memref<1x16x16x128xf32, #tpu.memory_space<vmem>>) attributes {dimension_semantics = [#tpu.dimension_semantics<parallel>], iteration_bounds = array<i64: 2>, scalar_prefetch = 0 : i64, scratch_operands = 0 : i64, tpu.core_type = #tpu.core_type<tc>, window_params = [{transform_indices = @transform_0, window_bounds = array<i64: 1, 16, 16, 128>}, {pipeline_mode = #tpu.pipeline_mode<synchronous>, transform_indices = @transform_1, window_bounds = array<i64: 1, 128>}, {pipeline_mode = #tpu.pipeline_mode<synchronous>, transform_indices = @transform_2, window_bounds = array<i64: 1, 128>}, {transform_indices = @transform_3, window_bounds = array<i64: 1, 18, 18, 128>}, {transform_indices = @transform_4, window_bounds = array<i64: 1, 16, 16, 128>}]} {
    %c0 = arith.constant 0 : index
    %c0_0 = arith.constant 0 : index
    %c0_1 = arith.constant 0 : index
    %c0_2 = arith.constant 0 : index
    %0 = vector.load %arg1[%c0, %c0_0, %c0_1, %c0_2] : memref<1x16x16x128xbf16, #tpu.memory_space<vmem>>, vector<1x16x16x128xbf16>
    %1 = arith.extf %0 : vector<1x16x16x128xbf16> to vector<1x16x16x128xf32>
    %c0_3 = arith.constant 0 : index
    %c0_4 = arith.constant 0 : index
    %2 = vector.load %arg2[%c0_3, %c0_4] : memref<1x128xf32, #tpu.memory_space<vmem>>, vector<1x128xf32>
    %3 = vector.shape_cast %2 : vector<1x128xf32> to vector<1x1x1x128xf32>
    %4 = vector.broadcast %3 : vector<1x1x1x128xf32> to vector<1x16x16x128xf32>
    %5 = arith.mulf %1, %4 : vector<1x16x16x128xf32>
    %c0_5 = arith.constant 0 : index
    %c0_6 = arith.constant 0 : index
    %6 = vector.load %arg3[%c0_5, %c0_6] : memref<1x128xf32, #tpu.memory_space<vmem>>, vector<1x128xf32>
    %7 = vector.shape_cast %6 : vector<1x128xf32> to vector<1x1x1x128xf32>
    %8 = vector.broadcast %7 : vector<1x1x1x128xf32> to vector<1x16x16x128xf32>
    %9 = arith.addf %5, %8 : vector<1x16x16x128xf32>
    %c0_7 = arith.constant 0 : index
    %c1 = arith.constant 1 : index
    %c1_8 = arith.constant 1 : index
    %c0_9 = arith.constant 0 : index
    %10 = vector.load %arg4[%c0_7, %c1, %c1_8, %c0_9] : memref<1x18x18x128xbf16, #tpu.memory_space<vmem>>, vector<1x16x16x128xbf16>
    %11 = arith.extf %10 : vector<1x16x16x128xbf16> to vector<1x16x16x128xf32>
    %12 = arith.addf %9, %11 : vector<1x16x16x128xf32>
    %cst = arith.constant 0.000000e+00 : f32
    %13 = vector.broadcast %cst : f32 to vector<1x16x16x128xf32>
    %14 = arith.maximumf %12, %13 : vector<1x16x16x128xf32>
    %c0_10 = arith.constant 0 : index
    %c0_11 = arith.constant 0 : index
    %c0_12 = arith.constant 0 : index
    %c0_13 = arith.constant 0 : index
    %15 = vector.load %arg5[%c0_10, %c0_11, %c0_12, %c0_13] : memref<1x16x16x128xf32, #tpu.memory_space<vmem>>, vector<1x16x16x128xf32>
    tpu.vector_store %arg5[%c0_10, %c0_11, %c0_12, %c0_13], %14 {strides = array<i32>} : memref<1x16x16x128xf32, #tpu.memory_space<vmem>>, vector<1x16x16x128xf32>,
    return
  }
  func.func @transform_0(%arg0: i32) -> (i32, i32, i32, i32) {
    %c0_i32 = arith.constant 0 : i32
    %c0_i32_0 = arith.constant 0 : i32
    %c0_i32_1 = arith.constant 0 : i32
    %c0_i32_2 = arith.constant 0 : i32
    return %arg0, %c0_i32, %c0_i32_0, %c0_i32_1 : i32, i32, i32, i32
  }
  func.func @transform_1(%arg0: i32) -> (i32, i32) {
    %c0_i32 = arith.constant 0 : i32
    %c0_i32_0 = arith.constant 0 : i32
    %c0_i32_1 = arith.constant 0 : i32
    return %c0_i32, %c0_i32_0 : i32, i32
  }
  func.func @transform_2(%arg0: i32) -> (i32, i32) {
    %c0_i32 = arith.constant 0 : i32
    %c0_i32_0 = arith.constant 0 : i32
    %c0_i32_1 = arith.constant 0 : i32
    return %c0_i32, %c0_i32_0 : i32, i32
  }
  func.func @transform_3(%arg0: i32) -> (i32, i32, i32, i32) {
    %c0_i32 = arith.constant 0 : i32
    %c0_i32_0 = arith.constant 0 : i32
    %c0_i32_1 = arith.constant 0 : i32
    %c0_i32_2 = arith.constant 0 : i32
    return %arg0, %c0_i32, %c0_i32_0, %c0_i32_1 : i32, i32, i32, i32
  }
  func.func @transform_4(%arg0: i32) -> (i32, i32, i32, i32) {
    %c0_i32 = arith.constant 0 : i32
    %c0_i32_0 = arith.constant 0 : i32
    %c0_i32_1 = arith.constant 0 : i32
    %c0_i32_2 = arith.constant 0 : i32
    return %arg0, %c0_i32, %c0_i32_0, %c0_i32_1 : i32, i32, i32, i32
  }
}

module attributes {stable_mosaic.version = 11 : i64} {
  func.func @conv_stats_kernel(%arg0: i32, %arg1: i32, %arg2: memref<1x18x18x128xbf16, #tpu.memory_space<vmem>>, %arg3: memref<1152x128xbf16, #tpu.memory_space<vmem>>, %arg4: memref<1x8x16x128xbf16, #tpu.memory_space<vmem>>, %arg5: memref<1x1x2x128xf32, #tpu.memory_space<vmem>>) attributes {dimension_semantics = [#tpu.dimension_semantics<parallel>, #tpu.dimension_semantics<parallel>], iteration_bounds = array<i64: 2, 2>, scalar_prefetch = 0 : i64, scratch_operands = 0 : i64, tpu.core_type = #tpu.core_type<tc>, window_params = [{transform_indices = @transform_0, window_bounds = array<i64: 1, 18, 18, 128>}, {pipeline_mode = #tpu.pipeline_mode<synchronous>, transform_indices = @transform_1, window_bounds = array<i64: 1152, 128>}, {transform_indices = @transform_2, window_bounds = array<i64: 1, 8, 16, 128>}, {transform_indices = @transform_3, window_bounds = array<i64: 1, 1, 2, 128>}]} {
    %c8_i32 = arith.constant 8 : i32
    %0 = arith.muli %arg1, %c8_i32 : i32
    %1 = tpu.assume_multiple %0, 8 : i32
    %cst = arith.constant 0.000000e+00 : f32
    %2 = vector.broadcast %cst : f32 to vector<128x128xf32>
    %c0_i32 = arith.constant 0 : i32
    %3 = arith.addi %1, %c0_i32 : i32
    %c0 = arith.constant 0 : index
    %4 = arith.index_cast %3 : i32 to index
    %c0_0 = arith.constant 0 : index
    %c0_1 = arith.constant 0 : index
    %5 = vector.load %arg2[%c0, %4, %c0_0, %c0_1] : memref<1x18x18x128xbf16, #tpu.memory_space<vmem>>, vector<1x8x16x128xbf16>
    %6 = vector.shape_cast %5 : vector<1x8x16x128xbf16> to vector<8x16x128xbf16>
    %7 = vector.shape_cast %6 : vector<8x16x128xbf16> to vector<128x128xbf16>
    %c0_2 = arith.constant 0 : index
    %c0_3 = arith.constant 0 : index
    %8 = vector.load %arg3[%c0_2, %c0_3] : memref<1152x128xbf16, #tpu.memory_space<vmem>>, vector<128x128xbf16>
    %cst_4 = arith.constant dense<0.000000e+00> : vector<128x128xf32>
    %9 = tpu.matmul %7, %8, %cst_4 {dimension_numbers = #tpu.dot_dimension_numbers<[1], [0], [0], [1], [0, 0, 1, 1], [], []>} : vector<128x128xbf16>, vector<128x128xbf16>, vector<128x128xf32> -> vector<128x128xf32>
    %10 = arith.addf %2, %9 : vector<128x128xf32>
    %c0_i32_5 = arith.constant 0 : i32
    %11 = arith.addi %1, %c0_i32_5 : i32
    %c0_6 = arith.constant 0 : index
    %12 = arith.index_cast %11 : i32 to index
    %c1 = arith.constant 1 : index
    %c0_7 = arith.constant 0 : index
    %13 = vector.load %arg2[%c0_6, %12, %c1, %c0_7] : memref<1x18x18x128xbf16, #tpu.memory_space<vmem>>, vector<1x8x16x128xbf16>
    %14 = vector.shape_cast %13 : vector<1x8x16x128xbf16> to vector<8x16x128xbf16>
    %15 = vector.shape_cast %14 : vector<8x16x128xbf16> to vector<128x128xbf16>
    %c128 = arith.constant 128 : index
    %c0_8 = arith.constant 0 : index
    %16 = vector.load %arg3[%c128, %c0_8] : memref<1152x128xbf16, #tpu.memory_space<vmem>>, vector<128x128xbf16>
    %cst_9 = arith.constant dense<0.000000e+00> : vector<128x128xf32>
    %17 = tpu.matmul %15, %16, %cst_9 {dimension_numbers = #tpu.dot_dimension_numbers<[1], [0], [0], [1], [0, 0, 1, 1], [], []>} : vector<128x128xbf16>, vector<128x128xbf16>, vector<128x128xf32> -> vector<128x128xf32>
    %18 = arith.addf %10, %17 : vector<128x128xf32>
    %c0_i32_10 = arith.constant 0 : i32
    %19 = arith.addi %1, %c0_i32_10 : i32
    %c0_11 = arith.constant 0 : index
    %20 = arith.index_cast %19 : i32 to index
    %c2 = arith.constant 2 : index
    %c0_12 = arith.constant 0 : index
    %21 = vector.load %arg2[%c0_11, %20, %c2, %c0_12] : memref<1x18x18x128xbf16, #tpu.memory_space<vmem>>, vector<1x8x16x128xbf16>
    %22 = vector.shape_cast %21 : vector<1x8x16x128xbf16> to vector<8x16x128xbf16>
    %23 = vector.shape_cast %22 : vector<8x16x128xbf16> to vector<128x128xbf16>
    %c256 = arith.constant 256 : index
    %c0_13 = arith.constant 0 : index
    %24 = vector.load %arg3[%c256, %c0_13] : memref<1152x128xbf16, #tpu.memory_space<vmem>>, vector<128x128xbf16>
    %cst_14 = arith.constant dense<0.000000e+00> : vector<128x128xf32>
    %25 = tpu.matmul %23, %24, %cst_14 {dimension_numbers = #tpu.dot_dimension_numbers<[1], [0], [0], [1], [0, 0, 1, 1], [], []>} : vector<128x128xbf16>, vector<128x128xbf16>, vector<128x128xf32> -> vector<128x128xf32>
    %26 = arith.addf %18, %25 : vector<128x128xf32>
    %c1_i32 = arith.constant 1 : i32
    %27 = arith.addi %1, %c1_i32 : i32
    %c0_15 = arith.constant 0 : index
    %28 = arith.index_cast %27 : i32 to index
    %c0_16 = arith.constant 0 : index
    %c0_17 = arith.constant 0 : index
    %29 = vector.load %arg2[%c0_15, %28, %c0_16, %c0_17] : memref<1x18x18x128xbf16, #tpu.memory_space<vmem>>, vector<1x8x16x128xbf16>
    %30 = vector.shape_cast %29 : vector<1x8x16x128xbf16> to vector<8x16x128xbf16>
    %31 = vector.shape_cast %30 : vector<8x16x128xbf16> to vector<128x128xbf16>
    %c384 = arith.constant 384 : index
    %c0_18 = arith.constant 0 : index
    %32 = vector.load %arg3[%c384, %c0_18] : memref<1152x128xbf16, #tpu.memory_space<vmem>>, vector<128x128xbf16>
    %cst_19 = arith.constant dense<0.000000e+00> : vector<128x128xf32>
    %33 = tpu.matmul %31, %32, %cst_19 {dimension_numbers = #tpu.dot_dimension_numbers<[1], [0], [0], [1], [0, 0, 1, 1], [], []>} : vector<128x128xbf16>, vector<128x128xbf16>, vector<128x128xf32> -> vector<128x128xf32>
    %34 = arith.addf %26, %33 : vector<128x128xf32>
    %c1_i32_20 = arith.constant 1 : i32
    %35 = arith.addi %1, %c1_i32_20 : i32
    %c0_21 = arith.constant 0 : index
    %36 = arith.index_cast %35 : i32 to index
    %c1_22 = arith.constant 1 : index
    %c0_23 = arith.constant 0 : index
    %37 = vector.load %arg2[%c0_21, %36, %c1_22, %c0_23] : memref<1x18x18x128xbf16, #tpu.memory_space<vmem>>, vector<1x8x16x128xbf16>
    %38 = vector.shape_cast %37 : vector<1x8x16x128xbf16> to vector<8x16x128xbf16>
    %39 = vector.shape_cast %38 : vector<8x16x128xbf16> to vector<128x128xbf16>
    %c512 = arith.constant 512 : index
    %c0_24 = arith.constant 0 : index
    %40 = vector.load %arg3[%c512, %c0_24] : memref<1152x128xbf16, #tpu.memory_space<vmem>>, vector<128x128xbf16>
    %cst_25 = arith.constant dense<0.000000e+00> : vector<128x128xf32>
    %41 = tpu.matmul %39, %40, %cst_25 {dimension_numbers = #tpu.dot_dimension_numbers<[1], [0], [0], [1], [0, 0, 1, 1], [], []>} : vector<128x128xbf16>, vector<128x128xbf16>, vector<128x128xf32> -> vector<128x128xf32>
    %42 = arith.addf %34, %41 : vector<128x128xf32>
    %c1_i32_26 = arith.constant 1 : i32
    %43 = arith.addi %1, %c1_i32_26 : i32
    %c0_27 = arith.constant 0 : index
    %44 = arith.index_cast %43 : i32 to index
    %c2_28 = arith.constant 2 : index
    %c0_29 = arith.constant 0 : index
    %45 = vector.load %arg2[%c0_27, %44, %c2_28, %c0_29] : memref<1x18x18x128xbf16, #tpu.memory_space<vmem>>, vector<1x8x16x128xbf16>
    %46 = vector.shape_cast %45 : vector<1x8x16x128xbf16> to vector<8x16x128xbf16>
    %47 = vector.shape_cast %46 : vector<8x16x128xbf16> to vector<128x128xbf16>
    %c640 = arith.constant 640 : index
    %c0_30 = arith.constant 0 : index
    %48 = vector.load %arg3[%c640, %c0_30] : memref<1152x128xbf16, #tpu.memory_space<vmem>>, vector<128x128xbf16>
    %cst_31 = arith.constant dense<0.000000e+00> : vector<128x128xf32>
    %49 = tpu.matmul %47, %48, %cst_31 {dimension_numbers = #tpu.dot_dimension_numbers<[1], [0], [0], [1], [0, 0, 1, 1], [], []>} : vector<128x128xbf16>, vector<128x128xbf16>, vector<128x128xf32> -> vector<128x128xf32>
    %50 = arith.addf %42, %49 : vector<128x128xf32>
    %c2_i32 = arith.constant 2 : i32
    %51 = arith.addi %1, %c2_i32 : i32
    %c0_32 = arith.constant 0 : index
    %52 = arith.index_cast %51 : i32 to index
    %c0_33 = arith.constant 0 : index
    %c0_34 = arith.constant 0 : index
    %53 = vector.load %arg2[%c0_32, %52, %c0_33, %c0_34] : memref<1x18x18x128xbf16, #tpu.memory_space<vmem>>, vector<1x8x16x128xbf16>
    %54 = vector.shape_cast %53 : vector<1x8x16x128xbf16> to vector<8x16x128xbf16>
    %55 = vector.shape_cast %54 : vector<8x16x128xbf16> to vector<128x128xbf16>
    %c768 = arith.constant 768 : index
    %c0_35 = arith.constant 0 : index
    %56 = vector.load %arg3[%c768, %c0_35] : memref<1152x128xbf16, #tpu.memory_space<vmem>>, vector<128x128xbf16>
    %cst_36 = arith.constant dense<0.000000e+00> : vector<128x128xf32>
    %57 = tpu.matmul %55, %56, %cst_36 {dimension_numbers = #tpu.dot_dimension_numbers<[1], [0], [0], [1], [0, 0, 1, 1], [], []>} : vector<128x128xbf16>, vector<128x128xbf16>, vector<128x128xf32> -> vector<128x128xf32>
    %58 = arith.addf %50, %57 : vector<128x128xf32>
    %c2_i32_37 = arith.constant 2 : i32
    %59 = arith.addi %1, %c2_i32_37 : i32
    %c0_38 = arith.constant 0 : index
    %60 = arith.index_cast %59 : i32 to index
    %c1_39 = arith.constant 1 : index
    %c0_40 = arith.constant 0 : index
    %61 = vector.load %arg2[%c0_38, %60, %c1_39, %c0_40] : memref<1x18x18x128xbf16, #tpu.memory_space<vmem>>, vector<1x8x16x128xbf16>
    %62 = vector.shape_cast %61 : vector<1x8x16x128xbf16> to vector<8x16x128xbf16>
    %63 = vector.shape_cast %62 : vector<8x16x128xbf16> to vector<128x128xbf16>
    %c896 = arith.constant 896 : index
    %c0_41 = arith.constant 0 : index
    %64 = vector.load %arg3[%c896, %c0_41] : memref<1152x128xbf16, #tpu.memory_space<vmem>>, vector<128x128xbf16>
    %cst_42 = arith.constant dense<0.000000e+00> : vector<128x128xf32>
    %65 = tpu.matmul %63, %64, %cst_42 {dimension_numbers = #tpu.dot_dimension_numbers<[1], [0], [0], [1], [0, 0, 1, 1], [], []>} : vector<128x128xbf16>, vector<128x128xbf16>, vector<128x128xf32> -> vector<128x128xf32>
    %66 = arith.addf %58, %65 : vector<128x128xf32>
    %c2_i32_43 = arith.constant 2 : i32
    %67 = arith.addi %1, %c2_i32_43 : i32
    %c0_44 = arith.constant 0 : index
    %68 = arith.index_cast %67 : i32 to index
    %c2_45 = arith.constant 2 : index
    %c0_46 = arith.constant 0 : index
    %69 = vector.load %arg2[%c0_44, %68, %c2_45, %c0_46] : memref<1x18x18x128xbf16, #tpu.memory_space<vmem>>, vector<1x8x16x128xbf16>
    %70 = vector.shape_cast %69 : vector<1x8x16x128xbf16> to vector<8x16x128xbf16>
    %71 = vector.shape_cast %70 : vector<8x16x128xbf16> to vector<128x128xbf16>
    %c1024 = arith.constant 1024 : index
    %c0_47 = arith.constant 0 : index
    %72 = vector.load %arg3[%c1024, %c0_47] : memref<1152x128xbf16, #tpu.memory_space<vmem>>, vector<128x128xbf16>
    %cst_48 = arith.constant dense<0.000000e+00> : vector<128x128xf32>
    %73 = tpu.matmul %71, %72, %cst_48 {dimension_numbers = #tpu.dot_dimension_numbers<[1], [0], [0], [1], [0, 0, 1, 1], [], []>} : vector<128x128xbf16>, vector<128x128xbf16>, vector<128x128xf32> -> vector<128x128xf32>
    %74 = arith.addf %66, %73 : vector<128x128xf32>
    %75 = vector.shape_cast %74 : vector<128x128xf32> to vector<1x8x16x128xf32>
    %76 = arith.truncf %75 : vector<1x8x16x128xf32> to vector<1x8x16x128xbf16>
    %c0_49 = arith.constant 0 : index
    %c0_50 = arith.constant 0 : index
    %c0_51 = arith.constant 0 : index
    %c0_52 = arith.constant 0 : index
    %77 = vector.load %arg4[%c0_49, %c0_50, %c0_51, %c0_52] : memref<1x8x16x128xbf16, #tpu.memory_space<vmem>>, vector<1x8x16x128xbf16>
    tpu.vector_store %arg4[%c0_49, %c0_50, %c0_51, %c0_52], %76 {strides = array<i32>} : memref<1x8x16x128xbf16, #tpu.memory_space<vmem>>, vector<1x8x16x128xbf16>,
    %cst_53 = arith.constant dense<0.000000e+00> : vector<128xf32>
    %78 = vector.multi_reduction <add>, %74, %cst_53 [0] : vector<128x128xf32> to vector<128xf32>
    %79 = vector.shape_cast %78 : vector<128xf32> to vector<1x128xf32>
    %80 = arith.mulf %74, %74 : vector<128x128xf32>
    %cst_54 = arith.constant dense<0.000000e+00> : vector<128xf32>
    %81 = vector.multi_reduction <add>, %80, %cst_54 [0] : vector<128x128xf32> to vector<128xf32>
    %82 = vector.shape_cast %81 : vector<128xf32> to vector<1x128xf32>
    %83 = tpu.concatenate %79, %82 in 0 : vector<1x128xf32>, vector<1x128xf32> -> vector<2x128xf32>
    %84 = vector.shape_cast %83 : vector<2x128xf32> to vector<1x1x2x128xf32>
    %c0_55 = arith.constant 0 : index
    %c0_56 = arith.constant 0 : index
    %c0_57 = arith.constant 0 : index
    %c0_58 = arith.constant 0 : index
    %85 = vector.load %arg5[%c0_55, %c0_56, %c0_57, %c0_58] : memref<1x1x2x128xf32, #tpu.memory_space<vmem>>, vector<1x1x2x128xf32>
    tpu.vector_store %arg5[%c0_55, %c0_56, %c0_57, %c0_58], %84 {strides = array<i32>} : memref<1x1x2x128xf32, #tpu.memory_space<vmem>>, vector<1x1x2x128xf32>,
    return
  }
  func.func @transform_0(%arg0: i32, %arg1: i32) -> (i32, i32, i32, i32) {
    %c0_i32 = arith.constant 0 : i32
    %c0_i32_0 = arith.constant 0 : i32
    %c0_i32_1 = arith.constant 0 : i32
    %c0_i32_2 = arith.constant 0 : i32
    return %arg0, %c0_i32, %c0_i32_0, %c0_i32_1 : i32, i32, i32, i32
  }
  func.func @transform_1(%arg0: i32, %arg1: i32) -> (i32, i32) {
    %c0_i32 = arith.constant 0 : i32
    %c0_i32_0 = arith.constant 0 : i32
    %c0_i32_1 = arith.constant 0 : i32
    return %c0_i32, %c0_i32_0 : i32, i32
  }
  func.func @transform_2(%arg0: i32, %arg1: i32) -> (i32, i32, i32, i32) {
    %c0_i32 = arith.constant 0 : i32
    %c0_i32_0 = arith.constant 0 : i32
    %c0_i32_1 = arith.constant 0 : i32
    return %arg0, %arg1, %c0_i32, %c0_i32_0 : i32, i32, i32, i32
  }
  func.func @transform_3(%arg0: i32, %arg1: i32) -> (i32, i32, i32, i32) {
    %c0_i32 = arith.constant 0 : i32
    %c0_i32_0 = arith.constant 0 : i32
    %c0_i32_1 = arith.constant 0 : i32
    return %arg0, %arg1, %c0_i32, %c0_i32_0 : i32, i32, i32, i32
  }
}

</mosaic_0001>

<bundles_post_ra>
// kernel: basic_block_forward.7
= control target key start
LH: loop header
LB: loop body
LE: loop exit
PB: predicated region body
PF: predicated region fallthrough
CT: control target
= control target key end

     0   :  { %s1006_s15 = smov 0   ;;  %s1223_s0 = inlined_call_operand.vmem [shape: bf16[2,16,16,128], index: 0, kind: input, shape index: {}]   ;;  %s1224_s1 = inlined_call_operand.vmem [shape: f32[1,128], index: 1, kind: input, shape index: {}]   ;;  %s1225_s2 = inlined_call_operand.vmem [shape: f32[1,128], index: 2, kind: input, shape index: {}]   ;;  %s1226_s3 = inlined_call_operand.vmem [shape: bf16[2,18,18,128], index: 3, kind: input, shape index: {}]   ;;  %s1227_s4 = inlined_call_operand.vmem [shape: f32[2,16,16,128], index: 4, kind: output, shape index: {}]  }
   0x1 LB: > { %s781_s16 = sadd.s32 4294967295, %s979_s15   ;;  %p785_p0 = scmp.ge.s32.totalorder %s979_s15, 1  ;;  %s979_s15 = sphi %s1006_s15, %s14_s15  }
   0x2   : > { %p172_p1 = scmp.lt.s32.totalorder %s979_s15, 3 }
   0x4   : > { %p173_p2 = pnand %p785_p0, %p172_p1 }
   0x5   : > { %p203_p3 = scmp.lt.s32.totalorder (!%p173_p2), %s781_s16, 1  ;;  %v1032_v1 = vld [vmem:[%s1224_s1] ss:$0 sm:$0xff] (!%p173_p2)  ;;  %vm505_vm0 = vcmask (!%p173_p2), 1046528  }
   0x6   : > { %176 = sbr.rel (%p173_p2) target bundleno = 95 (0x5f), region = 36  ;;  %v1041_v10 = vld [vmem:[%s1225_s2] ss:$0 sm:$0xff] (!%p173_p2) }
   0xd   : > { %s1229_s16 = smov (!%p203_p3, %s781_s16), 1 }
   0xe   : > { %s843_s17 = sshll.u32 %s1229_s16, 7  ;;  %s964_s18 = smul.u32 216, %s1229_s16 }
   0xf   : > { %s1021_s21 = scalar_lea.vmem %s1223_s0, %s843_s17  ;;  %s844_s29 = sshll.u32 %s1229_s16, 8 }
  0x10   : > { %s1026_s24 = scalar_lea.vmem %s1226_s3, %s964_s18  ;;  %v846_v0 = vld [vmem:[%s1021_s21] sm:$0xff]   ;;  %v941_v2 = vld [vmem:[%s1021_s21 + $0x8] sm:$0xff]   ;;  %v942_v24 = vld [vmem:[%s1021_s21 + $0x10] sm:$0xff]   ;;  %s1060_s6 = scalar_lea.vmem %s1227_s4, %s844_s29 }
  0x11   : > { %v847_v3 = vunpack.c.l.bf16 %v846_v0  ;;  %v793_v4 = vld [vmem:[%s1026_s24 + $0xc] sm:$0xff]   ;;  %v848_v5 = vunpack.c.h.bf16 %v846_v0  ;;  %v795_v6 = vld [vmem:[%s1026_s24 + $0x14] sm:$0x1]  ;;  %v851_v7 = vunpack.c.l.bf16 %v941_v2  ;;  %v956_v8 = vld [vmem:[%s1026_s24 + $0x18] sm:$0xff]   ;;  %v852_v9 = vunpack.c.h.bf16 %v941_v2 }
  0x12   : > { %v409_v11 = vunpack.c.l.bf16 %v793_v4  ;;  %v410_v12 = vunpack.c.h.bf16 %v793_v4  ;;  %v411_v13 = vunpack.c.l.bf16 %v795_v6  ;;  %v911_v14 = vunpack.c.l.bf16 %v956_v8  ;;  %v798_v19 = vld [vmem:[%s1026_s24 + $0x20] sm:$0x1]  ;;  %v799_v29 = vld [vmem:[%s1026_s24 + $0x24] sm:$0xff]   ;;  %v801_v42 = vld [vmem:[%s1026_s24 + $0x2c] sm:$0x1] }
  0x13   : > { %v289_v15 = vmul.f32 %v847_v3, %v1032_v1  ;;  %v290_v16 = vmul.f32 %v848_v5, %v1032_v1  ;;  %v291_v17 = vmul.f32 %v851_v7, %v1032_v1  ;;  %v912_v18 = vunpack.c.h.bf16 %v956_v8  ;;  %v943_v47 = vld [vmem:[%s1021_s21 + $0x18] sm:$0xff]   ;;  %v957_v48 = vld [vmem:[%s1026_s24 + $0x30] sm:$0xff]   ;;  %v944_v3 = vld [vmem:[%s1021_s21 + $0x20] sm:$0xff]  }
  0x14   : > { %v506_v20 = vrot.slane %v409_v11, 1  ;;  %v507_v21 = vrot.slane %v410_v12, 1  ;;  %v509_v22 = vrot.slane %v411_v13, 1  ;;  %v511_v23 = vrot.slane %v911_v14, 1  ;;  %v804_v61 = vld [vmem:[%s1026_s24 + $0x38] sm:$0x1] }
  0x15   : > { %v328_v25 = vadd.f32 %v1041_v10, %v289_v15  ;;  %v329_v26 = vadd.f32 %v1041_v10, %v290_v16  ;;  %v330_v27 = vadd.f32 %v1041_v10, %v291_v17  ;;  %v512_v28 = vrot.slane %v912_v18, 1  ;;  %v805_v8 = vld [vmem:[%s1026_s24 + $0x3c] sm:$0xff]   ;;  %v807_v18 = vld [vmem:[%s1026_s24 + $0x44] sm:$0x1] }
  0x16   : > { %v508_v30 = vsel %vm505_vm0, %v506_v20, %v507_v21  ;;  %v510_v31 = vsel %vm505_vm0, %v507_v21, %v509_v22  ;;  %v292_v32 = vmul.f32 %v852_v9, %v1032_v1  ;;  %v414_v33 = vunpack.c.l.bf16 %v798_v19 }
  0x17   : > { %v618_v34 = vadd.f32 %v508_v30, %v328_v25  ;;  %v619_v35 = vadd.f32 %v510_v31, %v329_v26  ;;  %v513_v36 = vsel %vm505_vm0, %v511_v23, %v512_v28  ;;  %v855_v37 = vunpack.c.l.bf16 %v942_v24 }
  0x18   : > { %v620_v38 = vadd.f32 %v513_v36, %v330_v27  ;;  %v331_v39 = vadd.f32 %v1041_v10, %v292_v32  ;;  %v514_v40 = vrot.slane %v414_v33, 1  ;;  %v415_v41 = vunpack.c.l.bf16 %v799_v29  ;;  %v945_v27 = vld [vmem:[%s1021_s21 + $0x28] sm:$0xff]  }
  0x19   : > { %v650_v43 = vmax.f32 %v618_v34, 0.0  ;;  %v651_v44 = vmax.f32 %v619_v35, 0.0  ;;  %v293_v45 = vmul.f32 %v855_v37, %v1032_v1  ;;  %v416_v46 = vunpack.c.h.bf16 %v799_v29 }
  0x1a   : > { %v652_v49 = vmax.f32 %v620_v38, 0.0  ;;  %v515_v50 = vsel %vm505_vm0, %v512_v28, %v514_v40  ;;  %v516_v51 = vrot.slane %v415_v41, 1  ;;  %v856_v52 = vunpack.c.h.bf16 %v942_v24  ;;  %v958_v28 = vld [vmem:[%s1026_s24 + $0x48] sm:$0xff]   ;;  %v810_v41 = vld [vmem:[%s1026_s24 + $0x50] sm:$0x1] }
  0x1b   : > { %682 = vst [vmem:[%s1060_s6] sm:$0xff] %v650_v43  ;;  %683 = vst [vmem:[%s1060_s6 + $0x8] sm:$0xff] %v651_v44  ;;  %v621_v53 = vadd.f32 %v515_v50, %v331_v39  ;;  %v332_v54 = vadd.f32 %v1041_v10, %v293_v45  ;;  %v517_v55 = vrot.slane %v416_v46, 1  ;;  %v417_v56 = vunpack.c.l.bf16 %v801_v42  ;;  %v946_v46 = vld [vmem:[%s1021_s21 + $0x30] sm:$0xff]  }
  0x1c   : > { %684 = vst [vmem:[%s1060_s6 + $0x10] sm:$0xff] %v652_v49  ;;  %v294_v57 = vmul.f32 %v856_v52, %v1032_v1  ;;  %v859_v58 = vunpack.c.l.bf16 %v943_v47  ;;  %v915_v59 = vunpack.c.l.bf16 %v957_v48  ;;  %v916_v60 = vunpack.c.h.bf16 %v957_v48 }
  0x1d   : > { %v653_v62 = vmax.f32 %v621_v53, 0.0  ;;  %v518_v63 = vsel %vm505_vm0, %v516_v51, %v517_v55  ;;  %v519_v0 = vrot.slane %v417_v56, 1  ;;  %v860_v2 = vunpack.c.h.bf16 %v943_v47  ;;  %v811_v51 = vld [vmem:[%s1026_s24 + $0x54] sm:$0xff]  }
  0x1e   : > { %v622_v4 = vadd.f32 %v518_v63, %v332_v54  ;;  %v333_v5 = vadd.f32 %v1041_v10, %v294_v57  ;;  %v295_v6 = vmul.f32 %v859_v58, %v1032_v1  ;;  %v521_v7 = vrot.slane %v915_v59, 1 }
  0x1f   : > { %685 = vst [vmem:[%s1060_s6 + $0x18] sm:$0xff] %v653_v62  ;;  %v520_v9 = vsel %vm505_vm0, %v517_v55, %v519_v0  ;;  %v522_v11 = vrot.slane %v916_v60, 1  ;;  %v296_v12 = vmul.f32 %v860_v2, %v1032_v1  ;;  %v420_v13 = vunpack.c.l.bf16 %v804_v61  ;;  %v813_v60 = vld [vmem:[%s1026_s24 + $0x5c] sm:$0x1] }
  0x20   : > { %v654_v14 = vmax.f32 %v622_v4, 0.0  ;;  %v623_v15 = vadd.f32 %v520_v9, %v333_v5  ;;  %v334_v16 = vadd.f32 %v1041_v10, %v295_v6  ;;  %v863_v17 = vunpack.c.l.bf16 %v944_v3  ;;  %v947_v6 = vld [vmem:[%s1021_s21 + $0x38] sm:$0xff]  }
  0x21   : > { %v523_v19 = vsel %vm505_vm0, %v521_v7, %v522_v11  ;;  %v335_v20 = vadd.f32 %v1041_v10, %v296_v12  ;;  %v524_v21 = vrot.slane %v420_v13, 1  ;;  %v421_v22 = vunpack.c.l.bf16 %v805_v8  ;;  %v959_v7 = vld [vmem:[%s1026_s24 + $0x60] sm:$0xff]  }
  0x22   : > { %686 = vst [vmem:[%s1060_s6 + $0x20] sm:$0xff] %v654_v14  ;;  %v655_v23 = vmax.f32 %v623_v15, 0.0  ;;  %v624_v24 = vadd.f32 %v523_v19, %v334_v16  ;;  %v297_v25 = vmul.f32 %v863_v17, %v1032_v1  ;;  %v422_v26 = vunpack.c.h.bf16 %v805_v8 }
  0x23   : > { %v525_v29 = vsel %vm505_vm0, %v522_v11, %v524_v21  ;;  %v526_v30 = vrot.slane %v421_v22, 1  ;;  %v864_v31 = vunpack.c.h.bf16 %v944_v3  ;;  %v423_v32 = vunpack.c.l.bf16 %v807_v18  ;;  %v816_v21 = vld [vmem:[%s1026_s24 + $0x68] sm:$0x1] }
  0x24   : > { %687 = vst [vmem:[%s1060_s6 + $0x28] sm:$0xff] %v655_v23  ;;  %v656_v33 = vmax.f32 %v624_v24, 0.0  ;;  %v625_v34 = vadd.f32 %v525_v29, %v335_v20  ;;  %v336_v35 = vadd.f32 %v1041_v10, %v297_v25  ;;  %v527_v36 = vrot.slane %v422_v26, 1  ;;  %v948_v26 = vld [vmem:[%s1021_s21 + $0x40] sm:$0xff]  }
  0x25   : > { %v298_v37 = vmul.f32 %v864_v31, %v1032_v1  ;;  %v529_v38 = vrot.slane %v423_v32, 1  ;;  %v867_v39 = vunpack.c.l.bf16 %v945_v27  ;;  %v919_v40 = vunpack.c.l.bf16 %v958_v28  ;;  %v817_v31 = vld [vmem:[%s1026_s24 + $0x6c] sm:$0xff]  }
  0x26   : > { %688 = vst [vmem:[%s1060_s6 + $0x30] sm:$0xff] %v656_v33  ;;  %v657_v42 = vmax.f32 %v625_v34, 0.0  ;;  %v528_v43 = vsel %vm505_vm0, %v526_v30, %v527_v36  ;;  %v920_v44 = vunpack.c.h.bf16 %v958_v28  ;;  %v868_v45 = vunpack.c.h.bf16 %v945_v27 }
  0x27   : > { %v626_v47 = vadd.f32 %v528_v43, %v336_v35  ;;  %v337_v48 = vadd.f32 %v1041_v10, %v298_v37  ;;  %v530_v49 = vsel %vm505_vm0, %v527_v36, %v529_v38  ;;  %v299_v50 = vmul.f32 %v867_v39, %v1032_v1 }
  0x28   : > { %689 = vst [vmem:[%s1060_s6 + $0x38] sm:$0xff] %v657_v42  ;;  %v531_v52 = vrot.slane %v919_v40, 1  ;;  %v532_v53 = vrot.slane %v920_v44, 1  ;;  %v300_v54 = vmul.f32 %v868_v45, %v1032_v1  ;;  %v426_v55 = vunpack.c.l.bf16 %v810_v41  ;;  %v819_v40 = vld [vmem:[%s1026_s24 + $0x74] sm:$0x1] }
  0x29   : > { %v658_v56 = vmax.f32 %v626_v47, 0.0  ;;  %v627_v57 = vadd.f32 %v530_v49, %v337_v48  ;;  %v338_v58 = vadd.f32 %v1041_v10, %v299_v50  ;;  %v871_v59 = vunpack.c.l.bf16 %v946_v46  ;;  %v949_v49 = vld [vmem:[%s1021_s21 + $0x48] sm:$0xff]   ;;  %v960_v50 = vld [vmem:[%s1026_s24 + $0x78] sm:$0xff]  }
  0x2a   : > { %v533_v61 = vsel %vm505_vm0, %v531_v52, %v532_v53  ;;  %v339_v62 = vadd.f32 %v1041_v10, %v300_v54  ;;  %v534_v63 = vrot.slane %v426_v55, 1  ;;  %v427_v0 = vunpack.c.l.bf16 %v811_v51 }
  0x2b   : > { %690 = vst [vmem:[%s1060_s6 + $0x40] sm:$0xff] %v658_v56  ;;  %v659_v2 = vmax.f32 %v627_v57, 0.0  ;;  %v628_v3 = vadd.f32 %v533_v61, %v338_v58  ;;  %v301_v4 = vmul.f32 %v871_v59, %v1032_v1  ;;  %v428_v5 = vunpack.c.h.bf16 %v811_v51 }
  0x2c   : > { %v535_v8 = vsel %vm505_vm0, %v532_v53, %v534_v63  ;;  %v536_v9 = vrot.slane %v427_v0, 1  ;;  %v872_v11 = vunpack.c.h.bf16 %v946_v46  ;;  %v429_v12 = vunpack.c.l.bf16 %v813_v60  ;;  %v822_v63 = vld [vmem:[%s1026_s24 + $0x80] sm:$0x1] }
  0x2d   : > { %691 = vst [vmem:[%s1060_s6 + $0x48] sm:$0xff] %v659_v2  ;;  %v660_v13 = vmax.f32 %v628_v3, 0.0  ;;  %v629_v14 = vadd.f32 %v535_v8, %v339_v62  ;;  %v340_v15 = vadd.f32 %v1041_v10, %v301_v4  ;;  %v537_v16 = vrot.slane %v428_v5, 1  ;;  %v950_v5 = vld [vmem:[%s1021_s21 + $0x50] sm:$0xff]  }
  0x2e   : > { %v302_v17 = vmul.f32 %v872_v11, %v1032_v1  ;;  %v539_v18 = vrot.slane %v429_v12, 1  ;;  %v875_v19 = vunpack.c.l.bf16 %v947_v6  ;;  %v923_v20 = vunpack.c.l.bf16 %v959_v7  ;;  %v823_v11 = vld [vmem:[%s1026_s24 + $0x84] sm:$0xff]  }
  0x2f   : > { %692 = vst [vmem:[%s1060_s6 + $0x50] sm:$0xff] %v660_v13  ;;  %v661_v22 = vmax.f32 %v629_v14, 0.0  ;;  %v538_v23 = vsel %vm505_vm0, %v536_v9, %v537_v16  ;;  %v924_v24 = vunpack.c.h.bf16 %v959_v7  ;;  %v876_v25 = vunpack.c.h.bf16 %v947_v6 }
  0x30   : > { %v630_v27 = vadd.f32 %v538_v23, %v340_v15  ;;  %v341_v28 = vadd.f32 %v1041_v10, %v302_v17  ;;  %v540_v29 = vsel %vm505_vm0, %v537_v16, %v539_v18  ;;  %v303_v30 = vmul.f32 %v875_v19, %v1032_v1 }
  0x31   : > { %693 = vst [vmem:[%s1060_s6 + $0x58] sm:$0xff] %v661_v22  ;;  %v541_v32 = vrot.slane %v923_v20, 1  ;;  %v542_v33 = vrot.slane %v924_v24, 1  ;;  %v304_v34 = vmul.f32 %v876_v25, %v1032_v1  ;;  %v432_v35 = vunpack.c.l.bf16 %v816_v21  ;;  %v825_v20 = vld [vmem:[%s1026_s24 + $0x8c] sm:$0x1] }
  0x32   : > { %v662_v36 = vmax.f32 %v630_v27, 0.0  ;;  %v631_v37 = vadd.f32 %v540_v29, %v341_v28  ;;  %v342_v38 = vadd.f32 %v1041_v10, %v303_v30  ;;  %v879_v39 = vunpack.c.l.bf16 %v948_v26  ;;  %v951_v29 = vld [vmem:[%s1021_s21 + $0x58] sm:$0xff]   ;;  %v961_v30 = vld [vmem:[%s1026_s24 + $0x90] sm:$0xff]  }
  0x33   : > { %v543_v41 = vsel %vm505_vm0, %v541_v32, %v542_v33  ;;  %v343_v42 = vadd.f32 %v1041_v10, %v304_v34  ;;  %v544_v43 = vrot.slane %v432_v35, 1  ;;  %v433_v44 = vunpack.c.l.bf16 %v817_v31 }
  0x34   : > { %694 = vst [vmem:[%s1060_s6 + $0x60] sm:$0xff] %v662_v36  ;;  %v663_v45 = vmax.f32 %v631_v37, 0.0  ;;  %v632_v46 = vadd.f32 %v543_v41, %v342_v38  ;;  %v305_v47 = vmul.f32 %v879_v39, %v1032_v1  ;;  %v434_v48 = vunpack.c.h.bf16 %v817_v31 }
  0x35   : > { %v545_v51 = vsel %vm505_vm0, %v542_v33, %v544_v43  ;;  %v546_v52 = vrot.slane %v433_v44, 1  ;;  %v880_v53 = vunpack.c.h.bf16 %v948_v26  ;;  %v435_v54 = vunpack.c.l.bf16 %v819_v40  ;;  %v828_v43 = vld [vmem:[%s1026_s24 + $0x98] sm:$0x1] }
  0x36   : > { %695 = vst [vmem:[%s1060_s6 + $0x68] sm:$0xff] %v663_v45  ;;  %v664_v55 = vmax.f32 %v632_v46, 0.0  ;;  %v633_v56 = vadd.f32 %v545_v51, %v343_v42  ;;  %v344_v57 = vadd.f32 %v1041_v10, %v305_v47  ;;  %v547_v58 = vrot.slane %v434_v48, 1  ;;  %v952_v48 = vld [vmem:[%s1021_s21 + $0x60] sm:$0xff]  }
  0x37   : > { %v306_v59 = vmul.f32 %v880_v53, %v1032_v1  ;;  %v549_v60 = vrot.slane %v435_v54, 1  ;;  %v883_v61 = vunpack.c.l.bf16 %v949_v49  ;;  %v927_v62 = vunpack.c.l.bf16 %v960_v50  ;;  %v829_v53 = vld [vmem:[%s1026_s24 + $0x9c] sm:$0xff]  }
  0x38   : > { %696 = vst [vmem:[%s1060_s6 + $0x70] sm:$0xff] %v664_v55  ;;  %v665_v0 = vmax.f32 %v633_v56, 0.0  ;;  %v548_v2 = vsel %vm505_vm0, %v546_v52, %v547_v58  ;;  %v928_v3 = vunpack.c.h.bf16 %v960_v50  ;;  %v884_v4 = vunpack.c.h.bf16 %v949_v49 }
  0x39   : > { %v634_v6 = vadd.f32 %v548_v2, %v344_v57  ;;  %v345_v7 = vadd.f32 %v1041_v10, %v306_v59  ;;  %v550_v8 = vsel %vm505_vm0, %v547_v58, %v549_v60  ;;  %v307_v9 = vmul.f32 %v883_v61, %v1032_v1 }
  0x3a   : > { %697 = vst [vmem:[%s1060_s6 + $0x78] sm:$0xff] %v665_v0  ;;  %v551_v12 = vrot.slane %v927_v62, 1  ;;  %v552_v13 = vrot.slane %v928_v3, 1  ;;  %v308_v14 = vmul.f32 %v884_v4, %v1032_v1  ;;  %v438_v15 = vunpack.c.l.bf16 %v822_v63  ;;  %v831_v62 = vld [vmem:[%s1026_s24 + $0xa4] sm:$0x1] }
  0x3b   : > { %v666_v16 = vmax.f32 %v634_v6, 0.0  ;;  %v635_v17 = vadd.f32 %v550_v8, %v345_v7  ;;  %v346_v18 = vadd.f32 %v1041_v10, %v307_v9  ;;  %v887_v19 = vunpack.c.l.bf16 %v950_v5  ;;  %v953_v8 = vld [vmem:[%s1021_s21 + $0x68] sm:$0xff]  }
  0x3c   : > { %v553_v21 = vsel %vm505_vm0, %v551_v12, %v552_v13  ;;  %v347_v22 = vadd.f32 %v1041_v10, %v308_v14  ;;  %v554_v23 = vrot.slane %v438_v15, 1  ;;  %v439_v24 = vunpack.c.l.bf16 %v823_v11  ;;  %v962_v9 = vld [vmem:[%s1026_s24 + $0xa8] sm:$0xff]  }
  0x3d   : > { %698 = vst [vmem:[%s1060_s6 + $0x80] sm:$0xff] %v666_v16  ;;  %v667_v25 = vmax.f32 %v635_v17, 0.0  ;;  %v636_v26 = vadd.f32 %v553_v21, %v346_v18  ;;  %v309_v27 = vmul.f32 %v887_v19, %v1032_v1  ;;  %v440_v28 = vunpack.c.h.bf16 %v823_v11 }
  0x3e   : > { %v555_v31 = vsel %vm505_vm0, %v552_v13, %v554_v23  ;;  %v556_v32 = vrot.slane %v439_v24, 1  ;;  %v888_v33 = vunpack.c.h.bf16 %v950_v5  ;;  %v441_v34 = vunpack.c.l.bf16 %v825_v20  ;;  %v834_v23 = vld [vmem:[%s1026_s24 + $0xb0] sm:$0x1] }
  0x3f   : > { %699 = vst [vmem:[%s1060_s6 + $0x88] sm:$0xff] %v667_v25  ;;  %v668_v35 = vmax.f32 %v636_v26, 0.0  ;;  %v637_v36 = vadd.f32 %v555_v31, %v347_v22  ;;  %v348_v37 = vadd.f32 %v1041_v10, %v309_v27  ;;  %v557_v38 = vrot.slane %v440_v28, 1  ;;  %v954_v28 = vld [vmem:[%s1021_s21 + $0x70] sm:$0xff]  }
  0x40   : > { %v310_v39 = vmul.f32 %v888_v33, %v1032_v1  ;;  %v559_v40 = vrot.slane %v441_v34, 1  ;;  %v891_v41 = vunpack.c.l.bf16 %v951_v29  ;;  %v931_v42 = vunpack.c.l.bf16 %v961_v30  ;;  %v835_v33 = vld [vmem:[%s1026_s24 + $0xb4] sm:$0xff]  }
  0x41   : > { %700 = vst [vmem:[%s1060_s6 + $0x90] sm:$0xff] %v668_v35  ;;  %v669_v44 = vmax.f32 %v637_v36, 0.0  ;;  %v558_v45 = vsel %vm505_vm0, %v556_v32, %v557_v38  ;;  %v932_v46 = vunpack.c.h.bf16 %v961_v30  ;;  %v892_v47 = vunpack.c.h.bf16 %v951_v29 }
  0x42   : > { %v638_v49 = vadd.f32 %v558_v45, %v348_v37  ;;  %v349_v50 = vadd.f32 %v1041_v10, %v310_v39  ;;  %v560_v51 = vsel %vm505_vm0, %v557_v38, %v559_v40  ;;  %v311_v52 = vmul.f32 %v891_v41, %v1032_v1 }
  0x43   : > { %701 = vst [vmem:[%s1060_s6 + $0x98] sm:$0xff] %v669_v44  ;;  %v561_v54 = vrot.slane %v931_v42, 1  ;;  %v562_v55 = vrot.slane %v932_v46, 1  ;;  %v312_v56 = vmul.f32 %v892_v47, %v1032_v1  ;;  %v444_v57 = vunpack.c.l.bf16 %v828_v43  ;;  %v837_v42 = vld [vmem:[%s1026_s24 + $0xbc] sm:$0x1] }
  0x44   : > { %v670_v58 = vmax.f32 %v638_v49, 0.0  ;;  %v639_v59 = vadd.f32 %v560_v51, %v349_v50  ;;  %v350_v60 = vadd.f32 %v1041_v10, %v311_v52  ;;  %v895_v61 = vunpack.c.l.bf16 %v952_v48  ;;  %v955_v51 = vld [vmem:[%s1021_s21 + $0x78] sm:$0xff]   ;;  %v963_v52 = vld [vmem:[%s1026_s24 + $0xc0] sm:$0xff]  }
  0x45   : > { %v563_v63 = vsel %vm505_vm0, %v561_v54, %v562_v55  ;;  %v351_v0 = vadd.f32 %v1041_v10, %v312_v56  ;;  %v564_v2 = vrot.slane %v444_v57, 1  ;;  %v445_v3 = vunpack.c.l.bf16 %v829_v53 }
  0x46   : > { %702 = vst [vmem:[%s1060_s6 + $0xa0] sm:$0xff] %v670_v58  ;;  %v671_v4 = vmax.f32 %v639_v59, 0.0  ;;  %v640_v5 = vadd.f32 %v563_v63, %v350_v60  ;;  %v313_v6 = vmul.f32 %v895_v61, %v1032_v1  ;;  %v446_v7 = vunpack.c.h.bf16 %v829_v53 }
  0x47   : > { %v565_v11 = vsel %vm505_vm0, %v562_v55, %v564_v2  ;;  %v566_v12 = vrot.slane %v445_v3, 1  ;;  %v896_v13 = vunpack.c.h.bf16 %v952_v48  ;;  %v447_v14 = vunpack.c.l.bf16 %v831_v62  ;;  %v840_v2 = vld [vmem:[%s1026_s24 + $0xc8] sm:$0x1] }
  0x48   : > { %703 = vst [vmem:[%s1060_s6 + $0xa8] sm:$0xff] %v671_v4  ;;  %v672_v15 = vmax.f32 %v640_v5, 0.0  ;;  %v641_v16 = vadd.f32 %v565_v11, %v351_v0  ;;  %v352_v17 = vadd.f32 %v1041_v10, %v313_v6  ;;  %v567_v18 = vrot.slane %v446_v7, 1 }
  0x49   : > { %v314_v19 = vmul.f32 %v896_v13, %v1032_v1  ;;  %v569_v20 = vrot.slane %v447_v14, 1  ;;  %v899_v21 = vunpack.c.l.bf16 %v953_v8  ;;  %v935_v22 = vunpack.c.l.bf16 %v962_v9 }
  0x4a   : > { %704 = vst [vmem:[%s1060_s6 + $0xb0] sm:$0xff] %v672_v15  ;;  %v673_v24 = vmax.f32 %v641_v16, 0.0  ;;  %v568_v25 = vsel %vm505_vm0, %v566_v12, %v567_v18  ;;  %v936_v26 = vunpack.c.h.bf16 %v962_v9  ;;  %v900_v27 = vunpack.c.h.bf16 %v953_v8 }
  0x4b   : > { %v642_v29 = vadd.f32 %v568_v25, %v352_v17  ;;  %v353_v30 = vadd.f32 %v1041_v10, %v314_v19  ;;  %v570_v31 = vsel %vm505_vm0, %v567_v18, %v569_v20  ;;  %v315_v32 = vmul.f32 %v899_v21, %v1032_v1 }
  0x4c   : > { %705 = vst [vmem:[%s1060_s6 + $0xb8] sm:$0xff] %v673_v24  ;;  %v571_v34 = vrot.slane %v935_v22, 1  ;;  %v572_v35 = vrot.slane %v936_v26, 1  ;;  %v316_v36 = vmul.f32 %v900_v27, %v1032_v1  ;;  %v450_v37 = vunpack.c.l.bf16 %v834_v23 }
  0x4d   : > { %v674_v38 = vmax.f32 %v642_v29, 0.0  ;;  %v643_v39 = vadd.f32 %v570_v31, %v353_v30  ;;  %v354_v40 = vadd.f32 %v1041_v10, %v315_v32  ;;  %v903_v41 = vunpack.c.l.bf16 %v954_v28 }
  0x4e   : > { %v573_v43 = vsel %vm505_vm0, %v571_v34, %v572_v35  ;;  %v355_v44 = vadd.f32 %v1041_v10, %v316_v36  ;;  %v574_v45 = vrot.slane %v450_v37, 1  ;;  %v451_v46 = vunpack.c.l.bf16 %v835_v33 }
  0x4f   : > { %706 = vst [vmem:[%s1060_s6 + $0xc0] sm:$0xff] %v674_v38  ;;  %v675_v47 = vmax.f32 %v643_v39, 0.0  ;;  %v644_v48 = vadd.f32 %v573_v43, %v354_v40  ;;  %v317_v49 = vmul.f32 %v903_v41, %v1032_v1  ;;  %v452_v50 = vunpack.c.h.bf16 %v835_v33 }
  0x50   : > { %v575_v53 = vsel %vm505_vm0, %v572_v35, %v574_v45  ;;  %v576_v54 = vrot.slane %v451_v46, 1  ;;  %v904_v55 = vunpack.c.h.bf16 %v954_v28  ;;  %v453_v56 = vunpack.c.l.bf16 %v837_v42 }
  0x51   : > { %707 = vst [vmem:[%s1060_s6 + $0xc8] sm:$0xff] %v675_v47  ;;  %v676_v57 = vmax.f32 %v644_v48, 0.0  ;;  %v645_v58 = vadd.f32 %v575_v53, %v355_v44  ;;  %v356_v59 = vadd.f32 %v1041_v10, %v317_v49  ;;  %v577_v60 = vrot.slane %v452_v50, 1 }
  0x52   : > { %v318_v61 = vmul.f32 %v904_v55, %v1032_v1  ;;  %v579_v62 = vrot.slane %v453_v56, 1  ;;  %v907_v63 = vunpack.c.l.bf16 %v955_v51  ;;  %v939_v0 = vunpack.c.l.bf16 %v963_v52 }
  0x53   : > { %708 = vst [vmem:[%s1060_s6 + $0xd0] sm:$0xff] %v676_v57  ;;  %v677_v3 = vmax.f32 %v645_v58, 0.0  ;;  %v578_v4 = vsel %vm505_vm0, %v576_v54, %v577_v60  ;;  %v940_v5 = vunpack.c.h.bf16 %v963_v52  ;;  %v908_v6 = vunpack.c.h.bf16 %v955_v51 }
  0x54   : > { %v646_v7 = vadd.f32 %v578_v4, %v356_v59  ;;  %v357_v8 = vadd.f32 %v1041_v10, %v318_v61  ;;  %v580_v9 = vsel %vm505_vm0, %v577_v60, %v579_v62  ;;  %v319_v11 = vmul.f32 %v907_v63, %v1032_v1 }
  0x55   : > { %709 = vst [vmem:[%s1060_s6 + $0xd8] sm:$0xff] %v677_v3  ;;  %v581_v12 = vrot.slane %v939_v0, 1  ;;  %v582_v13 = vrot.slane %v940_v5, 1  ;;  %v320_v14 = vmul.f32 %v908_v6, %v1032_v1  ;;  %v456_v15 = vunpack.c.l.bf16 %v840_v2 }
  0x56   : > { %v678_v16 = vmax.f32 %v646_v7, 0.0  ;;  %v647_v17 = vadd.f32 %v580_v9, %v357_v8  ;;  %v358_v18 = vadd.f32 %v1041_v10, %v319_v11 }
  0x57   : > { %v583_v19 = vsel %vm505_vm0, %v581_v12, %v582_v13  ;;  %v359_v20 = vadd.f32 %v1041_v10, %v320_v14  ;;  %v584_v21 = vrot.slane %v456_v15, 1 }
  0x58   : > { %710 = vst [vmem:[%s1060_s6 + $0xe0] sm:$0xff] %v678_v16  ;;  %v679_v22 = vmax.f32 %v647_v17, 0.0  ;;  %v648_v23 = vadd.f32 %v583_v19, %v358_v18 }
  0x59   : > { %v585_v24 = vsel %vm505_vm0, %v582_v13, %v584_v21 }
  0x5a   : > { %711 = vst [vmem:[%s1060_s6 + $0xe8] sm:$0xff] %v679_v22  ;;  %v680_v25 = vmax.f32 %v648_v23, 0.0  ;;  %v649_v26 = vadd.f32 %v585_v24, %v359_v20 }
  0x5c   : > { %712 = vst [vmem:[%s1060_s6 + $0xf0] sm:$0xff] %v680_v25  ;;  %v681_v1 = vmax.f32 %v649_v26, 0.0 }
  0x5e   : > { %713 = vst [vmem:[%s1060_s6 + $0xf8] sm:$0xff] %v681_v1 }
  0x5f PF: > { %s14_s15 = sadd.s32 1, %s979_s15  }
  0x60   : > { %p11_p4 = scmp.ge.s32.totalorder %s14_s15, 4  }
  0x62   :  { %13 = sbr.rel (!%p11_p4) target bundleno = 1 (0x1), region = 70 }

// kernel: basic_block_forward.5
= control target key start
LH: loop header
LB: loop body
LE: loop exit
PB: predicated region body
PF: predicated region fallthrough
CT: control target
= control target key end

     0   :  { %s1267_s12 = smov 0   ;;  %s1658_s0 = inlined_call_operand.vmem [shape: bf16[2,16,16,128], index: 0, kind: input, shape index: {}]   ;;  %s1659_s1 = inlined_call_operand.vmem [shape: f32[1,128], index: 1, kind: input, shape index: {}]   ;;  %s1660_s2 = inlined_call_operand.vmem [shape: f32[1,128], index: 2, kind: input, shape index: {}]   ;;  %s1661_s3 = inlined_call_operand.vmem [shape: bf16[2,18,18,128], index: 3, kind: output, shape index: {}]  }
   0x1 LB: > { %s992_s13 = sadd.s32 4294967295, %s1244_s12   ;;  %p996_p0 = scmp.ge.s32.totalorder %s1244_s12, 1  ;;  %s1244_s12 = sphi %s1267_s12, %s13_s12  }
   0x2   : > { %p137_p1 = scmp.lt.s32.totalorder %s1244_s12, 3 }
   0x4   : > { %p138_p2 = pnand %p996_p0, %p137_p1 }
   0x5   : > { %p161_p3 = scmp.lt.s32.totalorder (!%p138_p2), %s992_s13, 1  ;;  %v1283_v0 = vld [vmem:[%s1659_s1] ss:$0 sm:$0xff] (!%p138_p2)  ;;  %v1246_v4 = vmov (!%p138_p2), 0   ;;  %vm820_vm0 = vcmask (!%p138_p2), 1043456   ;;  %vm827_vm4 = vcmask (!%p138_p2), 1040384  }
   0x6   : > { %141 = sbr.rel (%p138_p2) target bundleno = 124 (0x7c), region = 32  ;;  %vm821_vm1 = vsmask.f32 (!%p138_p2), 7938  ;;  %v1361_v10 = vld [vmem:[%s1660_s2] ss:$0 sm:$0xff] (!%p138_p2) }
   0x7   : > { %vm496_vm2 = vsmask.f32 (!%p138_p2), 256  ;;  %vm497_vm3 = vsmask.f32 (!%p138_p2), 4368  ;;  %vm1393_vm5 = vmand (!%p138_p2), %vm820_vm0, %vm821_vm1 }
   0x8   : > { %vm1399_vm6 = vmor (!%p138_p2), %vm496_vm2, %vm497_vm3 }
   0x9   : > { %vm1406_vm7 = vmand (!%p138_p2), %vm827_vm4, %vm496_vm2 }
   0xd   : > { %s1669_s13 = smov (!%p161_p3, %s992_s13), 1 }
   0xe   : > { %s1228_s14 = smul.u32 216, %s1669_s13  ;;  %s1116_s15 = sshll.u32 %s1669_s13, 7 }
   0xf   : > { %s1278_s18 = scalar_lea.vmem %s1658_s0, %s1116_s15 }
  0x10   : > { %s1288_s23 = scalar_lea.vmem %s1661_s3, %s1228_s14  ;;  %v1291_v1 = vld [vmem:[%s1278_s18] sm:$0xff]   ;;  %v1294_v2 = vld [vmem:[%s1278_s18 + $0x8] sm:$0xff]   ;;  %v1297_v3 = vld [vmem:[%s1278_s18 + $0x10] sm:$0xff]  }
  0x11   : > { %175 = vst [vmem:[%s1288_s23 + $0xc] sm:$0xf] %v1246_v4  ;;  %172 = vst [vmem:[%s1288_s23] sm:$0xf] %v1246_v4  ;;  %v1151_v5 = vunpack.c.l.bf16 %v1291_v1  ;;  %v1152_v6 = vunpack.c.h.bf16 %v1291_v1  ;;  %v1155_v7 = vunpack.c.l.bf16 %v1294_v2  ;;  %v1156_v8 = vunpack.c.h.bf16 %v1294_v2  ;;  %v1215_v9 = vld [vmem:[%s1278_s18 + $0x18] sm:$0xff]   ;;  %v1378_v27 = vld [vmem:[%s1278_s18 + $0x20] sm:$0xff]  }
  0x12   : > { %173 = vst [vmem:[%s1288_s23 + $0x4] sm:$0xf] %v1246_v4  ;;  %174 = vst [vmem:[%s1288_s23 + $0x8] sm:$0x1] %v1246_v4  ;;  %v1159_v11 = vunpack.c.l.bf16 %v1297_v3  ;;  %v1160_v12 = vunpack.c.h.bf16 %v1297_v3  ;;  %v1163_v13 = vunpack.c.l.bf16 %v1215_v9  ;;  %v1164_v14 = vunpack.c.h.bf16 %v1215_v9  ;;  %v1381_v28 = vld [vmem:[%s1278_s18 + $0x28] sm:$0xff]  }
  0x13   : > { %176 = vst [vmem:[%s1288_s23 + $0x10] sm:$0xf] %v1246_v4  ;;  %177 = vst [vmem:[%s1288_s23 + $0x14] sm:$0x1] %v1246_v4  ;;  %v297_v15 = vmul.f32 %v1151_v5, %v1283_v0  ;;  %v298_v16 = vmul.f32 %v1152_v6, %v1283_v0  ;;  %v299_v17 = vmul.f32 %v1155_v7, %v1283_v0  ;;  %v1167_v37 = vunpack.c.l.bf16 %v1378_v27 }
  0x14   : > { %178 = vst [vmem:[%s1288_s23 + $0x18] sm:$0xf] %v1246_v4  ;;  %179 = vst [vmem:[%s1288_s23 + $0x1c] sm:$0xf] %v1246_v4  ;;  %v300_v18 = vmul.f32 %v1156_v8, %v1283_v0  ;;  %v301_v19 = vmul.f32 %v1159_v11, %v1283_v0  ;;  %v302_v20 = vmul.f32 %v1160_v12, %v1283_v0  ;;  %v1168_v38 = vunpack.c.h.bf16 %v1378_v27 }
  0x15   : > { %180 = vst [vmem:[%s1288_s23 + $0x20] sm:$0x1] %v1246_v4  ;;  %181 = vst [vmem:[%s1288_s23 + $0x24] sm:$0xf] %v1246_v4  ;;  %v303_v21 = vmul.f32 %v1163_v13, %v1283_v0  ;;  %v304_v22 = vmul.f32 %v1164_v14, %v1283_v0  ;;  %v336_v23 = vadd.f32 %v1361_v10, %v297_v15  ;;  %v1171_v39 = vunpack.c.l.bf16 %v1381_v28 }
  0x16   : > { %182 = vst [vmem:[%s1288_s23 + $0x28] sm:$0xf] %v1246_v4  ;;  %183 = vst [vmem:[%s1288_s23 + $0x2c] sm:$0x1] %v1246_v4  ;;  %v337_v24 = vadd.f32 %v1361_v10, %v298_v16  ;;  %v338_v25 = vadd.f32 %v1361_v10, %v299_v17  ;;  %v339_v26 = vadd.f32 %v1361_v10, %v300_v18  ;;  %v1172_v40 = vunpack.c.h.bf16 %v1381_v28 }
  0x17   : > { %184 = vst [vmem:[%s1288_s23 + $0x30] sm:$0xf] %v1246_v4  ;;  %185 = vst [vmem:[%s1288_s23 + $0x34] sm:$0xf] %v1246_v4  ;;  %v340_v29 = vadd.f32 %v1361_v10, %v301_v19  ;;  %v341_v30 = vadd.f32 %v1361_v10, %v302_v20  ;;  %v342_v31 = vadd.f32 %v1361_v10, %v303_v21  ;;  %v368_v33 = vmax.f32 %v336_v23, 0.0 }
  0x18   : > { %186 = vst [vmem:[%s1288_s23 + $0x38] sm:$0x1] %v1246_v4  ;;  %187 = vst [vmem:[%s1288_s23 + $0x3c] sm:$0xf] %v1246_v4  ;;  %v343_v32 = vadd.f32 %v1361_v10, %v304_v22  ;;  %v369_v34 = vmax.f32 %v337_v24, 0.0  ;;  %v370_v35 = vmax.f32 %v338_v25, 0.0 }
  0x19   : > { %188 = vst [vmem:[%s1288_s23 + $0x40] sm:$0xf] %v1246_v4  ;;  %189 = vst [vmem:[%s1288_s23 + $0x44] sm:$0x1] %v1246_v4  ;;  %v371_v36 = vmax.f32 %v339_v26, 0.0  ;;  %v1117_v41 = vpack.c.bf16 %v368_v33, %v368_v33  ;;  %v372_v45 = vmax.f32 %v340_v29, 0.0 }
  0x1a   : > { %190 = vst [vmem:[%s1288_s23 + $0x48] sm:$0xf] %v1246_v4  ;;  %191 = vst [vmem:[%s1288_s23 + $0x4c] sm:$0xf] %v1246_v4  ;;  %v1118_v42 = vpack.c.bf16 %v369_v34, %v369_v34  ;;  %v1119_v43 = vpack.c.bf16 %v370_v35, %v370_v35  ;;  %v373_v46 = vmax.f32 %v341_v30, 0.0  ;;  %v374_v47 = vmax.f32 %v342_v31, 0.0 }
  0x1b   : > { %192 = vst [vmem:[%s1288_s23 + $0x50] sm:$0x1] %v1246_v4  ;;  %193 = vst [vmem:[%s1288_s23 + $0x54] sm:$0xf] %v1246_v4  ;;  %v1120_v44 = vpack.c.bf16 %v371_v36, %v371_v36  ;;  %v375_v48 = vmax.f32 %v343_v32, 0.0  ;;  %v500_v49 = vshrl.u32 %v1117_v41, 16  ;;  %v1121_v61 = vpack.c.bf16 %v372_v45, %v372_v45 }
  0x1c   : > { %194 = vst [vmem:[%s1288_s23 + $0x58] sm:$0xf] %v1246_v4  ;;  %195 = vst [vmem:[%s1288_s23 + $0x5c] sm:$0x1] %v1246_v4  ;;  %v503_v50 = vshll.u32 %v1117_v41, 16  ;;  %v508_v51 = vshrl.u32 %v1118_v42, 16  ;;  %v1122_v62 = vpack.c.bf16 %v373_v46, %v373_v46  ;;  %v1123_v5 = vpack.c.bf16 %v374_v47, %v374_v47 }
  0x1d   : > { %196 = vst [vmem:[%s1288_s23 + $0x60] sm:$0xf] %v1246_v4  ;;  %197 = vst [vmem:[%s1288_s23 + $0x64] sm:$0xf] %v1246_v4  ;;  %v511_v52 = vshll.u32 %v1118_v42, 16  ;;  %v517_v54 = vshrl.u32 %v1119_v43, 16  ;;  %v1124_v6 = vpack.c.bf16 %v375_v48, %v375_v48  ;;  %v305_v36 = vmul.f32 %v1167_v37, %v1283_v0 }
  0x1e   : > { %198 = vst [vmem:[%s1288_s23 + $0x68] sm:$0x1] %v1246_v4  ;;  %199 = vst [vmem:[%s1288_s23 + $0x6c] sm:$0xf] %v1246_v4  ;;  %v520_v55 = vshll.u32 %v1119_v43, 16  ;;  %v525_v56 = vshrl.u32 %v1120_v44, 16 }
  0x1f   : > { %200 = vst [vmem:[%s1288_s23 + $0x70] sm:$0xf] %v1246_v4  ;;  %201 = vst [vmem:[%s1288_s23 + $0x74] sm:$0x1] %v1246_v4  ;;  %v528_v57 = vshll.u32 %v1120_v44, 16  ;;  %v502_v58 = vrot.slane %v500_v49, 7  ;;  %v344_v48 = vadd.f32 %v1361_v10, %v305_v36  ;;  %v306_v49 = vmul.f32 %v1168_v38, %v1283_v0 }
  0x20   : > { %202 = vst [vmem:[%s1288_s23 + $0x78] sm:$0xf] %v1246_v4  ;;  %203 = vst [vmem:[%s1288_s23 + $0x7c] sm:$0xf] %v1246_v4  ;;  %v510_v60 = vrot.slane %v508_v51, 7  ;;  %v519_v3 = vrot.slane %v517_v54, 7 }
  0x21   : > { %204 = vst [vmem:[%s1288_s23 + $0x80] sm:$0x1] %v1246_v4  ;;  %205 = vst [vmem:[%s1288_s23 + $0x84] sm:$0xf] %v1246_v4  ;;  %v1034_v63 = vld [vmem:[%s1288_s23 + $0xc] sm:$0xf]  ;;  %v505_v7 = vor.u32 %v503_v50, %v502_v58  ;;  %v307_v50 = vmul.f32 %v1171_v39, %v1283_v0 }
  0x22   : > { %206 = vst [vmem:[%s1288_s23 + $0x88] sm:$0xf] %v1246_v4  ;;  %207 = vst [vmem:[%s1288_s23 + $0x8c] sm:$0x1] %v1246_v4  ;;  %v1037_v2 = vld [vmem:[%s1288_s23 + $0x14] sm:$0x1]  ;;  %v513_v9 = vor.u32 %v511_v52, %v510_v60  ;;  %v522_v14 = vor.u32 %v520_v55, %v519_v3 }
  0x23   : > { %208 = vst [vmem:[%s1288_s23 + $0x90] sm:$0xf] %v1246_v4  ;;  %209 = vst [vmem:[%s1288_s23 + $0x94] sm:$0xf] %v1246_v4  ;;  %v506_v8 = vrot.slane %v502_v58, 4  ;;  %v515_v11 = vrot.slane %v510_v60, 4  ;;  %v824_v18 = vsel %vm1393_vm5, %v505_v7, %v1034_v63  ;;  %v308_v7 = vmul.f32 %v1172_v40, %v1283_v0 }
  0x24   : > { %210 = vst [vmem:[%s1288_s23 + $0x98] sm:$0x1] %v1246_v4  ;;  %211 = vst [vmem:[%s1288_s23 + $0x9c] sm:$0xf] %v1246_v4  ;;  %v1039_v12 = vld [vmem:[%s1288_s23 + $0x18] sm:$0xf] }
  0x25   : > { %212 = vst [vmem:[%s1288_s23 + $0xa0] sm:$0xf] %v1246_v4  ;;  %213 = vst [vmem:[%s1288_s23 + $0xa4] sm:$0x1] %v1246_v4  ;;  %v1042_v13 = vld [vmem:[%s1288_s23 + $0x20] sm:$0x1]  ;;  %v514_v19 = vsel %vm1399_vm6, %v506_v8, %v513_v9  ;;  %v830_v20 = vsel %vm1406_vm7, %v515_v11, %v1037_v2  ;;  %v833_v22 = vsel %vm1393_vm5, %v522_v14, %v1039_v12 }
  0x26   : > { %214 = vst [vmem:[%s1288_s23 + $0xa8] sm:$0xf] %v1246_v4  ;;  %215 = vst [vmem:[%s1288_s23 + $0xac] sm:$0xf] %v1246_v4  ;;  %v523_v15 = vrot.slane %v519_v3, 4  ;;  %v534_v21 = vshrl.u32 %v1121_v61, 16 }
  0x27   : > { %216 = vst [vmem:[%s1288_s23 + $0xb0] sm:$0x1] %v1246_v4  ;;  %217 = vst [vmem:[%s1288_s23 + $0xb4] sm:$0xf] %v1246_v4  ;;  %v537_v25 = vshll.u32 %v1121_v61, 16  ;;  %v542_v29 = vshrl.u32 %v1122_v62, 16 }
  0x28   : > { %218 = vst [vmem:[%s1288_s23 + $0xb8] sm:$0xf] %v1246_v4  ;;  %219 = vst [vmem:[%s1288_s23 + $0xbc] sm:$0x1] %v1246_v4  ;;  %v536_v26 = vrot.slane %v534_v21, 7  ;;  %v545_v30 = vshll.u32 %v1122_v62, 16  ;;  %v345_v62 = vadd.f32 %v1361_v10, %v306_v49 }
  0x29   : > { %220 = vst [vmem:[%s1288_s23 + $0xc0] sm:$0xf] %v1246_v4  ;;  %221 = vst [vmem:[%s1288_s23 + $0xc4] sm:$0xf] %v1246_v4  ;;  %v551_v31 = vshrl.u32 %v1123_v5, 16  ;;  %v554_v33 = vshll.u32 %v1123_v5, 16  ;;  %v346_v5 = vadd.f32 %v1361_v10, %v307_v50 }
  0x2a   : > { %222 = vst [vmem:[%s1288_s23 + $0xc8] sm:$0x1] %v1246_v4  ;;  %223 = vst [vmem:[%s1288_s23 + $0xcc] sm:$0xf] %v1246_v4  ;;  %v1044_v32 = vld [vmem:[%s1288_s23 + $0x24] sm:$0xf]  ;;  %v539_v41 = vor.u32 %v537_v25, %v536_v26 }
  0x2b   : > { %224 = vst [vmem:[%s1288_s23 + $0xd0] sm:$0xf] %v1246_v4  ;;  %225 = vst [vmem:[%s1288_s23 + $0xd4] sm:$0x1] %v1246_v4  ;;  %v527_v4 = vrot.slane %v525_v56, 7  ;;  %v559_v34 = vshrl.u32 %v1124_v6, 16 }
  0x2c   : > { %1035 = vst [vmem:[%s1288_s23 + $0xc] sm:$0xf] %v824_v18  ;;  %1036 = vst [vmem:[%s1288_s23 + $0x10] sm:$0xf] %v514_v19  ;;  %v562_v35 = vshll.u32 %v1124_v6, 16  ;;  %v540_v42 = vrot.slane %v536_v26, 4  ;;  %v840_v37 = vsel %vm1393_vm5, %v539_v41, %v1044_v32 }
  0x2d   : > { %v530_v16 = vor.u32 %v528_v57, %v527_v4  ;;  %v532_v17 = vrot.slane %v527_v4, 4  ;;  %1038 = vst [vmem:[%s1288_s23 + $0x14] sm:$0x1] %v830_v20  ;;  %1040 = vst [vmem:[%s1288_s23 + $0x18] sm:$0xf] %v833_v22  ;;  %v544_v43 = vrot.slane %v542_v29, 7 }
  0x2e   : > { %v553_v44 = vrot.slane %v551_v31, 7  ;;  %v1047_v45 = vld [vmem:[%s1288_s23 + $0x2c] sm:$0x1]  ;;  %v1049_v46 = vld [vmem:[%s1288_s23 + $0x30] sm:$0xf]  ;;  %v561_v47 = vrot.slane %v559_v34, 7 }
  0x2f   : > { %v531_v23 = vsel %vm1399_vm6, %v523_v15, %v530_v16  ;;  %v837_v24 = vsel %vm1406_vm7, %v532_v17, %v1042_v13  ;;  %v547_v51 = vor.u32 %v545_v30, %v544_v43  ;;  %v549_v52 = vrot.slane %v544_v43, 4  ;;  %v1052_v55 = vld [vmem:[%s1288_s23 + $0x38] sm:$0x1]  ;;  %1045 = vst [vmem:[%s1288_s23 + $0x24] sm:$0xf] %v840_v37  ;;  %v1218_v58 = vld [vmem:[%s1278_s18 + $0x30] sm:$0xff]  }
  0x30   : > { %1041 = vst [vmem:[%s1288_s23 + $0x1c] sm:$0xf] %v531_v23  ;;  %1043 = vst [vmem:[%s1288_s23 + $0x20] sm:$0x1] %v837_v24  ;;  %v556_v54 = vor.u32 %v554_v33, %v553_v44  ;;  %v557_v56 = vrot.slane %v553_v44, 4  ;;  %v564_v57 = vor.u32 %v562_v35, %v561_v47  ;;  %v566_v27 = vrot.slane %v561_v47, 4 }
  0x31   : > { %v376_v38 = vmax.f32 %v344_v48, 0.0  ;;  %v548_v39 = vsel %vm1399_vm6, %v540_v42, %v547_v51  ;;  %v844_v60 = vsel %vm1406_vm7, %v549_v52, %v1047_v45  ;;  %v1219_v63 = vld [vmem:[%s1278_s18 + $0x38] sm:$0xff]   ;;  %v377_v6 = vmax.f32 %v345_v62, 0.0  ;;  %v1057_v41 = vld [vmem:[%s1288_s23 + $0x44] sm:$0x1] }
  0x32   : > { %v847_v61 = vsel %vm1393_vm5, %v556_v54, %v1049_v46  ;;  %1046 = vst [vmem:[%s1288_s23 + $0x28] sm:$0xf] %v548_v39  ;;  %1048 = vst [vmem:[%s1288_s23 + $0x2c] sm:$0x1] %v844_v60  ;;  %v565_v2 = vsel %vm1399_vm6, %v557_v56, %v564_v57  ;;  %v851_v3 = vsel %vm1406_vm7, %v566_v27, %v1052_v55  ;;  %v1175_v8 = vunpack.c.l.bf16 %v1218_v58  ;;  %v1054_v40 = vld [vmem:[%s1288_s23 + $0x3c] sm:$0xf] }
  0x33   : > { %1050 = vst [vmem:[%s1288_s23 + $0x30] sm:$0xf] %v847_v61  ;;  %v1125_v4 = vpack.c.bf16 %v376_v38, %v376_v38  ;;  %1051 = vst [vmem:[%s1288_s23 + $0x34] sm:$0xf] %v565_v2  ;;  %v1176_v9 = vunpack.c.h.bf16 %v1218_v58  ;;  %v378_v13 = vmax.f32 %v346_v5, 0.0  ;;  %v1179_v14 = vunpack.c.l.bf16 %v1219_v63  ;;  %v1220_v27 = vld [vmem:[%s1278_s18 + $0x40] sm:$0xff]  }
  0x34   : > { %1053 = vst [vmem:[%s1288_s23 + $0x38] sm:$0x1] %v851_v3  ;;  %v1126_v15 = vpack.c.bf16 %v377_v6, %v377_v6  ;;  %v347_v16 = vadd.f32 %v1361_v10, %v308_v7  ;;  %v309_v17 = vmul.f32 %v1175_v8, %v1283_v0  ;;  %v1180_v28 = vunpack.c.h.bf16 %v1219_v63  ;;  %v1059_v47 = vld [vmem:[%s1288_s23 + $0x48] sm:$0xf]  ;;  %v1062_v58 = vld [vmem:[%s1288_s23 + $0x50] sm:$0x1] }
  0x35   : > { %v568_v11 = vshrl.u32 %v1125_v4, 16  ;;  %v571_v12 = vshll.u32 %v1125_v4, 16  ;;  %v310_v18 = vmul.f32 %v1176_v9, %v1283_v0  ;;  %v1127_v20 = vpack.c.bf16 %v378_v13, %v378_v13  ;;  %v1221_v8 = vld [vmem:[%s1278_s18 + $0x48] sm:$0xff]  }
  0x36   : > { %v311_v21 = vmul.f32 %v1179_v14, %v1283_v0  ;;  %v576_v22 = vshrl.u32 %v1126_v15, 16  ;;  %v579_v23 = vshll.u32 %v1126_v15, 16  ;;  %v379_v24 = vmax.f32 %v347_v16, 0.0 }
  0x37   : > { %v570_v19 = vrot.slane %v568_v11, 7  ;;  %v348_v25 = vadd.f32 %v1361_v10, %v309_v17  ;;  %v585_v30 = vshrl.u32 %v1127_v20, 16  ;;  %v588_v31 = vshll.u32 %v1127_v20, 16 }
  0x38   : > { %v578_v32 = vrot.slane %v576_v22, 7  ;;  %v1128_v33 = vpack.c.bf16 %v379_v24, %v379_v24  ;;  %v349_v35 = vadd.f32 %v1361_v10, %v310_v18  ;;  %v350_v43 = vadd.f32 %v1361_v10, %v311_v21 }
  0x39   : > { %v573_v26 = vor.u32 %v571_v12, %v570_v19  ;;  %v574_v29 = vrot.slane %v570_v19, 4  ;;  %v380_v34 = vmax.f32 %v348_v25, 0.0  ;;  %v587_v42 = vrot.slane %v585_v30, 7  ;;  %v1064_v12 = vld [vmem:[%s1288_s23 + $0x54] sm:$0xf] }
  0x3a   : > { %v312_v44 = vmul.f32 %v1180_v28, %v1283_v0  ;;  %v581_v45 = vor.u32 %v579_v23, %v578_v32  ;;  %v583_v46 = vrot.slane %v578_v32, 4  ;;  %v593_v48 = vshrl.u32 %v1128_v33, 16  ;;  %v1067_v19 = vld [vmem:[%s1288_s23 + $0x5c] sm:$0x1]  ;;  %v1069_v25 = vld [vmem:[%s1288_s23 + $0x60] sm:$0xf] }
  0x3b   : > { %v854_v36 = vsel %vm1393_vm5, %v573_v26, %v1054_v40  ;;  %v596_v49 = vshll.u32 %v1128_v33, 16  ;;  %v590_v50 = vor.u32 %v588_v31, %v587_v42  ;;  %v591_v37 = vrot.slane %v587_v42, 4  ;;  %v1222_v33 = vld [vmem:[%s1278_s18 + $0x50] sm:$0xff]   ;;  %v1518_v42 = vld [vmem:[%s1278_s18 + $0x58] sm:$0xff]  }
  0x3c   : > { %1055 = vst [vmem:[%s1288_s23 + $0x3c] sm:$0xf] %v854_v36  ;;  %v1129_v51 = vpack.c.bf16 %v380_v34, %v380_v34  ;;  %v381_v52 = vmax.f32 %v349_v35, 0.0  ;;  %v582_v54 = vsel %vm1399_vm6, %v574_v29, %v581_v45  ;;  %v858_v55 = vsel %vm1406_vm7, %v583_v46, %v1057_v41 }
  0x3d   : > { %v595_v56 = vrot.slane %v593_v48, 7  ;;  %v382_v57 = vmax.f32 %v350_v43, 0.0  ;;  %1056 = vst [vmem:[%s1288_s23 + $0x40] sm:$0xf] %v582_v54  ;;  %1058 = vst [vmem:[%s1288_s23 + $0x44] sm:$0x1] %v858_v55  ;;  %v861_v38 = vsel %vm1393_vm5, %v590_v50, %v1059_v47  ;;  %v351_v3 = vadd.f32 %v1361_v10, %v312_v44 }
  0x3e   : > { %v602_v39 = vshrl.u32 %v1129_v51, 16  ;;  %v605_v60 = vshll.u32 %v1129_v51, 16  ;;  %v1130_v61 = vpack.c.bf16 %v381_v52, %v381_v52  ;;  %1060 = vst [vmem:[%s1288_s23 + $0x48] sm:$0xf] %v861_v38  ;;  %v1183_v7 = vunpack.c.l.bf16 %v1220_v27 }
  0x3f   : > { %v598_v62 = vor.u32 %v596_v49, %v595_v56  ;;  %v600_v63 = vrot.slane %v595_v56, 4  ;;  %v1131_v2 = vpack.c.bf16 %v382_v57, %v382_v57  ;;  %v383_v18 = vmax.f32 %v351_v3, 0.0 }
  0x40   : > { %v604_v4 = vrot.slane %v602_v39, 7  ;;  %v610_v5 = vshrl.u32 %v1130_v61, 16  ;;  %v613_v6 = vshll.u32 %v1130_v61, 16  ;;  %v313_v21 = vmul.f32 %v1183_v7, %v1283_v0 }
  0x41   : > { %v599_v9 = vsel %vm1399_vm6, %v591_v37, %v598_v62  ;;  %v865_v11 = vsel %vm1406_vm7, %v600_v63, %v1062_v58  ;;  %v619_v13 = vshrl.u32 %v1131_v2, 16  ;;  %v622_v14 = vshll.u32 %v1131_v2, 16  ;;  %v1072_v37 = vld [vmem:[%s1288_s23 + $0x68] sm:$0x1] }
  0x42   : > { %1061 = vst [vmem:[%s1288_s23 + $0x4c] sm:$0xf] %v599_v9  ;;  %1063 = vst [vmem:[%s1288_s23 + $0x50] sm:$0x1] %v865_v11  ;;  %v607_v15 = vor.u32 %v605_v60, %v604_v4  ;;  %v608_v16 = vrot.slane %v604_v4, 4  ;;  %v612_v17 = vrot.slane %v610_v5, 7  ;;  %v1184_v28 = vunpack.c.h.bf16 %v1220_v27 }
  0x43   : > { %v621_v20 = vrot.slane %v619_v13, 7  ;;  %v1187_v40 = vunpack.c.l.bf16 %v1221_v8  ;;  %v1132_v26 = vpack.c.bf16 %v383_v18, %v383_v18  ;;  %v352_v31 = vadd.f32 %v1361_v10, %v313_v21  ;;  %v1077_v18 = vld [vmem:[%s1288_s23 + $0x74] sm:$0x1] }
  0x44   : > { %v868_v22 = vsel %vm1393_vm5, %v607_v15, %v1064_v12  ;;  %v615_v23 = vor.u32 %v613_v6, %v612_v17  ;;  %v617_v24 = vrot.slane %v612_v17, 4  ;;  %v314_v32 = vmul.f32 %v1184_v28, %v1283_v0 }
  0x45   : > { %1065 = vst [vmem:[%s1288_s23 + $0x54] sm:$0xf] %v868_v22  ;;  %v624_v29 = vor.u32 %v622_v14, %v621_v20  ;;  %v625_v30 = vrot.slane %v621_v20, 4  ;;  %v627_v36 = vshrl.u32 %v1132_v26, 16  ;;  %v630_v41 = vshll.u32 %v1132_v26, 16 }
  0x46   : > { %v616_v34 = vsel %vm1399_vm6, %v608_v16, %v615_v23  ;;  %v872_v35 = vsel %vm1406_vm7, %v617_v24, %v1067_v19  ;;  %v384_v44 = vmax.f32 %v352_v31, 0.0  ;;  %v353_v45 = vadd.f32 %v1361_v10, %v314_v32  ;;  %v1079_v26 = vld [vmem:[%s1288_s23 + $0x78] sm:$0xf] }
  0x47   : > { %1066 = vst [vmem:[%s1288_s23 + $0x58] sm:$0xf] %v616_v34  ;;  %1068 = vst [vmem:[%s1288_s23 + $0x5c] sm:$0x1] %v872_v35  ;;  %v875_v43 = vsel %vm1393_vm5, %v624_v29, %v1069_v25  ;;  %v315_v46 = vmul.f32 %v1187_v40, %v1283_v0  ;;  %v629_v47 = vrot.slane %v627_v36, 7  ;;  %v1188_v48 = vunpack.c.h.bf16 %v1221_v8  ;;  %v1224_v25 = vld [vmem:[%s1278_s18 + $0x60] sm:$0xff]  }
  0x48   : > { %1070 = vst [vmem:[%s1288_s23 + $0x60] sm:$0xf] %v875_v43  ;;  %v1191_v49 = vunpack.c.l.bf16 %v1222_v33  ;;  %v1192_v50 = vunpack.c.h.bf16 %v1222_v33  ;;  %v1133_v51 = vpack.c.bf16 %v384_v44, %v384_v44  ;;  %v385_v52 = vmax.f32 %v353_v45, 0.0  ;;  %v1074_v8 = vld [vmem:[%s1288_s23 + $0x6c] sm:$0xf] }
  0x49   : > { %v354_v54 = vadd.f32 %v1361_v10, %v315_v46  ;;  %v1195_v55 = vunpack.c.l.bf16 %v1518_v42  ;;  %v632_v56 = vor.u32 %v630_v41, %v629_v47  ;;  %v634_v57 = vrot.slane %v629_v47, 4  ;;  %v1082_v47 = vld [vmem:[%s1288_s23 + $0x80] sm:$0x1] }
  0x4a   : > { %v316_v27 = vmul.f32 %v1188_v48, %v1283_v0  ;;  %v317_v38 = vmul.f32 %v1191_v49, %v1283_v0  ;;  %v636_v58 = vshrl.u32 %v1133_v51, 16  ;;  %v639_v39 = vshll.u32 %v1133_v51, 16  ;;  %v1084_v48 = vld [vmem:[%s1288_s23 + $0x84] sm:$0xf] }
  0x4b   : > { %v1134_v60 = vpack.c.bf16 %v385_v52, %v385_v52  ;;  %v386_v61 = vmax.f32 %v354_v54, 0.0  ;;  %v633_v62 = vsel %vm1399_vm6, %v625_v30, %v632_v56  ;;  %v879_v63 = vsel %vm1406_vm7, %v634_v57, %v1072_v37 }
  0x4c   : > { %v355_v2 = vadd.f32 %v1361_v10, %v316_v27  ;;  %v356_v3 = vadd.f32 %v1361_v10, %v317_v38  ;;  %1071 = vst [vmem:[%s1288_s23 + $0x64] sm:$0xf] %v633_v62  ;;  %1073 = vst [vmem:[%s1288_s23 + $0x68] sm:$0x1] %v879_v63  ;;  %v638_v4 = vrot.slane %v636_v58, 7  ;;  %v318_v12 = vmul.f32 %v1192_v50, %v1283_v0  ;;  %v1225_v58 = vld [vmem:[%s1278_s18 + $0x68] sm:$0xff]  }
  0x4d   : > { %v644_v5 = vshrl.u32 %v1134_v60, 16  ;;  %v647_v6 = vshll.u32 %v1134_v60, 16  ;;  %v1135_v7 = vpack.c.bf16 %v386_v61, %v386_v61  ;;  %v319_v13 = vmul.f32 %v1195_v55, %v1283_v0 }
  0x4e   : > { %v387_v9 = vmax.f32 %v355_v2, 0.0  ;;  %v388_v11 = vmax.f32 %v356_v3, 0.0  ;;  %v641_v14 = vor.u32 %v639_v39, %v638_v4  ;;  %v642_v15 = vrot.slane %v638_v4, 4 }
  0x4f   : > { %v646_v16 = vrot.slane %v644_v5, 7  ;;  %v653_v17 = vshrl.u32 %v1135_v7, 16  ;;  %v656_v19 = vshll.u32 %v1135_v7, 16  ;;  %v357_v28 = vadd.f32 %v1361_v10, %v318_v12 }
  0x50   : > { %v1136_v20 = vpack.c.bf16 %v387_v9, %v387_v9  ;;  %v1137_v21 = vpack.c.bf16 %v388_v11, %v388_v11  ;;  %v882_v40 = vsel %vm1393_vm5, %v641_v14, %v1074_v8  ;;  %v358_v45 = vadd.f32 %v1361_v10, %v319_v13  ;;  %v1087_v8 = vld [vmem:[%s1288_s23 + $0x8c] sm:$0x1] }
  0x51   : > { %v649_v22 = vor.u32 %v647_v6, %v646_v16  ;;  %v651_v23 = vrot.slane %v646_v16, 4  ;;  %v655_v24 = vrot.slane %v653_v17, 7  ;;  %1075 = vst [vmem:[%s1288_s23 + $0x6c] sm:$0xf] %v882_v40  ;;  %v389_v44 = vmax.f32 %v357_v28, 0.0 }
  0x52   : > { %v661_v29 = vshrl.u32 %v1136_v20, 16  ;;  %v664_v30 = vshll.u32 %v1136_v20, 16  ;;  %v670_v31 = vshrl.u32 %v1137_v21, 16  ;;  %v673_v32 = vshll.u32 %v1137_v21, 16 }
  0x53   : > { %v650_v33 = vsel %vm1399_vm6, %v642_v15, %v649_v22  ;;  %v886_v34 = vsel %vm1406_vm7, %v651_v23, %v1077_v18  ;;  %v658_v35 = vor.u32 %v656_v19, %v655_v24  ;;  %v659_v36 = vrot.slane %v655_v24, 4  ;;  %v1089_v22 = vld [vmem:[%s1288_s23 + $0x90] sm:$0xf] }
  0x54   : > { %1076 = vst [vmem:[%s1288_s23 + $0x70] sm:$0xf] %v650_v33  ;;  %1078 = vst [vmem:[%s1288_s23 + $0x74] sm:$0x1] %v886_v34  ;;  %v663_v41 = vrot.slane %v661_v29, 7  ;;  %v672_v43 = vrot.slane %v670_v31, 7  ;;  %v1196_v49 = vunpack.c.h.bf16 %v1518_v42  ;;  %v1199_v50 = vunpack.c.l.bf16 %v1224_v25 }
  0x55   : > { %v889_v46 = vsel %vm1393_vm5, %v658_v35, %v1079_v26  ;;  %v1200_v37 = vunpack.c.h.bf16 %v1224_v25  ;;  %v1138_v55 = vpack.c.bf16 %v389_v44, %v389_v44  ;;  %v390_v57 = vmax.f32 %v358_v45, 0.0  ;;  %v1226_v25 = vld [vmem:[%s1278_s18 + $0x70] sm:$0xff]   ;;  %v1092_v45 = vld [vmem:[%s1288_s23 + $0x98] sm:$0x1] }
  0x56   : > { %1080 = vst [vmem:[%s1288_s23 + $0x78] sm:$0xf] %v889_v46  ;;  %v666_v51 = vor.u32 %v664_v30, %v663_v41  ;;  %v668_v52 = vrot.slane %v663_v41, 4  ;;  %v675_v54 = vor.u32 %v673_v32, %v672_v43  ;;  %v676_v56 = vrot.slane %v672_v43, 4 }
  0x57   : > { %v320_v27 = vmul.f32 %v1196_v49, %v1283_v0  ;;  %v321_v38 = vmul.f32 %v1199_v50, %v1283_v0  ;;  %v678_v61 = vshrl.u32 %v1138_v55, 16  ;;  %v681_v62 = vshll.u32 %v1138_v55, 16 }
  0x58   : > { %v667_v42 = vsel %vm1399_vm6, %v659_v36, %v666_v51  ;;  %v893_v39 = vsel %vm1406_vm7, %v668_v52, %v1082_v47  ;;  %v896_v60 = vsel %vm1393_vm5, %v675_v54, %v1084_v48  ;;  %v1139_v63 = vpack.c.bf16 %v390_v57, %v390_v57  ;;  %v1094_v51 = vld [vmem:[%s1288_s23 + $0x9c] sm:$0xf] }
  0x59   : > { %1081 = vst [vmem:[%s1288_s23 + $0x7c] sm:$0xf] %v667_v42  ;;  %1083 = vst [vmem:[%s1288_s23 + $0x80] sm:$0x1] %v893_v39  ;;  %v359_v2 = vadd.f32 %v1361_v10, %v320_v27  ;;  %v360_v3 = vadd.f32 %v1361_v10, %v321_v38  ;;  %v680_v4 = vrot.slane %v678_v61, 7  ;;  %v322_v5 = vmul.f32 %v1200_v37, %v1283_v0 }
  0x5a   : > { %1085 = vst [vmem:[%s1288_s23 + $0x84] sm:$0xf] %v896_v60  ;;  %v1203_v6 = vunpack.c.l.bf16 %v1225_v58  ;;  %v1204_v7 = vunpack.c.h.bf16 %v1225_v58  ;;  %v687_v9 = vshrl.u32 %v1139_v63, 16  ;;  %v690_v11 = vshll.u32 %v1139_v63, 16  ;;  %v1097_v42 = vld [vmem:[%s1288_s23 + $0xa4] sm:$0x1] }
  0x5b   : > { %v391_v12 = vmax.f32 %v359_v2, 0.0  ;;  %v392_v13 = vmax.f32 %v360_v3, 0.0  ;;  %v683_v14 = vor.u32 %v681_v62, %v680_v4  ;;  %v685_v15 = vrot.slane %v680_v4, 4  ;;  %v1227_v3 = vld [vmem:[%s1278_s18 + $0x78] sm:$0xff]   ;;  %v1099_v4 = vld [vmem:[%s1288_s23 + $0xa8] sm:$0xf] }
  0x5c   : > { %v361_v16 = vadd.f32 %v1361_v10, %v322_v5  ;;  %v323_v17 = vmul.f32 %v1203_v6, %v1283_v0  ;;  %v689_v18 = vrot.slane %v687_v9, 7  ;;  %v324_v21 = vmul.f32 %v1204_v7, %v1283_v0 }
  0x5d   : > { %v1140_v19 = vpack.c.bf16 %v391_v12, %v391_v12  ;;  %v1141_v20 = vpack.c.bf16 %v392_v13, %v392_v13  ;;  %v684_v28 = vsel %vm1399_vm6, %v676_v56, %v683_v14  ;;  %v900_v40 = vsel %vm1406_vm7, %v685_v15, %v1087_v8 }
  0x5e   : > { %v393_v23 = vmax.f32 %v361_v16, 0.0  ;;  %v362_v24 = vadd.f32 %v1361_v10, %v323_v17  ;;  %1086 = vst [vmem:[%s1288_s23 + $0x88] sm:$0xf] %v684_v28  ;;  %1088 = vst [vmem:[%s1288_s23 + $0x8c] sm:$0x1] %v900_v40  ;;  %v692_v26 = vor.u32 %v690_v11, %v689_v18  ;;  %v693_v29 = vrot.slane %v689_v18, 4 }
  0x5f   : > { %v695_v30 = vshrl.u32 %v1140_v19, 16  ;;  %v698_v31 = vshll.u32 %v1140_v19, 16  ;;  %v704_v32 = vshrl.u32 %v1141_v20, 16  ;;  %v707_v33 = vshll.u32 %v1141_v20, 16  ;;  %v1102_v19 = vld [vmem:[%s1288_s23 + $0xb0] sm:$0x1] }
  0x60   : > { %v1142_v34 = vpack.c.bf16 %v393_v23, %v393_v23  ;;  %v394_v35 = vmax.f32 %v362_v24, 0.0  ;;  %v903_v36 = vsel %vm1393_vm5, %v692_v26, %v1089_v22  ;;  %v363_v43 = vadd.f32 %v1361_v10, %v324_v21 }
  0x61   : > { %v697_v41 = vrot.slane %v695_v30, 7  ;;  %v1207_v44 = vunpack.c.l.bf16 %v1226_v25  ;;  %1090 = vst [vmem:[%s1288_s23 + $0x90] sm:$0xf] %v903_v36  ;;  %v706_v46 = vrot.slane %v704_v32, 7  ;;  %v1208_v8 = vunpack.c.h.bf16 %v1226_v25 }
  0x62   : > { %v712_v47 = vshrl.u32 %v1142_v34, 16  ;;  %v715_v48 = vshll.u32 %v1142_v34, 16  ;;  %v1143_v49 = vpack.c.bf16 %v394_v35, %v394_v35  ;;  %v395_v52 = vmax.f32 %v363_v43, 0.0  ;;  %v1104_v35 = vld [vmem:[%s1288_s23 + $0xb4] sm:$0xf] }
  0x63   : > { %v700_v50 = vor.u32 %v698_v31, %v697_v41  ;;  %v702_v37 = vrot.slane %v697_v41, 4  ;;  %v325_v54 = vmul.f32 %v1207_v44, %v1283_v0  ;;  %v709_v55 = vor.u32 %v707_v33, %v706_v46 }
  0x64   : > { %v710_v56 = vrot.slane %v706_v46, 4  ;;  %v714_v57 = vrot.slane %v712_v47, 7  ;;  %v721_v27 = vshrl.u32 %v1143_v49, 16  ;;  %v724_v39 = vshll.u32 %v1143_v49, 16 }
  0x65   : > { %v701_v38 = vsel %vm1399_vm6, %v693_v29, %v700_v50  ;;  %v907_v58 = vsel %vm1406_vm7, %v702_v37, %v1092_v45  ;;  %v1144_v60 = vpack.c.bf16 %v395_v52, %v395_v52  ;;  %v910_v61 = vsel %vm1393_vm5, %v709_v55, %v1094_v51  ;;  %v1107_v52 = vld [vmem:[%s1288_s23 + $0xbc] sm:$0x1] }
  0x66   : > { %1091 = vst [vmem:[%s1288_s23 + $0x94] sm:$0xf] %v701_v38  ;;  %1093 = vst [vmem:[%s1288_s23 + $0x98] sm:$0x1] %v907_v58  ;;  %v717_v62 = vor.u32 %v715_v48, %v714_v57  ;;  %v719_v63 = vrot.slane %v714_v57, 4  ;;  %v723_v2 = vrot.slane %v721_v27, 7  ;;  %v364_v7 = vadd.f32 %v1361_v10, %v325_v54 }
  0x67   : > { %1095 = vst [vmem:[%s1288_s23 + $0x9c] sm:$0xf] %v910_v61  ;;  %v729_v5 = vshrl.u32 %v1144_v60, 16  ;;  %v732_v6 = vshll.u32 %v1144_v60, 16  ;;  %v326_v16 = vmul.f32 %v1208_v8, %v1283_v0  ;;  %v1211_v17 = vunpack.c.l.bf16 %v1227_v3  ;;  %v1109_v38 = vld [vmem:[%s1288_s23 + $0xc0] sm:$0xf] }
  0x68   : > { %v718_v9 = vsel %vm1399_vm6, %v710_v56, %v717_v62  ;;  %v914_v11 = vsel %vm1406_vm7, %v719_v63, %v1097_v42  ;;  %v726_v12 = vor.u32 %v724_v39, %v723_v2  ;;  %v727_v13 = vrot.slane %v723_v2, 4  ;;  %v1112_v61 = vld [vmem:[%s1288_s23 + $0xc8] sm:$0x1] }
  0x69   : > { %1096 = vst [vmem:[%s1288_s23 + $0xa0] sm:$0xf] %v718_v9  ;;  %1098 = vst [vmem:[%s1288_s23 + $0xa4] sm:$0x1] %v914_v11  ;;  %v731_v14 = vrot.slane %v729_v5, 7  ;;  %v396_v15 = vmax.f32 %v364_v7, 0.0  ;;  %v1212_v20 = vunpack.c.h.bf16 %v1227_v3  ;;  %v365_v22 = vadd.f32 %v1361_v10, %v326_v16 }
  0x6a   : > { %v917_v18 = vsel %vm1393_vm5, %v726_v12, %v1099_v4  ;;  %v327_v23 = vmul.f32 %v1211_v17, %v1283_v0 }
  0x6b   : > { %1100 = vst [vmem:[%s1288_s23 + $0xa8] sm:$0xf] %v917_v18  ;;  %v734_v21 = vor.u32 %v732_v6, %v731_v14  ;;  %v736_v28 = vrot.slane %v731_v14, 4  ;;  %v1145_v40 = vpack.c.bf16 %v396_v15, %v396_v15  ;;  %v328_v24 = vmul.f32 %v1212_v20, %v1283_v0 }
  0x6c   : > { %v397_v31 = vmax.f32 %v365_v22, 0.0  ;;  %v366_v32 = vadd.f32 %v1361_v10, %v327_v23 }
  0x6d   : > { %v735_v25 = vsel %vm1399_vm6, %v727_v13, %v734_v21  ;;  %v921_v26 = vsel %vm1406_vm7, %v736_v28, %v1102_v19  ;;  %v738_v29 = vshrl.u32 %v1145_v40, 16  ;;  %v741_v30 = vshll.u32 %v1145_v40, 16 }
  0x6e   : > { %1101 = vst [vmem:[%s1288_s23 + $0xac] sm:$0xf] %v735_v25  ;;  %1103 = vst [vmem:[%s1288_s23 + $0xb0] sm:$0x1] %v921_v26  ;;  %v367_v33 = vadd.f32 %v1361_v10, %v328_v24  ;;  %v1146_v0 = vpack.c.bf16 %v397_v31, %v397_v31  ;;  %v398_v36 = vmax.f32 %v366_v32, 0.0 }
  0x6f   : > { %v740_v34 = vrot.slane %v738_v29, 7 }
  0x70   : > { %v399_v41 = vmax.f32 %v367_v33, 0.0  ;;  %v746_v44 = vshrl.u32 %v1146_v0, 16  ;;  %v749_v45 = vshll.u32 %v1146_v0, 16  ;;  %v1147_v46 = vpack.c.bf16 %v398_v36, %v398_v36 }
  0x71   : > { %v743_v43 = vor.u32 %v741_v30, %v740_v34  ;;  %v744_v49 = vrot.slane %v740_v34, 4 }
  0x72   : > { %v1148_v47 = vpack.c.bf16 %v399_v41, %v399_v41  ;;  %v748_v50 = vrot.slane %v746_v44, 7  ;;  %v755_v10 = vshrl.u32 %v1147_v46, 16  ;;  %v758_v37 = vshll.u32 %v1147_v46, 16 }
  0x73   : > { %v924_v48 = vsel %vm1393_vm5, %v743_v43, %v1104_v35 }
  0x74   : > { %1105 = vst [vmem:[%s1288_s23 + $0xb4] sm:$0xf] %v924_v48  ;;  %v763_v51 = vshrl.u32 %v1148_v47, 16  ;;  %v766_v54 = vshll.u32 %v1148_v47, 16  ;;  %v751_v55 = vor.u32 %v749_v45, %v748_v50  ;;  %v753_v56 = vrot.slane %v748_v50, 4 }
  0x75   : > { %v757_v57 = vrot.slane %v755_v10, 7 }
  0x76   : > { %v765_v27 = vrot.slane %v763_v51, 7  ;;  %v752_v58 = vsel %vm1399_vm6, %v744_v49, %v751_v55  ;;  %v928_v42 = vsel %vm1406_vm7, %v753_v56, %v1107_v52 }
  0x77   : > { %v760_v39 = vor.u32 %v758_v37, %v757_v57  ;;  %v761_v60 = vrot.slane %v757_v57, 4  ;;  %1106 = vst [vmem:[%s1288_s23 + $0xb8] sm:$0xf] %v752_v58  ;;  %1108 = vst [vmem:[%s1288_s23 + $0xbc] sm:$0x1] %v928_v42 }
  0x78   : > { %v768_v62 = vor.u32 %v766_v54, %v765_v27  ;;  %v770_v63 = vrot.slane %v765_v27, 4 }
  0x79   : > { %v931_v2 = vsel %vm1393_vm5, %v760_v39, %v1109_v38 }
  0x7a   : > { %1110 = vst [vmem:[%s1288_s23 + $0xc0] sm:$0xf] %v931_v2  ;;  %v769_v3 = vsel %vm1399_vm6, %v761_v60, %v768_v62  ;;  %v935_v4 = vsel %vm1406_vm7, %v770_v63, %v1112_v61 }
  0x7b   : > { %1111 = vst [vmem:[%s1288_s23 + $0xc4] sm:$0xf] %v769_v3  ;;  %1113 = vst [vmem:[%s1288_s23 + $0xc8] sm:$0x1] %v935_v4 }
  0x7c PF: > { %s13_s12 = sadd.s32 1, %s1244_s12  }
  0x7d   : > { %p10_p4 = scmp.ge.s32.totalorder %s13_s12, 4  }
  0x7f   :  { %12 = sbr.rel (!%p10_p4) target bundleno = 1 (0x1), region = 63 }

// kernel: basic_block_forward.4
= control target key start
LH: loop header
LB: loop body
LE: loop exit
PB: predicated region body
PF: predicated region fallthrough
CT: control target
= control target key end

     0   :  { %s4499_s12 = smov 0   ;;  %s4501_s13 = smov 0   ;;  %s5602_s0 = inlined_call_operand.vmem [shape: bf16[2,18,18,128], index: 0, kind: input, shape index: {}]   ;;  %s5603_s1 = inlined_call_operand.vmem [shape: bf16[1152,128], index: 1, kind: input, shape index: {}]   ;;  %s5604_s2 = inlined_call_operand.vmem [shape: bf16[2,16,16,128], index: 2, kind: output, shape index: {0}]   ;;  %s5605_s3 = inlined_call_operand.vmem [shape: f32[2,2,2,128], index: 3, kind: output, shape index: {1}]  }
   0x1   :  { %s4503_s14 = smov 0   ;;  %s4505_s15 = smov 0  }
   0x2   :  { %s4507_s16 = smov 0  }
   0x3 LB: > { %s23_s17 = sadd.s32 1, %s4469_s14  ;;  %s26_s18 = sadd.s32 1, %s4473_s15  ;;  %s4477_s16 = sphi %s4507_s16, %s14_s16   ;;  %s4473_s15 = sphi %s4505_s15, %s5622_s15   ;;  %s4469_s14 = sphi %s4503_s14, %s5621_s14   ;;  %s4465_s13 = sphi %s4501_s13, %s5620_s13   ;;  %s4461_s12 = sphi %s4499_s12, %s5619_s12  }
   0x4   : > { %p24_p0 = scmp.ge.s32.totalorder %s23_s17, 2  ;;  %p3361_p1 = scmp.ge.s32.totalorder %s4477_s16, 1 }
   0x5   : > { %p156_p2 = scmp.lt.s32.totalorder %s4477_s16, 5 }
   0x6   : > { %s5624_s17 = smov (%p24_p0, %s23_s17), 0  ;;  %s5626_s18 = smov (!%p24_p0, %s26_s18), %s4473_s15 }
   0x7   : > { %p157_p3 = pnand %p3361_p1, %p156_p2  ;;  %p28_p4 = scmp.ge.s32.totalorder %s5626_s18, 2 }
   0x9   : > { %s5628_s18 = smov (%p28_p4, %s5626_s18), 0  ;;  %160 = sbr.rel (%p157_p3) target bundleno = 468 (0x1d4), region = 28 }
  0x10   : > { %v4339_v0 = vld [vmem:[%s5603_s1 + $0x40] sm:$0xff]   ;;  %p193_p5 = scmp.lt.s32.totalorder %s4465_s13, 1  ;;  %v4341_v2 = vld [vmem:[%s5603_s1 + $0x48] sm:$0xff]   ;;  %v4343_v4 = vld [vmem:[%s5603_s1 + $0x50] sm:$0xff]   ;;  %s3658_s9 = smul.u32 96, %s4461_s12  ;;  %vm867_vm3 = vcmask 1042432  }
  0x11   : > { %v4340_v1 = vld [vmem:[%s5603_s1 + $0x100] sm:$0xff]   ;;  %3866 = vmatprep.subr.bf16.mxu1 %v4339_v0  ;;  %v4342_v3 = vld [vmem:[%s5603_s1 + $0x108] sm:$0xff]   ;;  %v4344_v5 = vld [vmem:[%s5603_s1 + $0x110] sm:$0xff]   ;;  %vm262_vm0 = vsmask.f32 3328  ;;  %vm868_vm4 = vcmask 1046532  }
  0x12   : > { %s5630_s13 = smov (!%p193_p5, %s4465_s13), 1  ;;  %3994 = vmatprep.subr.bf16.mxu0 %v4340_v1  ;;  %3867 = vmatpush3.bf16.msra.mxu1 %v4339_v0  ;;  %v4345_v6 = vld [vmem:[%s5603_s1 + $0x58] sm:$0xff]   ;;  %v4347_v8 = vld [vmem:[%s5603_s1 + $0x60] sm:$0xff]   ;;  %v4349_v10 = vld [vmem:[%s5603_s1 + $0x68] sm:$0xff]   ;;  %vm263_vm1 = vsmask.f32 7440 }
  0x13   : > { %3995 = vmatpush3.bf16.msra.mxu0 %v4340_v1  ;;  %3868 = vmatprep.subr.bf16.mxu1 %v4341_v2  ;;  %s4298_s4 = smul.u32 216, %s5630_s13  ;;  %v4346_v7 = vld [vmem:[%s5603_s1 + $0x118] sm:$0xff]   ;;  %v4348_v9 = vld [vmem:[%s5603_s1 + $0x120] sm:$0xff]   ;;  %v4350_v11 = vld [vmem:[%s5603_s1 + $0x128] sm:$0xff]   ;;  %p211_p7 = scmp.lt.s32.totalorder %s4461_s12, 1  ;;  %vm3207_vm6 = vcmask 1040384  }
  0x14   : > { %3996 = vmatprep.subr.bf16.mxu0 %v4342_v3  ;;  %v4351_v25 = vld [vmem:[%s5603_s1 + $0x70] sm:$0xff]   ;;  %v4353_v35 = vld [vmem:[%s5603_s1 + $0x78] sm:$0xff]   ;;  %vm4613_vm2 = vmor %vm262_vm0, %vm263_vm1  ;;  %s3367_s22 = sshll.u32 %s5630_s13, 1 }
  0x15   : > { %s197_s19 = scalar_lea.vmem %s5602_s0, %s4298_s4  ;;  %v4352_v29 = vld [vmem:[%s5603_s1 + $0x130] sm:$0xff]   ;;  %v4354_v50 = vld [vmem:[%s5603_s1 + $0x138] sm:$0xff]   ;;  %vm4910_vm5 = vmor %vm867_vm3, %vm868_vm4 }
  0x16   : > { %3869 = vmatpush3.bf16.msra.mxu1 %v4341_v2  ;;  %s4568_s24 = scalar_lea.vmem %s197_s19, %s3658_s9  ;;  %v4355_v2 = vld [vmem:[%s5603_s1] sm:$0xff]   ;;  %s3365_s9 = sshll.u32 %s5630_s13, 5 }
  0x17   : > { %3997 = vmatpush3.bf16.msra.mxu0 %v4342_v3  ;;  %3870 = vmatprep.subr.bf16.mxu1 %v4343_v4  ;;  %v4577_v12 = vld [vmem:[%s4568_s24] sm:$0xf]  ;;  %v4580_v13 = vld [vmem:[%s4568_s24 + $0x4] sm:$0xf]  ;;  %v4583_v14 = vld [vmem:[%s4568_s24 + $0x8] sm:$0x1] }
  0x18   : > { %3998 = vmatprep.subr.bf16.mxu0 %v4344_v5  ;;  %v266_v15 = vshrl.u32 %v4577_v12, 16  ;;  %v269_v16 = vshll.u32 %v4577_v12, 16  ;;  %v275_v17 = vshll.u32 %v4580_v13, 16  ;;  %v279_v18 = vshrl.u32 %v4580_v13, 16  ;;  %v3462_v20 = vld [vmem:[%s4568_s24 + $0xc] sm:$0xf] }
  0x19   : > { %v285_v19 = vshll.u32 %v4583_v14, 16  ;;  %v4592_v23 = vld [vmem:[%s4568_s24 + $0x10] sm:$0xf]  ;;  %v4595_v24 = vld [vmem:[%s4568_s24 + $0x14] sm:$0x1]  ;;  %v1405_v28 = vshrl.u32 %v3462_v20, 16 }
  0x1a   : > { %3871 = vmatpush3.bf16.msra.mxu1 %v4343_v4  ;;  %v268_v21 = vrot.slane %v266_v15, 4  ;;  %v271_v22 = vrot.slane %v269_v16, 5  ;;  %v277_v26 = vrot.slane %v275_v17, 5  ;;  %v281_v27 = vrot.slane %v279_v18, 4  ;;  %v4606_v34 = vld [vmem:[%s4568_s24 + $0xc] sm:$0xf] }
  0x1b   : > { %3999 = vmatpush3.bf16.msra.mxu0 %v4344_v5  ;;  %3872 = vmatprep.subr.bf16.mxu1 %v4345_v6  ;;  %v1408_v31 = vshll.u32 %v3462_v20, 16  ;;  %v1414_v32 = vshll.u32 %v4592_v23, 16  ;;  %v1418_v33 = vshrl.u32 %v4592_v23, 16  ;;  %v287_v38 = vrot.slane %v285_v19, 5  ;;  %v4619_v41 = vld [vmem:[%s4568_s24 + $0x10] sm:$0xf] }
  0x1c   : > { %4000 = vmatprep.subr.bf16.mxu0 %v4346_v7  ;;  %v272_v30 = vor.u32 %v271_v22, %v268_v21  ;;  %v282_v37 = vor.u32 %v281_v27, %v277_v26  ;;  %v1407_v39 = vrot.slane %v1405_v28, 4  ;;  %v1424_v40 = vshll.u32 %v4595_v24, 16  ;;  %v4629_v54 = vld [vmem:[%s4568_s24 + $0x14] sm:$0x1]  ;;  %v3465_v56 = vld [vmem:[%s4568_s24 + $0x18] sm:$0xf] }
  0x1d   : > { %v1410_v43 = vrot.slane %v1408_v31, 5  ;;  %v1416_v44 = vrot.slane %v1414_v32, 5  ;;  %v1420_v45 = vrot.slane %v1418_v33, 4  ;;  %v290_v48 = vshrl.u32 %v4606_v34, 16  ;;  %v4637_v61 = vld [vmem:[%s4568_s24 + $0x1c] sm:$0xf] }
  0x1e   : > { %3873 = vmatpush3.bf16.msra.mxu1 %v4345_v6  ;;  %v273_v42 = vrot.slane %v272_v30, 4  ;;  %v283_v46 = vrot.slane %v282_v37, 4  ;;  %v1426_v47 = vrot.slane %v1424_v40, 5  ;;  %v293_v49 = vshll.u32 %v4606_v34, 16  ;;  %v4645_v3 = vld [vmem:[%s5603_s1 + $0x140] sm:$0xff]  }
  0x1f   : > { %4001 = vmatpush3.bf16.msra.mxu0 %v4346_v7  ;;  %3874 = vmatprep.subr.bf16.mxu1 %v4347_v8  ;;  %v1411_v52 = vor.u32 %v1410_v43, %v1407_v39  ;;  %v1421_v53 = vor.u32 %v1420_v45, %v1416_v44  ;;  %v299_v55 = vshll.u32 %v4619_v41, 16  ;;  %v292_v58 = vrot.slane %v290_v48, 4  ;;  %v4649_v7 = vld [vmem:[%s4568_s24 + $0x20] sm:$0x1]  ;;  %v4666_v33 = vld [vmem:[%s4568_s24 + $0x1c] sm:$0xf] }
  0x20   : > { %4002 = vmatprep.subr.bf16.mxu0 %v4348_v9  ;;  %v278_v51 = vsel %vm4613_vm2, %v273_v42, %v277_v26  ;;  %v288_v57 = vsel %vm4613_vm2, %v283_v46, %v287_v38  ;;  %v295_v59 = vrot.slane %v293_v49, 5  ;;  %v303_v60 = vshrl.u32 %v4619_v41, 16  ;;  %v3468_v42 = vld [vmem:[%s4568_s24 + $0x24] sm:$0xf]  ;;  %v4357_v46 = vld [vmem:[%s5603_s1 + $0x8] sm:$0xff]  }
  0x21   : > { %v3372_v62 = vcombine.low %v278_v51, %v288_v57  ;;  %v1412_v63 = vrot.slane %v1411_v52, 4  ;;  %v1422_v0 = vrot.slane %v1421_v53, 4  ;;  %v301_v1 = vrot.slane %v299_v55, 5  ;;  %v4681_v52 = vld [vmem:[%s4568_s24 + $0x28] sm:$0xf] }
  0x22   : > { %3875 = vmatpush3.bf16.msra.mxu1 %v4347_v8  ;;  %v296_v4 = vor.u32 %v295_v59, %v292_v58  ;;  %v305_v5 = vrot.slane %v303_v60, 4  ;;  %v309_v6 = vshll.u32 %v4629_v54, 16  ;;  %v1438_v21 = vshll.u32 %v4637_v61, 16  ;;  %v4686_v57 = vld [vmem:[%s4568_s24 + $0x2c] sm:$0x1]  ;;  %v4359_v59 = vld [vmem:[%s5603_s1 + $0x10] sm:$0xff]  }
  0x23   : > { %4003 = vmatpush3.bf16.msra.mxu0 %v4348_v9  ;;  %3876 = vmatprep.subr.bf16.mxu1 %v4349_v10  ;;  %v1417_v8 = vsel %vm4613_vm2, %v1412_v63, %v1416_v44  ;;  %v1427_v9 = vsel %vm4613_vm2, %v1422_v0, %v1426_v47  ;;  %v1442_v22 = vshrl.u32 %v4637_v61, 16  ;;  %v323_v49 = vshll.u32 %v4666_v33, 16  ;;  %v4358_v60 = vld [vmem:[%s5603_s1 + $0x148] sm:$0xff]  }
  0x24   : > { %4004 = vmatprep.subr.bf16.mxu0 %v4350_v11  ;;  %3882 = vmatprep.mubr.bf16.mxu1 %v3372_v62  ;;  %v3486_v15 = vcombine.low %v1417_v8, %v1427_v9  ;;  %v297_v16 = vrot.slane %v296_v4, 4  ;;  %v306_v17 = vor.u32 %v305_v5, %v301_v1  ;;  %v311_v18 = vrot.slane %v309_v6, 5  ;;  %v4695_v4 = vld [vmem:[%s4568_s24 + $0x24] sm:$0xf] }
  0x25   : > { %v1440_v31 = vrot.slane %v1438_v21, 5  ;;  %v1444_v32 = vrot.slane %v1442_v22, 4  ;;  %v1453_v58 = vshrl.u32 %v3468_v42, 16  ;;  %v325_v62 = vrot.slane %v323_v49, 5  ;;  %v3471_v22 = vld [vmem:[%s4568_s24 + $0x30] sm:$0xf] }
  0x26   : > { %3877 = vmatpush3.bf16.msra.mxu1 %v4349_v10  ;;  %v1429_v10 = vshrl.u32 %v3465_v56, 16  ;;  %4010 = vmatprep.mubr.bf16.mxu0 %v3486_v15  ;;  %v302_v27 = vsel %vm4613_vm2, %v297_v16, %v301_v1  ;;  %v307_v28 = vrot.slane %v306_v17, 4  ;;  %v1456_v1 = vshll.u32 %v3468_v42, 16  ;;  %v4702_v16 = vld [vmem:[%s4568_s24 + $0x28] sm:$0xf]  ;;  %v4361_v42 = vld [vmem:[%s5603_s1 + $0x18] sm:$0xff]  }
  0x27   : > { %4005 = vmatpush3.bf16.msra.mxu0 %v4350_v11  ;;  %3878 = vmatprep.subr.bf16.mxu1 %v4351_v25  ;;  %v1432_v11 = vshll.u32 %v3465_v56, 16  ;;  %v1445_v45 = vor.u32 %v1444_v32, %v1440_v31  ;;  %v1455_v8 = vrot.slane %v1453_v58, 4  ;;  %v1466_v15 = vshrl.u32 %v4681_v52, 16  ;;  %v4705_v17 = vld [vmem:[%s4568_s24 + $0x2c] sm:$0x1]  ;;  %v4360_v32 = vld [vmem:[%s5603_s1 + $0x150] sm:$0xff]  }
  0x28   : > { %4006 = vmatprep.subr.bf16.mxu0 %v4352_v29  ;;  %v1431_v19 = vrot.slane %v1429_v10, 4  ;;  %v312_v37 = vsel %vm4613_vm2, %v307_v28, %v311_v18  ;;  %v338_v21 = vshrl.u32 %v4695_v4, 16  ;;  %v357_v49 = vshll.u32 %v4705_v17, 16  ;;  %v4362_v58 = vld [vmem:[%s5603_s1 + $0x158] sm:$0xff]  }
  0x29   : > { %v1434_v20 = vrot.slane %v1432_v11, 5  ;;  %v3373_v43 = vcombine.low %v302_v27, %v312_v37  ;;  %v1446_v55 = vrot.slane %v1445_v45, 4  ;;  %v1458_v11 = vrot.slane %v1456_v1, 5 }
  0x2a   : > { %3879 = vmatpush3.bf16.msra.mxu1 %v4351_v25  ;;  %v4658_v25 = vld [vmem:[%s4568_s24 + $0x18] sm:$0xf] }
  0x2b   : > { %4007 = vmatpush3.bf16.msra.mxu0 %v4352_v29  ;;  %3880 = vmatprep.subr.bf16.mxu1 %v4353_v35  ;;  %v1448_v29 = vshll.u32 %v4649_v7, 16  ;;  %v1435_v30 = vor.u32 %v1434_v20, %v1431_v19  ;;  %v314_v40 = vshrl.u32 %v4658_v25, 16  ;;  %v317_v47 = vshll.u32 %v4658_v25, 16 }
  0x2c   : > { %4008 = vmatprep.subr.bf16.mxu0 %v4354_v50  ;;  %v1472_v20 = vshll.u32 %v4686_v57, 16  ;;  %v1459_v28 = vor.u32 %v1458_v11, %v1455_v8 }
  0x2d   : > { %v1450_v38 = vrot.slane %v1448_v29, 5  ;;  %v1436_v44 = vrot.slane %v1435_v30, 4  ;;  %v316_v48 = vrot.slane %v314_v40, 4  ;;  %v319_v56 = vrot.slane %v317_v47, 5 }
  0x2e   : > { %3881 = vmatpush3.bf16.msra.mxu1 %v4353_v35  ;;  %v256_v35 = vld [vmem:[%s4568_s24 + $0x20] sm:$0x1]  ;;  %v1468_v29 = vrot.slane %v1466_v15, 4  ;;  %v341_v30 = vshll.u32 %v4695_v4, 16  ;;  %v1474_v37 = vrot.slane %v1472_v20, 5  ;;  %v347_v40 = vshll.u32 %v4702_v16, 16 }
  0x2f   : > { %4009 = vmatpush3.bf16.msra.mxu0 %v4354_v50  ;;  %3898 = vmatprep.subr.bf16.mxu1 %v4355_v2  ;;  %v327_v50 = vshrl.u32 %v4666_v33, 16  ;;  %v333_v51 = vshll.u32 %v256_v35, 16  ;;  %v1441_v53 = vsel %vm4613_vm2, %v1436_v44, %v1440_v31  ;;  %v1451_v5 = vsel %vm4613_vm2, %v1446_v55, %v1450_v38  ;;  %v4712_v31 = vld [vmem:[%s4568_s24 + $0x34] sm:$0xf]  ;;  %v4731_v55 = vld [vmem:[%s4568_s24 + $0x38] sm:$0x1] }
  0x30   : > { %4026 = vmatprep.subr.bf16.mxu0 %v4645_v3  ;;  %v320_v6 = vor.u32 %v319_v56, %v316_v48  ;;  %v3487_v9 = vcombine.low %v1441_v53, %v1451_v5  ;;  %v340_v38 = vrot.slane %v338_v21, 4  ;;  %v1460_v44 = vrot.slane %v1459_v28, 4  ;;  %v4738_v5 = vld [vmem:[%s4568_s24 + $0x30] sm:$0xf] }
  0x31   : > { %3883 = vmatmul.mubr.bf16.vlgmr.msra.gmra.mrb[0].mxu1 %v3373_v43  ;;  %v329_v63 = vrot.slane %v327_v50, 4  ;;  %v335_v0 = vrot.slane %v333_v51, 5  ;;  %v349_v47 = vrot.slane %v347_v40, 5  ;;  %v351_v48 = vshrl.u32 %v4702_v16, 16 }
  0x32   : > { %3899 = vmatpush3.bf16.msra.mxu1 %v4355_v2  ;;  %v1462_v2 = vshll.u32 %v4681_v52, 16  ;;  %v321_v18 = vrot.slane %v320_v6, 4  ;;  %4011 = vmatmul.mubr.bf16.vlgmr.msra.gmra.mrb[0].mxu0 %v3487_v9  ;;  %v1477_v56 = vshrl.u32 %v3471_v22, 16  ;;  %v1486_v1 = vshll.u32 %v4712_v31, 16  ;;  %v4744_v9 = vld [vmem:[%s4568_s24 + $0x34] sm:$0xf] }
  0x33   : > { %3900 = vmatprep.subr.bf16.mxu1 %v4357_v46  ;;  %v330_v10 = vor.u32 %v329_v63, %v325_v62  ;;  %4027 = vmatpush3.bf16.msra.mxu0 %v4645_v3  ;;  %v343_v3 = vrot.slane %v341_v30, 5  ;;  %v359_v63 = vrot.slane %v357_v49, 5  ;;  %v1496_v21 = vshll.u32 %v4731_v55, 16 }
  0x34   : > { %v1464_v19 = vrot.slane %v1462_v2, 5  ;;  %v326_v35 = vsel %vm4613_vm2, %v321_v18, %v325_v62  ;;  %4028 = vmatprep.subr.bf16.mxu0 %v4358_v60  ;;  %v353_v62 = vrot.slane %v351_v48, 4  ;;  %v1479_v2 = vrot.slane %v1477_v56, 4  ;;  %v4769_v48 = vld [vmem:[%s4568_s24 + $0x40] sm:$0xf]  ;;  %v4367_v56 = vld [vmem:[%s5603_s1 + $0x30] sm:$0xff]  }
  0x35   : > { %v331_v27 = vrot.slane %v330_v10, 4  ;;  %v344_v53 = vor.u32 %v343_v3, %v340_v38  ;;  %v1488_v18 = vrot.slane %v1486_v1, 5  ;;  %v365_v30 = vshll.u32 %v4738_v5, 16 }
  0x36   : > { %3901 = vmatpush3.bf16.msra.mxu1 %v4357_v46  ;;  %v1469_v45 = vor.u32 %v1468_v29, %v1464_v19  ;;  %v1465_v50 = vsel %vm4613_vm2, %v1460_v44, %v1464_v19  ;;  %v354_v11 = vor.u32 %v353_v62, %v349_v47  ;;  %v4754_v29 = vld [vmem:[%s4568_s24 + $0x38] sm:$0x1]  ;;  %v1498_v40 = vrot.slane %v1496_v21, 5  ;;  %v3474_v44 = vld [vmem:[%s4568_s24 + $0x3c] sm:$0xf] }
  0x37   : > { %3902 = vmatprep.subr.bf16.mxu1 %v4359_v59  ;;  %v336_v43 = vsel %vm4613_vm2, %v331_v27, %v335_v0  ;;  %4029 = vmatpush3.bf16.msra.mxu0 %v4358_v60  ;;  %v1480_v0 = vshll.u32 %v3471_v22, 16  ;;  %v345_v8 = vrot.slane %v344_v53, 4  ;;  %v4363_v60 = vld [vmem:[%s5603_s1 + $0x20] sm:$0xff]   ;;  %v362_v22 = vshrl.u32 %v4738_v5, 16 }
  0x38   : > { %v3374_v46 = vcombine.low %v326_v35, %v336_v43  ;;  %v1470_v51 = vrot.slane %v1469_v45, 4  ;;  %4030 = vmatprep.subr.bf16.mxu0 %v4360_v32  ;;  %v355_v27 = vrot.slane %v354_v11, 4  ;;  %v371_v35 = vshll.u32 %v4744_v9, 16  ;;  %v4790_v11 = vld [vmem:[%s4568_s24 + $0x40] sm:$0xf] }
  0x39   : > { %v1482_v15 = vrot.slane %v1480_v0, 5  ;;  %v350_v19 = vsel %vm4613_vm2, %v345_v8, %v349_v47  ;;  %v375_v43 = vshrl.u32 %v4744_v9, 16  ;;  %v381_v53 = vshll.u32 %v4754_v29, 16  ;;  %v4778_v0 = vld [vmem:[%s4568_s24 + $0x44] sm:$0x1]  ;;  %v4366_v8 = vld [vmem:[%s5603_s1 + $0x168] sm:$0xff]  }
  0x3a   : > { %3903 = vmatpush3.bf16.msra.mxu1 %v4359_v59  ;;  %3886 = vmatprep.mubr.bf16.mxu1 %v3374_v46  ;;  %v1475_v6 = vsel %vm4613_vm2, %v1470_v51, %v1474_v37  ;;  %v1490_v59 = vshrl.u32 %v4712_v31, 16  ;;  %v4365_v37 = vld [vmem:[%s5603_s1 + $0x28] sm:$0xff]   ;;  %v360_v45 = vsel %vm4613_vm2, %v355_v27, %v359_v63  ;;  %v367_v46 = vrot.slane %v365_v30, 5  ;;  %v4793_v21 = vld [vmem:[%s4568_s24 + $0x44] sm:$0x1] }
  0x3b   : > { %3904 = vmatprep.subr.bf16.mxu1 %v4361_v42  ;;  %v3488_v10 = vcombine.low %v1465_v50, %v1475_v6  ;;  %v1483_v28 = vor.u32 %v1482_v15, %v1479_v2  ;;  %4031 = vmatpush3.bf16.msra.mxu0 %v4360_v32  ;;  %v4364_v32 = vld [vmem:[%s5603_s1 + $0x160] sm:$0xff]   ;;  %v373_v47 = vrot.slane %v371_v35, 5  ;;  %v3375_v49 = vcombine.low %v350_v19, %v360_v45  ;;  %v4806_v45 = vld [vmem:[%s4568_s24 + $0x4c] sm:$0xf] }
  0x3c   : > { %v1492_v20 = vrot.slane %v1490_v59, 4  ;;  %4032 = vmatprep.subr.bf16.mxu0 %v4362_v58  ;;  %v377_v51 = vrot.slane %v375_v43, 4  ;;  %v1501_v1 = vshrl.u32 %v3474_v44, 16  ;;  %v1504_v6 = vshll.u32 %v3474_v44, 16  ;;  %5610 = vst [vmem:[#allocation2_spill] sm:$0xff] %v4793_v21 }
  0x3d   : > { %4014 = vmatprep.mubr.bf16.mxu0 %v3488_v10  ;;  %v1484_v3 = vrot.slane %v1483_v28, 4  ;;  %3887 = vmatmul.mubr.bf16.gmra.mrb[4].mxu1 %v3375_v49  ;;  %v4787_v10 = vld [vmem:[%s4568_s24 + $0x3c] sm:$0xf]  ;;  %v1514_v30 = vshrl.u32 %v4769_v48, 16  ;;  %v1520_v35 = vshll.u32 %v4778_v0, 16 }
  0x3e   : > { %3905 = vmatpush3.bf16.msra.mxu1 %v4361_v42  ;;  %v1493_v38 = vor.u32 %v1492_v20, %v1488_v18  ;;  %v364_v42 = vrot.slane %v362_v22, 4  ;;  %v378_v59 = vor.u32 %v377_v51, %v373_v47  ;;  %v1503_v19 = vrot.slane %v1501_v1, 4  ;;  %v4369_v22 = vld [vmem:[%s5603_s1 + $0x38] sm:$0xff]  }
  0x3f   : > { %3906 = vmatprep.subr.bf16.mxu1 %v4363_v60  ;;  %v1489_v62 = vsel %vm4613_vm2, %v1484_v3, %v1488_v18  ;;  %4033 = vmatpush3.bf16.msra.mxu0 %v4362_v58  ;;  %v1510_v58 = vshll.u32 %v4769_v48, 16  ;;  %v1506_v20 = vrot.slane %v1504_v6, 5  ;;  %v386_v43 = vshrl.u32 %v4787_v10, 16 }
  0x40   : > { %v1494_v50 = vrot.slane %v1493_v38, 4  ;;  %v368_v63 = vor.u32 %v367_v46, %v364_v42  ;;  %4034 = vmatprep.subr.bf16.mxu0 %v4364_v32  ;;  %v379_v27 = vrot.slane %v378_v59, 4  ;;  %v3477_v38 = vld [vmem:[%s4568_s24 + $0x48] sm:$0xf]  ;;  %v389_v44 = vshll.u32 %v4787_v10, 16 }
  0x41   : > { %v1512_v28 = vrot.slane %v1510_v58, 5  ;;  %v1507_v42 = vor.u32 %v1506_v20, %v1503_v19  ;;  %v1516_v46 = vrot.slane %v1514_v30, 4  ;;  %v1522_v49 = vrot.slane %v1520_v35, 5 }
  0x42   : > { %3907 = vmatpush3.bf16.msra.mxu1 %v4363_v60  ;;  %v1499_v2 = vsel %vm4613_vm2, %v1494_v50, %v1498_v40  ;;  %v383_v60 = vrot.slane %v381_v53, 5  ;;  %v369_v18 = vrot.slane %v368_v63, 4  ;;  %v395_v50 = vshll.u32 %v4790_v11, 16 }
  0x43   : > { %3908 = vmatprep.subr.bf16.mxu1 %v4365_v37  ;;  %v3489_v15 = vcombine.low %v1489_v62, %v1499_v2  ;;  %4035 = vmatpush3.bf16.msra.mxu0 %v4364_v32  ;;  %v1508_v51 = vrot.slane %v1507_v42, 4  ;;  %v391_v53 = vrot.slane %v389_v44, 5  ;;  %v4368_v62 = vld [vmem:[%s5603_s1 + $0x170] sm:$0xff]   ;;  %v1517_v63 = vor.u32 %v1516_v46, %v1512_v28  ;;  %v4832_v42 = vld [vmem:[%s4568_s24 + $0x48] sm:$0xf] }
  0x44   : > { %v374_v40 = vsel %vm4613_vm2, %v369_v18, %v373_v47  ;;  %v384_v3 = vsel %vm4613_vm2, %v379_v27, %v383_v60  ;;  %v388_v47 = vrot.slane %v386_v43, 4  ;;  %4036 = vmatprep.subr.bf16.mxu0 %v4366_v8  ;;  %v397_v1 = vrot.slane %v395_v50, 5  ;;  %v4819_v60 = vld [vmem:[%s4568_s24 + $0x50] sm:$0x1]  ;;  %v4824_v18 = vld [vmem:[%s5603_s1 + $0x80] sm:$0xff]  }
  0x45   : > { %4015 = vmatmul.mubr.bf16.gmra.mrb[4].mxu0 %v3489_v15  ;;  %v399_v6 = vshrl.u32 %v4790_v11, 16  ;;  %v405_v2 = vshll.u32 %v4793_v21, 16  ;;  %v1513_v32 = vsel %vm4613_vm2, %v1508_v51, %v1512_v28  ;;  %v1525_v58 = vshrl.u32 %v3477_v38, 16  ;;  %v4370_v28 = vld [vmem:[%s5603_s1 + $0x178] sm:$0xff]   ;;  %v4838_v46 = vld [vmem:[%s4568_s24 + $0x4c] sm:$0xf] }
  0x46   : > { %3909 = vmatpush3.bf16.msra.mxu1 %v4365_v37  ;;  %v3376_v37 = vcombine.low %v374_v40, %v384_v3  ;;  %v392_v59 = vor.u32 %v391_v53, %v388_v47  ;;  %v1528_v15 = vshll.u32 %v3477_v38, 16  ;;  %v1518_v19 = vrot.slane %v1517_v63, 4  ;;  %v4843_v53 = vld [vmem:[%s4568_s24 + $0x50] sm:$0x1]  ;;  %v3480_v63 = vld [vmem:[%s4568_s24 + $0x54] sm:$0xf] }
  0x47   : > { %3910 = vmatprep.subr.bf16.mxu1 %v4367_v56  ;;  %v401_v20 = vrot.slane %v399_v6, 4  ;;  %v1534_v27 = vshll.u32 %v4806_v45, 16  ;;  %4037 = vmatpush3.bf16.msra.mxu0 %v4366_v8  ;;  %v1527_v35 = vrot.slane %v1525_v58, 4  ;;  %v1538_v40 = vshrl.u32 %v4806_v45, 16  ;;  %5611 = vst [vmem:[#allocation3_spill] sm:$0xff] %v4843_v53 }
  0x48   : > { %3890 = vmatprep.mubr.bf16.mxu1 %v3376_v37  ;;  %v393_v30 = vrot.slane %v392_v59, 4  ;;  %v1530_v38 = vrot.slane %v1528_v15, 5  ;;  %4038 = vmatprep.subr.bf16.mxu0 %v4368_v62  ;;  %v1523_v43 = vsel %vm4613_vm2, %v1518_v19, %v1522_v49  ;;  %v1544_v8 = vshll.u32 %v4819_v60, 16  ;;  %v4854_v15 = vld [vmem:[%s5603_s1 + $0x180] sm:$0xff]  }
  0x49   : > { %v402_v44 = vor.u32 %v401_v20, %v397_v1  ;;  %v1536_v3 = vrot.slane %v1534_v27, 5  ;;  %v3490_v50 = vcombine.low %v1513_v32, %v1523_v43  ;;  %v1540_v47 = vrot.slane %v1538_v40, 4 }
  0x4a   : > { %3911 = vmatpush3.bf16.msra.mxu1 %v4367_v56  ;;  %v407_v56 = vrot.slane %v405_v2, 5  ;;  %v398_v37 = vsel %vm4613_vm2, %v393_v30, %v397_v1  ;;  %v1531_v51 = vor.u32 %v1530_v38, %v1527_v35  ;;  %v1546_v49 = vrot.slane %v1544_v8, 5  ;;  %v4860_v30 = vld [vmem:[%s4568_s24 + $0x58] sm:$0xf]  ;;  %v4868_v8 = vld [vmem:[%s4568_s24 + $0x54] sm:$0xf] }
  0x4b   : > { %3912 = vmatprep.subr.bf16.mxu1 %v4369_v22  ;;  %v403_v6 = vrot.slane %v402_v44, 4  ;;  %v410_v2 = vshrl.u32 %v4832_v42, 16  ;;  %v413_v59 = vshll.u32 %v4832_v42, 16  ;;  %4039 = vmatpush3.bf16.msra.mxu0 %v4368_v62  ;;  %v1541_v1 = vor.u32 %v1540_v47, %v1536_v3  ;;  %v4865_v44 = vld [vmem:[%s4568_s24 + $0x5c] sm:$0x1] }
  0x4c   : > { %4018 = vmatprep.mubr.bf16.mxu0 %v3490_v50  ;;  %v419_v32 = vshll.u32 %v4838_v46, 16  ;;  %v423_v58 = vshrl.u32 %v4838_v46, 16  ;;  %4040 = vmatprep.subr.bf16.mxu0 %v4370_v28  ;;  %v429_v27 = vshll.u32 %v4843_v53, 16  ;;  %v4895_v53 = vld [vmem:[%s4568_s24 + $0x68] sm:$0x1] }
  0x4d   : > { %v408_v19 = vsel %vm4613_vm2, %v403_v6, %v407_v56  ;;  %v412_v62 = vrot.slane %v410_v2, 4  ;;  %v415_v20 = vrot.slane %v413_v59, 5  ;;  %v1542_v40 = vrot.slane %v1541_v1, 4  ;;  %v4871_v6 = vld [vmem:[%s4568_s24 + $0x58] sm:$0xf] }
  0x4e   : > { %3913 = vmatpush3.bf16.msra.mxu1 %v4369_v22  ;;  %v1532_v22 = vrot.slane %v1531_v51, 4  ;;  %v3377_v35 = vcombine.low %v398_v37, %v408_v19  ;;  %v421_v43 = vrot.slane %v419_v32, 5  ;;  %v425_v51 = vrot.slane %v423_v58, 4 }
  0x4f   : > { %3930 = vmatprep.subr.bf16.mxu1 %v4824_v18  ;;  %v416_v50 = vor.u32 %v415_v20, %v412_v62  ;;  %v431_v47 = vrot.slane %v429_v27, 5  ;;  %v1549_v56 = vshrl.u32 %v3480_v63, 16  ;;  %4041 = vmatpush3.bf16.msra.mxu0 %v4370_v28  ;;  %v1547_v37 = vsel %vm4613_vm2, %v1542_v40, %v1546_v49  ;;  %v4880_v20 = vld [vmem:[%s4568_s24 + $0x5c] sm:$0x1] }
  0x50   : > { %v1537_v38 = vsel %vm4613_vm2, %v1532_v22, %v1536_v3  ;;  %3891 = vmatmul.mubr.bf16.gmra.mrb[8].mxu1 %v3377_v35  ;;  %v1552_v3 = vshll.u32 %v3480_v63, 16  ;;  %v1558_v2 = vshll.u32 %v4860_v30, 16  ;;  %v1562_v59 = vshrl.u32 %v4860_v30, 16  ;;  %4058 = vmatprep.subr.bf16.mxu0 %v4854_v15  ;;  %v3483_v63 = vld [vmem:[%s4568_s24 + $0x60] sm:$0xf] }
  0x51   : > { %v3491_v22 = vcombine.low %v1537_v38, %v1547_v37  ;;  %v417_v1 = vrot.slane %v416_v50, 4  ;;  %v426_v32 = vor.u32 %v425_v51, %v421_v43  ;;  %v1551_v58 = vrot.slane %v1549_v56, 4 }
  0x52   : > { %v1554_v28 = vrot.slane %v1552_v3, 5  ;;  %v1560_v19 = vrot.slane %v1558_v2, 5  ;;  %v1564_v62 = vrot.slane %v1562_v59, 4  ;;  %v1568_v49 = vshll.u32 %v4865_v44, 16  ;;  %v4889_v3 = vld [vmem:[%s4568_s24 + $0x64] sm:$0xf] }
  0x53   : > { %4019 = vmatmul.mubr.bf16.gmra.mrb[8].mxu0 %v3491_v22  ;;  %v422_v27 = vsel %vm4613_vm2, %v417_v1, %v421_v43  ;;  %v427_v35 = vrot.slane %v426_v32, 4  ;;  %v434_v38 = vshrl.u32 %v4868_v8, 16  ;;  %v437_v40 = vshll.u32 %v4868_v8, 16 }
  0x54   : > { %v1555_v50 = vor.u32 %v1554_v28, %v1551_v58  ;;  %v1565_v51 = vor.u32 %v1564_v62, %v1560_v19  ;;  %v1570_v56 = vrot.slane %v1568_v49, 5  ;;  %v443_v37 = vshll.u32 %v4871_v6, 16  ;;  %v3502_v58 = vld [vmem:[%s4568_s24 + $0xc] sm:$0xe] }
  0x55   : > { %v432_v2 = vsel %vm4613_vm2, %v427_v35, %v431_v47  ;;  %v436_v59 = vrot.slane %v434_v38, 4  ;;  %v439_v22 = vrot.slane %v437_v40, 5  ;;  %v447_v43 = vshrl.u32 %v4871_v6, 16 }
  0x56   : > { %v3378_v1 = vcombine.low %v422_v27, %v432_v2  ;;  %v1556_v32 = vrot.slane %v1555_v50, 4  ;;  %v1566_v26 = vrot.slane %v1565_v51, 4  ;;  %v445_v39 = vrot.slane %v443_v37, 5 }
  0x57   : > { %v440_v28 = vor.u32 %v439_v22, %v436_v59  ;;  %v449_v62 = vrot.slane %v447_v43, 4  ;;  %v453_v49 = vshll.u32 %v4880_v20, 16  ;;  %v1573_v21 = vshrl.u32 %v3483_v63, 16 }
  0x58   : > { %3894 = vmatprep.mubr.bf16.mxu1 %v3378_v1  ;;  %v1561_v47 = vsel %vm4613_vm2, %v1556_v32, %v1560_v19  ;;  %v1571_v35 = vsel %vm4613_vm2, %v1566_v26, %v1570_v56  ;;  %v1576_v38 = vshll.u32 %v3483_v63, 16  ;;  %v1582_v27 = vshll.u32 %v4889_v3, 16 }
  0x59   : > { %v3492_v40 = vcombine.low %v1561_v47, %v1571_v35  ;;  %v441_v50 = vrot.slane %v440_v28, 4  ;;  %v450_v51 = vor.u32 %v449_v62, %v445_v39  ;;  %v455_v37 = vrot.slane %v453_v49, 5  ;;  %v3503_v49 = vld [vmem:[%s4568_s24 + $0x18] sm:$0xe]  ;;  %v3504_v47 = vld [vmem:[%s4568_s24 + $0x24] sm:$0xe] }
  0x5a   : > { %v1575_v2 = vrot.slane %v1573_v21, 4  ;;  %v1578_v59 = vrot.slane %v1576_v38, 5  ;;  %v1584_v22 = vrot.slane %v1582_v27, 5  ;;  %v1586_v43 = vshrl.u32 %v4889_v3, 16 }
  0x5b   : > { %4022 = vmatprep.mubr.bf16.mxu0 %v3492_v40  ;;  %v446_v19 = vsel %vm4613_vm2, %v441_v50, %v445_v39  ;;  %v451_v1 = vrot.slane %v450_v51, 4  ;;  %v1592_v26 = vshll.u32 %v4895_v53, 16  ;;  %v3510_v63 = vrot.slane %v3502_v58, 9 }
  0x5c   : > { %v1579_v56 = vor.u32 %v1578_v59, %v1575_v2  ;;  %v1588_v32 = vrot.slane %v1586_v43, 4  ;;  %v1839_v21 = vrot.slane %v4592_v23, 5  ;;  %v3388_v39 = vcombine.low %v4577_v12, %v4580_v13 }
  0x5d   : > { %v456_v62 = vsel %vm4613_vm2, %v451_v1, %v455_v37  ;;  %v1594_v27 = vrot.slane %v1592_v26, 5  ;;  %v1853_v37 = vrot.slane %v4681_v52, 5  ;;  %v5614_v12 = vrot.slane %v4637_v61, 5  ;;  %v4960_v61 = vld [vmem:[%s4568_s24 + $0x48] sm:$0xe] }
  0x5e   : > { %v3379_v35 = vcombine.low %v446_v19, %v456_v62  ;;  %v1580_v58 = vrot.slane %v1579_v56, 4  ;;  %v1589_v38 = vor.u32 %v1588_v32, %v1584_v22  ;;  %v1840_v40 = vsel %vm4910_vm5, %v3510_v63, %v1839_v21  ;;  %v3505_v63 = vld [vmem:[%s4568_s24 + $0x30] sm:$0xe] }
  0x5f   : > { %v1841_v50 = vrot.slane %v1839_v21, 4  ;;  %v1848_v13 = vrot.slane %v5614_v12, 4  ;;  %v1849_v2 = vrot.slane %v4649_v7, 5  ;;  %v5615_v59 = vrot.slane %v4595_v24, 5 }
  0x60   : > { %3895 = vmatmul.mubr.bf16.gmra.mrb[12].mxu1 %v3379_v35  ;;  %v1585_v23 = vsel %vm4613_vm2, %v1580_v58, %v1584_v22  ;;  %v1590_v51 = vrot.slane %v1589_v38, 4  ;;  %v3511_v22 = vrot.slane %v3503_v49, 9  ;;  %v3512_v26 = vrot.slane %v3504_v47, 9  ;;  %v3506_v49 = vld [vmem:[%s4568_s24 + $0x3c] sm:$0xe]  ;;  %v4375_v35 = vld [vmem:[%s5603_s1 + $0x88] sm:$0xff]  }
  0x61   : > { %3914 = vmatprep.mubr.bf16.mxu1 %v3388_v39  ;;  %v1843_v43 = vsel %vm4910_vm5, %v1841_v50, %v5615_v59  ;;  %v1855_v56 = vrot.slane %v1853_v37, 4  ;;  %v1856_v32 = vrot.slane %v4686_v57, 5  ;;  %v875_v7 = vrot.slane %v4583_v14, 5 }
  0x62   : > { %v1595_v19 = vsel %vm4613_vm2, %v1590_v51, %v1594_v27  ;;  %v3518_v1 = vcombine.low %v1840_v40, %v1843_v43  ;;  %v882_v24 = vrot.slane %v4629_v54, 5  ;;  %v3389_v21 = vcombine.low %v4606_v34, %v4619_v41  ;;  %v4381_v43 = vld [vmem:[%s5603_s1 + $0x98] sm:$0xff]  }
  0x63   : > { %v3493_v52 = vcombine.low %v1585_v23, %v1595_v19  ;;  %v1850_v62 = vsel %vm4910_vm5, %v1848_v13, %v1849_v2  ;;  %v3390_v39 = vcombine.low %v4658_v25, %v4666_v33  ;;  %v5616_v47 = vmov %v5614_v12  ;;  %v4970_v23 = vld [vmem:[%s4568_s24 + $0x54] sm:$0xe] }
  0x64   : > { %v1847_v57 = vsel %vm4910_vm5, %v3511_v22, %v5616_v47  ;;  %v3513_v34 = vrot.slane %v3505_v63, 9  ;;  %v1860_v41 = vrot.slane %v4712_v31, 5  ;;  %v1867_v58 = vrot.slane %v4769_v48, 5  ;;  %v4376_v48 = vld [vmem:[%s5603_s1 + $0x188] sm:$0xff]  }
  0x65   : > { %4023 = vmatmul.mubr.bf16.gmra.mrb[12].mxu0 %v3493_v52  ;;  %v1854_v25 = vsel %vm4910_vm5, %v3512_v26, %v1853_v37  ;;  %v1857_v33 = vsel %vm4910_vm5, %v1855_v56, %v1856_v32  ;;  %v1863_v38 = vrot.slane %v4731_v55, 5  ;;  %v3514_v27 = vrot.slane %v3506_v49, 9  ;;  %v4973_v55 = vld [vmem:[%s4568_s24 + $0x60] sm:$0xe]  ;;  %v5000_v56 = vld [vmem:[%s4568_s24 + $0x4] sm:$0xf] }
  0x66   : > { %4042 = vmatprep.mubr.bf16.mxu0 %v3518_v1  ;;  %v1870_v40 = vrot.slane %v4778_v0, 5  ;;  %v1874_v50 = vrot.slane %v4806_v45, 5  ;;  %v3519_v31 = vcombine.low %v1847_v57, %v1850_v62  ;;  %v3520_v51 = vcombine.low %v1854_v25, %v1857_v33  ;;  %v4385_v49 = vld [vmem:[%s5603_s1 + $0xa0] sm:$0xff]   ;;  %v5055_v45 = vld [vmem:[%s4568_s24 + $0x18] sm:$0xe] }
  0x67   : > { %v1862_v37 = vrot.slane %v1860_v41, 4  ;;  %v1869_v12 = vrot.slane %v1867_v58, 4  ;;  %v3391_v0 = vcombine.low %v4695_v4, %v4702_v16  ;;  %v1861_v13 = vsel %vm4910_vm5, %v3513_v34, %v1860_v41  ;;  %v5023_v41 = vld [vmem:[%s4568_s24 + $0x10] sm:$0xf] }
  0x68   : > { %3915 = vmatmul.mubr.bf16.vlgmr.msra.gmra.mrb[0].mxu1 %v3389_v21  ;;  %v3392_v2 = vcombine.low %v4738_v5, %v4744_v9  ;;  %v3515_v59 = vrot.slane %v4960_v61, 9  ;;  %v1876_v4 = vrot.slane %v1874_v50, 4  ;;  %v1877_v19 = vrot.slane %v4819_v60, 5  ;;  %v4380_v5 = vld [vmem:[%s5603_s1 + $0x190] sm:$0xff]   ;;  %v843_v21 = vld [vmem:[%s4568_s24] sm:$0xe] }
  0x69   : > { %3931 = vmatpush3.bf16.msra.mxu1 %v4824_v18  ;;  %3918 = vmatprep.mubr.bf16.mxu1 %v3390_v39  ;;  %v4379_v18 = vld [vmem:[%s5603_s1 + $0x90] sm:$0xff]   ;;  %v3516_v1 = vrot.slane %v4970_v23, 9  ;;  %v1881_v22 = vrot.slane %v4860_v30, 5  ;;  %v1884_v26 = vrot.slane %v4865_v44, 5  ;;  %v3517_v63 = vrot.slane %v4973_v55, 9 }
  0x6a   : > { %3932 = vmatprep.subr.bf16.mxu1 %v4375_v35  ;;  %v1888_v52 = vrot.slane %v4889_v3, 5  ;;  %v872_v60 = vrot.slane %v5000_v56, 5  ;;  %v1864_v30 = vsel %vm4910_vm5, %v1862_v37, %v1863_v38  ;;  %v1868_v32 = vsel %vm4910_vm5, %v3514_v27, %v1867_v58  ;;  %v846_v61 = vld [vmem:[%s4568_s24 + $0x24] sm:$0xe]  ;;  %v848_v56 = vld [vmem:[%s4568_s24 + $0x3c] sm:$0xe] }
  0x6b   : > { %v1871_v44 = vsel %vm4910_vm5, %v1869_v12, %v1870_v40  ;;  %v3521_v62 = vcombine.low %v1861_v13, %v1864_v30  ;;  %v1883_v47 = vrot.slane %v1881_v22, 4  ;;  %v1891_v57 = vrot.slane %v4895_v53, 5  ;;  %v4387_v40 = vld [vmem:[%s5603_s1 + $0xa8] sm:$0xff]   ;;  %v4437_v30 = vld [vmem:[%s4568_s24 + $0x1c] sm:$0xf]  ;;  %v4392_v53 = vld [vmem:[%s5603_s1 + $0x1b0] sm:$0xff]  }
  0x6c   : > { %v3522_v39 = vcombine.low %v1868_v32, %v1871_v44  ;;  %v3404_v34 = vrot.slane %v843_v21, 9  ;;  %v879_v58 = vrot.slane %v5023_v41, 5  ;;  %v893_v25 = vrot.slane %v4702_v16, 5  ;;  %v850_v41 = vld [vmem:[%s4568_s24 + $0x54] sm:$0xe] }
  0x6d   : > { %4043 = vmatmul.mubr.bf16.vlgmr.msra.gmra.mrb[0].mxu0 %v3519_v31  ;;  %3933 = vmatpush3.bf16.msra.mxu1 %v4375_v35  ;;  %v5020_v35 = vrot.slane %v1888_v52, 4  ;;  %v874_v33 = vrot.slane %v872_v60, 4  ;;  %v896_v38 = vrot.slane %v4705_v17, 5  ;;  %v3393_v27 = vcombine.low %v4787_v10, %v4790_v11 }
  0x6e   : > { %4059 = vmatpush3.bf16.msra.mxu0 %v4854_v15  ;;  %4046 = vmatprep.mubr.bf16.mxu0 %v3520_v51  ;;  %v4382_v15 = vld [vmem:[%s5603_s1 + $0x198] sm:$0xff]   ;;  %v3394_v31 = vcombine.low %v4832_v42, %v4838_v46  ;;  %v3407_v16 = vrot.slane %v846_v61, 9  ;;  %v895_v23 = vrot.slane %v893_v25, 4  ;;  %v1875_v17 = vsel %vm4910_vm5, %v3515_v59, %v1874_v50  ;;  %v4386_v51 = vld [vmem:[%s5603_s1 + $0x1a0] sm:$0xff]  }
  0x6f   : > { %4060 = vmatprep.subr.bf16.mxu0 %v4376_v48  ;;  %3934 = vmatprep.subr.bf16.mxu1 %v4379_v18  ;;  %v1878_v10 = vsel %vm4910_vm5, %v1876_v4, %v1877_v19  ;;  %v1882_v42 = vsel %vm4910_vm5, %v3516_v1, %v1881_v22  ;;  %v1885_v37 = vsel %vm4910_vm5, %v1883_v47, %v1884_v26  ;;  %v900_v13 = vrot.slane %v4744_v9, 5  ;;  %v847_v4 = vld [vmem:[%s4568_s24 + $0x30] sm:$0xe]  ;;  %v4388_v1 = vld [vmem:[%s5603_s1 + $0x1a8] sm:$0xff]  }
  0x70   : > { %3919 = vmatmul.mubr.bf16.gmra.mrb[4].mxu1 %v3391_v0  ;;  %v5059_v50 = vsel %vm4910_vm5, %v3407_v16, %v893_v25  ;;  %v5063_v12 = vsel %vm4910_vm5, %v895_v23, %v896_v38  ;;  %v3395_v59 = vcombine.low %v4868_v8, %v4871_v6  ;;  %v903_v19 = vrot.slane %v4754_v29, 5  ;;  %v4391_v29 = vld [vmem:[%s5603_s1 + $0xb0] sm:$0xff]   ;;  %v5618_v38 = vld [vmem:[#allocation3_spill] sm:$0xff]  ;;  %v4394_v16 = vld [vmem:[%s5603_s1 + $0x1b8] sm:$0xff]  }
  0x71   : > { %3935 = vmatpush3.bf16.msra.mxu1 %v4379_v18  ;;  %3922 = vmatprep.mubr.bf16.mxu1 %v3392_v2  ;;  %v3415_v18 = vcombine.low %v5059_v50, %v5063_v12  ;;  %v3523_v2 = vcombine.low %v1875_v17, %v1878_v10  ;;  %v3524_v9 = vcombine.low %v1882_v42, %v1885_v37  ;;  %v3408_v8 = vrot.slane %v847_v4, 9  ;;  %v4407_v50 = vld [vmem:[%s4568_s24 + $0x48] sm:$0xff]   ;;  %v4408_v12 = vld [vmem:[%s5603_s1 + $0xe0] sm:$0xff]  }
  0x72   : > { %4061 = vmatpush3.bf16.msra.mxu0 %v4376_v48  ;;  %3936 = vmatprep.subr.bf16.mxu1 %v4381_v43  ;;  %v5039_v48 = vld [vmem:[%s4568_s24 + $0xc] sm:$0xe]  ;;  %v873_v22 = vsel %vm4910_vm5, %v3404_v34, %v872_v60  ;;  %v876_v26 = vsel %vm4910_vm5, %v874_v33, %v875_v7  ;;  %v886_v32 = vrot.slane %v4437_v30, 5  ;;  %v907_v44 = vrot.slane %v4790_v11, 5  ;;  %v5617_v60 = vld [vmem:[#allocation2_spill] sm:$0xff]  ;;  %v4393_v7 = vld [vmem:[%s5603_s1 + $0xb8] sm:$0xff]  }
  0x73   : > { %4062 = vmatprep.subr.bf16.mxu0 %v4380_v5  ;;  %v3405_v0 = vrot.slane %v5039_v48, 9  ;;  %v910_v21 = vrot.slane %v5617_v60, 5  ;;  %v1889_v11 = vsel %vm4910_vm5, %v3517_v63, %v1888_v52  ;;  %v1892_v3 = vsel %vm4910_vm5, %v5020_v35, %v1891_v57  ;;  %v849_v35 = vld [vmem:[%s4568_s24 + $0x48] sm:$0xe] }
  0x74   : > { %v909_v25 = vrot.slane %v907_v44, 4  ;;  %v3412_v55 = vcombine.low %v873_v22, %v876_v26  ;;  %v888_v52 = vrot.slane %v886_v32, 4  ;;  %v914_v61 = vrot.slane %v4838_v46, 5  ;;  %v5190_v26 = vld [vmem:[%s4568_s24 + $0x20] sm:$0x1] }
  0x75   : > { %4047 = vmatmul.mubr.bf16.gmra.mrb[4].mxu0 %v3521_v62  ;;  %3937 = vmatpush3.bf16.msra.mxu1 %v4381_v43  ;;  %v881_v43 = vrot.slane %v879_v58, 4  ;;  %v3406_v62 = vrot.slane %v5055_v45, 9  ;;  %v880_v46 = vsel %vm4910_vm5, %v3405_v0, %v879_v58  ;;  %v921_v10 = vrot.slane %v4871_v6, 5  ;;  %v4396_v6 = vld [vmem:[%s5603_s1 + $0xc0] sm:$0xff]  }
  0x76   : > { %4063 = vmatpush3.bf16.msra.mxu0 %v4380_v5  ;;  %4050 = vmatprep.mubr.bf16.mxu0 %v3522_v39  ;;  %v902_v5 = vrot.slane %v900_v13, 4  ;;  %v3409_v39 = vrot.slane %v848_v56, 9  ;;  %v5125_v33 = vsel %vm4910_vm5, %v909_v25, %v910_v21  ;;  %v916_v48 = vrot.slane %v914_v61, 4  ;;  %v4400_v56 = vld [vmem:[%s5603_s1 + $0x1c8] sm:$0xff]  }
  0x77   : > { %4064 = vmatprep.subr.bf16.mxu0 %v4382_v15  ;;  %3938 = vmatprep.subr.bf16.mxu1 %v4385_v49  ;;  %v883_v23 = vsel %vm4910_vm5, %v881_v43, %v882_v24  ;;  %v887_v17 = vsel %vm4910_vm5, %v3406_v62, %v886_v32  ;;  %v924_v58 = vrot.slane %v4880_v20, 5  ;;  %v3411_v37 = vrot.slane %v850_v41, 9  ;;  %v4399_v43 = vld [vmem:[%s5603_s1 + $0xc8] sm:$0xff]   ;;  %v3571_v62 = vld [vmem:[%s4568_s24 + $0x24] sm:$0xf] }
  0x78   : > { %3923 = vmatmul.mubr.bf16.gmra.mrb[8].mxu1 %v3393_v27  ;;  %v5100_v14 = vsel %vm4910_vm5, %v902_v5, %v903_v19  ;;  %v5121_v63 = vsel %vm4910_vm5, %v3409_v39, %v907_v44  ;;  %v917_v27 = vrot.slane %v5618_v38, 5  ;;  %v923_v45 = vrot.slane %v921_v10, 4  ;;  %v4398_v19 = vld [vmem:[%s5603_s1 + $0x1c0] sm:$0xff]   ;;  %v4402_v44 = vld [vmem:[%s5603_s1 + $0xd0] sm:$0xff]   ;;  %v5211_v25 = vld [vmem:[%s4568_s24 + $0x28] sm:$0xf] }
  0x79   : > { %3939 = vmatpush3.bf16.msra.mxu1 %v4385_v49  ;;  %3926 = vmatprep.mubr.bf16.mxu1 %v3394_v31  ;;  %v4438_v49 = vld [vmem:[%s4568_s24 + $0x20] sm:$0x1]  ;;  %v3417_v57 = vcombine.low %v5121_v63, %v5125_v33  ;;  %v3410_v31 = vrot.slane %v849_v35, 9  ;;  %v3413_v0 = vcombine.low %v880_v46, %v883_v23  ;;  %v4397_v5 = vld [vmem:[%s4568_s24 + $0x24] sm:$0xff]   ;;  %v4404_v39 = vld [vmem:[%s5603_s1 + $0x1d0] sm:$0xff]  }
  0x7a   : > { %4065 = vmatpush3.bf16.msra.mxu0 %v4382_v15  ;;  %3940 = vmatprep.subr.bf16.mxu1 %v4387_v40  ;;  %v5096_v15 = vsel %vm4910_vm5, %v3408_v8, %v900_v13  ;;  %v889_v47 = vrot.slane %v4438_v49, 5  ;;  %v5160_v24 = vsel %vm4910_vm5, %v916_v48, %v917_v27  ;;  %v5169_v13 = vsel %vm4910_vm5, %v3411_v37, %v921_v10  ;;  %v4403_v35 = vld [vmem:[%s4568_s24 + $0x3c] sm:$0xff]   ;;  %v5230_v46 = vld [vmem:[%s4568_s24 + $0x34] sm:$0xf]  ;;  %v5253_v37 = vld [vmem:[%s4568_s24 + $0x38] sm:$0x1] }
  0x7b   : > { %4066 = vmatprep.subr.bf16.mxu0 %v4386_v51  ;;  %v3416_v34 = vcombine.low %v5096_v15, %v5100_v14  ;;  %v5156_v54 = vsel %vm4910_vm5, %v3410_v31, %v914_v61  ;;  %v4406_v38 = vld [vmem:[%s5603_s1 + $0x1d8] sm:$0xff]   ;;  %v2405_v27 = vshll.u32 %v5211_v25, 16  ;;  %v2429_v41 = vshll.u32 %v5230_v46, 16 }
  0x7c   : > { %v890_v42 = vsel %vm4910_vm5, %v888_v52, %v889_v47  ;;  %v3418_v20 = vcombine.low %v5156_v54, %v5160_v24  ;;  %v2399_v52 = vshll.u32 %v3571_v62, 16  ;;  %v2433_v10 = vshrl.u32 %v5230_v46, 16  ;;  %v4412_v54 = vld [vmem:[%s5603_s1 + $0x1e8] sm:$0xff]   ;;  %v4414_v24 = vld [vmem:[%s5603_s1 + $0xf0] sm:$0xff]  }
  0x7d   : > { %4051 = vmatmul.mubr.bf16.gmra.mrb[8].mxu0 %v3523_v2  ;;  %3941 = vmatpush3.bf16.msra.mxu1 %v4387_v40  ;;  %v3525_v40 = vcombine.low %v1889_v11, %v1892_v3  ;;  %v3414_v2 = vcombine.low %v887_v17, %v890_v42  ;;  %v4405_v11 = vld [vmem:[%s5603_s1 + $0xd8] sm:$0xff]   ;;  %v5214_v3 = vld [vmem:[%s4568_s24 + $0x2c] sm:$0x1]  ;;  %v2820_v36 = vrot.slane %v5230_v46, 5 }
  0x7e   : > { %4067 = vmatpush3.bf16.msra.mxu0 %v4386_v51  ;;  %4054 = vmatprep.mubr.bf16.mxu0 %v3524_v9  ;;  %v4395_v51 = vld [vmem:[%s4568_s24 + $0x18] sm:$0xff]   ;;  %v2415_v48 = vshll.u32 %v5214_v3, 16  ;;  %v2816_v46 = vrot.slane %v5214_v3, 5 }
  0x7f   : > { %4068 = vmatprep.subr.bf16.mxu0 %v4388_v1  ;;  %3942 = vmatprep.subr.bf16.mxu1 %v4391_v29  ;;  %v5185_v9 = vld [vmem:[%s4568_s24 + $0x1c] sm:$0xf] }
  0x80   : > { %3927 = vmatmul.mubr.bf16.gmra.mrb[12].mxu1 %v3395_v59  ;;  %v5173_v59 = vsel %vm4910_vm5, %v923_v45, %v924_v58  ;;  %v2381_v30 = vshll.u32 %v5185_v9, 16  ;;  %v2385_v32 = vshrl.u32 %v5185_v9, 16  ;;  %v4410_v58 = vld [vmem:[%s5603_s1 + $0x1e0] sm:$0xff]  }
  0x81   : > { %3943 = vmatpush3.bf16.msra.mxu1 %v4391_v29  ;;  %3946 = vmatprep.mubr.bf16.mxu1 %v3412_v55  ;;  %v3419_v4 = vcombine.low %v5169_v13, %v5173_v59  ;;  %v4401_v29 = vld [vmem:[%s4568_s24 + $0x30] sm:$0xff]   ;;  %v2396_v55 = vshrl.u32 %v3571_v62, 16  ;;  %v5297_v62 = vrot.slane %v2415_v48, 5 }
  0x82   : > { %4069 = vmatpush3.bf16.msra.mxu0 %v4388_v1  ;;  %3944 = vmatprep.subr.bf16.mxu1 %v4393_v7  ;;  %v3568_v1 = vld [vmem:[%s4568_s24 + $0x18] sm:$0xf]  ;;  %v5208_v49 = vrot.slane %v2381_v30, 5  ;;  %v2387_v47 = vrot.slane %v2385_v32, 4 }
  0x83   : > { %4070 = vmatprep.subr.bf16.mxu0 %v4392_v53  ;;  %v2372_v22 = vshrl.u32 %v3568_v1, 16  ;;  %v2375_v8 = vshll.u32 %v3568_v1, 16  ;;  %v2398_v14 = vrot.slane %v2396_v55, 4  ;;  %v4413_v1 = vld [vmem:[%s4568_s24 + $0x60] sm:$0xff]   ;;  %v4417_v55 = vld [vmem:[%s5603_s1 + $0xf8] sm:$0xff]  }
  0x85   : > { %4055 = vmatmul.mubr.bf16.gmra.mrb[12].mxu0 %v3525_v40  ;;  %3945 = vmatpush3.bf16.msra.mxu1 %v4393_v7  ;;  %v2374_v60 = vrot.slane %v2372_v22, 4  ;;  %v2377_v21 = vrot.slane %v2375_v8, 5  ;;  %v2391_v7 = vshll.u32 %v5190_v26, 16  ;;  %v2409_v40 = vshrl.u32 %v5211_v25, 16 }
  0x86   : > { %4071 = vmatpush3.bf16.msra.mxu0 %v4392_v53  ;;  %4074 = vmatprep.mubr.bf16.mxu0 %v4395_v51  ;;  %v3574_v53 = vld [vmem:[%s4568_s24 + $0x30] sm:$0xf]  ;;  %v5250_v51 = vrot.slane %v2405_v27, 5  ;;  %v5268_v8 = vrot.slane %v2429_v41, 5  ;;  %v5315_v27 = vld [vmem:[%s4568_s24 + $0x44] sm:$0x1] }
  0x87   : > { %4072 = vmatprep.subr.bf16.mxu0 %v4394_v16  ;;  %3962 = vmatprep.subr.bf16.mxu1 %v4396_v6  ;;  %v2378_v61 = vor.u32 %v2377_v21, %v2374_v60  ;;  %v2420_v31 = vshrl.u32 %v3574_v53, 16  ;;  %v5237_v15 = vrot.slane %v2391_v7, 5  ;;  %v2423_v17 = vshll.u32 %v3574_v53, 16 }
  0x88   : > { %3947 = vmatmul.mubr.bf16.vlgmr.msra.gmra.mrb[0].mxu1 %v3413_v0  ;;  %v2411_v42 = vrot.slane %v2409_v40, 4  ;;  %v3577_v0 = vld [vmem:[%s4568_s24 + $0x3c] sm:$0xf] }
  0x89   : > { %3963 = vmatpush3.bf16.msra.mxu1 %v4396_v6  ;;  %3950 = vmatprep.mubr.bf16.mxu1 %v3414_v2  ;;  %v5243_v23 = vrot.slane %v2378_v61, 4  ;;  %v5257_v45 = vrot.slane %v2420_v31, 4  ;;  %v2425_v22 = vrot.slane %v2423_v17, 5  ;;  %v2444_v32 = vshrl.u32 %v3577_v0, 16  ;;  %v4415_v31 = vld [vmem:[%s4568_s24 + $0x6c] sm:$0xff]  }
  0x8a   : > { %4073 = vmatpush3.bf16.msra.mxu0 %v4394_v16  ;;  %3964 = vmatprep.subr.bf16.mxu1 %v4399_v43  ;;  %v4411_v16 = vld [vmem:[%s5603_s1 + $0xe8] sm:$0xff]   ;;  %v2412_v30 = vor.u32 %v2411_v42, %v5250_v51  ;;  %v2447_v63 = vshll.u32 %v3577_v0, 16 }
  0x8b   : > { %4090 = vmatprep.subr.bf16.mxu0 %v4398_v19  ;;  %v2426_v53 = vor.u32 %v2425_v22, %v5257_v45  ;;  %v2446_v40 = vrot.slane %v2444_v32, 4  ;;  %v4420_v45 = vld [vmem:[%s4568_s24 + $0x18] sm:$0xff]   ;;  %v5353_v32 = vld [vmem:[%s4568_s24 + $0x64] sm:$0xf] }
  0x8c   : > { %v5308_v61 = vrot.slane %v2412_v30, 4  ;;  %v3586_v30 = vld [vmem:[%s4568_s24 + $0x60] sm:$0xf] }
  0x8d   : > { %4075 = vmatmul.mubr.bf16.vlgmr.msra.gmra.mrb[0].mxu0 %v4397_v5  ;;  %3965 = vmatpush3.bf16.msra.mxu1 %v4399_v43  ;;  %v5261_v43 = vld [vmem:[%s4568_s24 + $0x40] sm:$0xf]  ;;  %v2435_v5 = vrot.slane %v2433_v10, 4  ;;  %v2427_v41 = vrot.slane %v2426_v53, 4  ;;  %v2463_v10 = vshll.u32 %v5315_v27, 16 }
  0x8e   : > { %4091 = vmatpush3.bf16.msra.mxu0 %v4398_v19  ;;  %4078 = vmatprep.mubr.bf16.mxu0 %v4401_v29  ;;  %v4409_v19 = vld [vmem:[%s4568_s24 + $0x54] sm:$0xff]   ;;  %v2439_v29 = vshll.u32 %v5253_v37, 16  ;;  %v2453_v33 = vshll.u32 %v5261_v43, 16  ;;  %v5381_v53 = vld [vmem:[%s4568_s24 + $0x5c] sm:$0x1] }
  0x8f   : > { %4092 = vmatprep.subr.bf16.mxu0 %v4400_v56  ;;  %3966 = vmatprep.subr.bf16.mxu1 %v4402_v44 }
  0x90   : > { %3951 = vmatmul.mubr.bf16.gmra.mrb[4].mxu1 %v3415_v18  ;;  %v2388_v18 = vor.u32 %v2387_v47, %v5208_v49 }
  0x91   : > { %3967 = vmatpush3.bf16.msra.mxu1 %v4402_v44  ;;  %3954 = vmatprep.mubr.bf16.mxu1 %v3416_v34  ;;  %v2401_v34 = vrot.slane %v2399_v52, 5  ;;  %v5279_v44 = vld [vmem:[%s4568_s24 + $0x4c] sm:$0xf] }
  0x92   : > { %4093 = vmatpush3.bf16.msra.mxu0 %v4400_v56  ;;  %3968 = vmatprep.subr.bf16.mxu1 %v4405_v11  ;;  %v5255_v6 = vrot.slane %v2388_v18, 4  ;;  %v3580_v56 = vld [vmem:[%s4568_s24 + $0x48] sm:$0xf]  ;;  %v2477_v7 = vshll.u32 %v5279_v44, 16  ;;  %v2481_v47 = vshrl.u32 %v5279_v44, 16  ;;  %v4419_v52 = vld [vmem:[%s4568_s24 + $0xc] sm:$0xff]  }
  0x93   : > { %4094 = vmatprep.subr.bf16.mxu0 %v4404_v39  ;;  %v2402_v2 = vor.u32 %v2401_v34, %v2398_v14 }
  0x94   : > { %v2394_v60 = vsel %vm4613_vm2, %v5255_v6, %v5237_v15  ;;  %v5321_v15 = vld [vmem:[%s4568_s24 + $0x50] sm:$0x1]  ;;  %v5326_v48 = vrot.slane %v2477_v7, 5  ;;  %v5336_v6 = vld [vmem:[%s4568_s24 + $0x58] sm:$0xf] }
  0x95   : > { %4079 = vmatmul.mubr.bf16.gmra.mrb[4].mxu0 %v4403_v35  ;;  %3969 = vmatpush3.bf16.msra.mxu1 %v4405_v11  ;;  %v5295_v21 = vrot.slane %v2402_v2, 4  ;;  %v2471_v11 = vshll.u32 %v3580_v56, 16  ;;  %v2436_v35 = vor.u32 %v2435_v5, %v5268_v8  ;;  %v2487_v42 = vshll.u32 %v5321_v15, 16 }
  0x96   : > { %4095 = vmatpush3.bf16.msra.mxu0 %v4404_v39  ;;  %4082 = vmatprep.mubr.bf16.mxu0 %v4407_v50  ;;  %v2468_v39 = vshrl.u32 %v3580_v56, 16  ;;  %v2449_v50 = vrot.slane %v2447_v63, 5  ;;  %v2418_v2 = vsel %vm4613_vm2, %v5308_v61, %v5297_v62  ;;  %v2432_v63 = vsel %vm4613_vm2, %v2427_v41, %v5268_v8  ;;  %v5378_v61 = vld [vmem:[%s5603_s1 + $0x210] sm:$0xff]  }
  0x97   : > { %4096 = vmatprep.subr.bf16.mxu0 %v4406_v38  ;;  %3970 = vmatprep.subr.bf16.mxu1 %v4408_v12  ;;  %v2473_v34 = vrot.slane %v2471_v11, 5  ;;  %v2437_v13 = vrot.slane %v2436_v35, 4  ;;  %v2408_v0 = vsel %vm4613_vm2, %v5295_v21, %v5250_v51  ;;  %v4423_v51 = vld [vmem:[%s4568_s24 + $0x24] sm:$0xff]   ;;  %v2505_v56 = vshrl.u32 %v5336_v6, 16 }
  0x98   : > { %3955 = vmatmul.mubr.bf16.gmra.mrb[8].mxu1 %v3417_v57  ;;  %v2457_v57 = vshrl.u32 %v5261_v43, 16  ;;  %v2470_v14 = vrot.slane %v2468_v39, 4  ;;  %v2450_v59 = vor.u32 %v2449_v50, %v2446_v40  ;;  %v5371_v8 = vrot.slane %v2487_v42, 5  ;;  %v3589_v50 = vld [vmem:[%s4568_s24 + $0x6c] sm:$0xf] }
  0x99   : > { %3971 = vmatpush3.bf16.msra.mxu1 %v4408_v12  ;;  %3958 = vmatprep.mubr.bf16.mxu1 %v3418_v20  ;;  %v2384_v20 = vsel %vm4613_vm2, %v5243_v23, %v5208_v49  ;;  %v4416_v49 = vld [vmem:[%s5603_s1 + $0x1f0] sm:$0xff]   ;;  %v5317_v12 = vrot.slane %v2453_v33, 5  ;;  %v4418_v23 = vld [vmem:[%s5603_s1 + $0x1f8] sm:$0xff]   ;;  %v5359_v33 = vrot.slane %v2463_v10, 5  ;;  %v2516_v21 = vshrl.u32 %v3586_v30, 16 }
  0x9a   : > { %4097 = vmatpush3.bf16.msra.mxu0 %v4406_v38  ;;  %3972 = vmatprep.subr.bf16.mxu1 %v4411_v16  ;;  %v5312_v38 = vrot.slane %v2439_v29, 5  ;;  %v2459_v18 = vrot.slane %v2457_v57, 4  ;;  %v3592_v17 = vcombine.low %v2384_v20, %v2394_v60  ;;  %v2501_v57 = vshll.u32 %v5336_v6, 16 }
  0x9b   : > { %4098 = vmatprep.subr.bf16.mxu0 %v4410_v58  ;;  %v2451_v20 = vrot.slane %v2450_v59, 4  ;;  %v2519_v62 = vshll.u32 %v3586_v30, 16  ;;  %v2525_v39 = vshll.u32 %v5353_v32, 16  ;;  %v2529_v11 = vshrl.u32 %v5353_v32, 16 }
  0x9c   : > { %v5383_v35 = vrot.slane %v2501_v57, 5  ;;  %v2540_v59 = vshrl.u32 %v3589_v50, 16 }
  0x9d   : > { %4083 = vmatmul.mubr.bf16.gmra.mrb[8].mxu0 %v4409_v19  ;;  %3973 = vmatpush3.bf16.msra.mxu1 %v4411_v16  ;;  %v2483_v16 = vrot.slane %v2481_v47, 4  ;;  %v4421_v19 = vld [vmem:[%s5603_s1 + $0x200] sm:$0xff]   ;;  %v2456_v41 = vsel %vm4613_vm2, %v2451_v20, %v5317_v12 }
  0x9e   : > { %4099 = vmatpush3.bf16.msra.mxu0 %v4410_v58  ;;  %4086 = vmatprep.mubr.bf16.mxu0 %v4413_v1  ;;  %v3583_v58 = vld [vmem:[%s4568_s24 + $0x54] sm:$0xf]  ;;  %v2474_v1 = vor.u32 %v2473_v34, %v2470_v14  ;;  %v2521_v14 = vrot.slane %v2519_v62, 5  ;;  %v5390_v34 = vrot.slane %v2525_v39, 5 }
  0x9f   : > { %4100 = vmatprep.subr.bf16.mxu0 %v4412_v54  ;;  %3974 = vmatprep.subr.bf16.mxu1 %v4414_v24  ;;  %v2484_v22 = vor.u32 %v2483_v16, %v5326_v48  ;;  %v2492_v5 = vshrl.u32 %v3583_v58, 16  ;;  %v2495_v29 = vshll.u32 %v3583_v58, 16  ;;  %v2531_v16 = vrot.slane %v2529_v11, 4  ;;  %v5400_v58 = vld [vmem:[%s4568_s24 + $0x68] sm:$0x1] }
  0xa0   : > { %3959 = vmatmul.mubr.bf16.gmra.mrb[12].mxu1 %v3419_v4  ;;  %v2460_v4 = vor.u32 %v2459_v18, %v5317_v12  ;;  %v2475_v7 = vrot.slane %v2474_v1, 4  ;;  %v5388_v18 = vld [vmem:[%s4568_s24 + $0x70] sm:$0xf]  ;;  %v5409_v12 = vld [vmem:[%s5603_s1 + $0x218] sm:$0xff]   ;;  %v2511_v1 = vshll.u32 %v5381_v53, 16 }
  0xa1   : > { %3975 = vmatpush3.bf16.msra.mxu1 %v4414_v24  ;;  %3978 = vmatprep.mubr.bf16.mxu1 %v4419_v52  ;;  %v2442_v24 = vsel %vm4613_vm2, %v2437_v13, %v5312_v38  ;;  %v2485_v47 = vrot.slane %v2484_v22, 4  ;;  %v3593_v52 = vcombine.low %v2408_v0, %v2418_v2  ;;  %v2507_v38 = vrot.slane %v2505_v56, 4  ;;  %v4427_v13 = vld [vmem:[%s4568_s24 + $0x3c] sm:$0xff]   ;;  %v3612_v11 = vld [vmem:[%s4568_s24 + $0x48] sm:$0xe] }
  0xa2   : > { %4101 = vmatpush3.bf16.msra.mxu0 %v4412_v54  ;;  %3976 = vmatprep.subr.bf16.mxu1 %v4417_v55  ;;  %v5366_v54 = vld [vmem:[%s5603_s1 + $0x208] sm:$0xff]   ;;  %v2461_v60 = vrot.slane %v2460_v4, 4  ;;  %v3594_v40 = vcombine.low %v2432_v63, %v2442_v24  ;;  %v2543_v4 = vshll.u32 %v3589_v50, 16  ;;  %v2549_v42 = vshll.u32 %v5388_v18, 16 }
  0xa3   : > { %4102 = vmatprep.subr.bf16.mxu0 %v4416_v49  ;;  %v2480_v0 = vsel %vm4613_vm2, %v2475_v7, %v5326_v48  ;;  %v2508_v2 = vor.u32 %v2507_v38, %v5383_v35  ;;  %v2513_v20 = vrot.slane %v2511_v1, 5  ;;  %v4428_v7 = vld [vmem:[%s4568_s24 + $0x48] sm:$0xff]  }
  0xa4   : > { %v2545_v63 = vrot.slane %v2543_v4, 5  ;;  %v4430_v50 = vld [vmem:[%s5603_s1 + $0x228] sm:$0xff]  }
  0xa5   : > { %4087 = vmatmul.mubr.bf16.gmra.mrb[12].mxu0 %v4415_v31  ;;  %3977 = vmatpush3.bf16.msra.mxu1 %v4417_v55  ;;  %v2497_v55 = vrot.slane %v2495_v29, 5  ;;  %v2518_v31 = vrot.slane %v2516_v21, 4  ;;  %v2535_v29 = vshll.u32 %v5400_v58, 16  ;;  %v2509_v24 = vrot.slane %v2508_v2, 4  ;;  %v4429_v21 = vld [vmem:[%s5603_s1 + $0x220] sm:$0xff]  }
  0xa6   : > { %4103 = vmatpush3.bf16.msra.mxu0 %v4416_v49  ;;  %4106 = vmatprep.mubr.bf16.mxu0 %v3592_v17  ;;  %v2494_v49 = vrot.slane %v2492_v5, 4  ;;  %v4424_v17 = vld [vmem:[%s4568_s24 + $0x30] sm:$0xff]   ;;  %v2532_v5 = vor.u32 %v2531_v16, %v5390_v34  ;;  %v3614_v2 = vld [vmem:[%s4568_s24 + $0x60] sm:$0xe] }
  0xa7   : > { %4104 = vmatprep.subr.bf16.mxu0 %v4418_v23  ;;  %4154 = vmatprep.subr.bf16.mxu1 %v4421_v19  ;;  %v2522_v22 = vor.u32 %v2521_v14, %v2518_v31  ;;  %v3620_v31 = vrot.slane %v3612_v11, 9 }
  0xa8   : > { %3979 = vmatmul.mubr.bf16.vlgmr.msra.gmra.mrb[0].mxu1 %v4420_v45  ;;  %v2498_v10 = vor.u32 %v2497_v55, %v2494_v49  ;;  %v2553_v45 = vshrl.u32 %v5388_v18, 16  ;;  %v2533_v39 = vrot.slane %v2532_v5, 4  ;;  %v4431_v49 = vld [vmem:[%s4568_s24 + $0x54] sm:$0xff]  }
  0xa9   : > { %4162 = vmatpush3.bf16.msra.mxu1 %v4421_v19  ;;  %3982 = vmatprep.mubr.bf16.mxu1 %v4423_v51  ;;  %v2542_v51 = vrot.slane %v2540_v59, 4  ;;  %v2523_v62 = vrot.slane %v2522_v22, 4 }
  0xaa   : > { %4105 = vmatpush3.bf16.msra.mxu0 %v4418_v23  ;;  %4155 = vmatprep.subr.bf16.mxu1 %v5366_v54  ;;  %v2466_v23 = vsel %vm4613_vm2, %v2461_v60, %v5359_v33  ;;  %v2499_v30 = vrot.slane %v2498_v10, 4  ;;  %v5424_v33 = vrot.slane %v2549_v42, 5  ;;  %v2555_v57 = vrot.slane %v2553_v45, 4  ;;  %v5429_v60 = vld [vmem:[%s4568_s24 + $0x74] sm:$0x1] }
  0xab   : > { %4122 = vmatprep.subr.bf16.mxu0 %v4421_v19  ;;  %v3595_v48 = vcombine.low %v2456_v41, %v2466_v23  ;;  %v2546_v55 = vor.u32 %v2545_v63, %v2542_v51  ;;  %v2559_v38 = vshll.u32 %v5429_v60, 16  ;;  %v2528_v16 = vsel %vm4613_vm2, %v2523_v62, %v5390_v34  ;;  %v4434_v51 = vld [vmem:[%s5603_s1 + $0x238] sm:$0xff]  }
  0xac   : > { %v2809_v10 = vrot.slane %v5190_v26, 5  ;;  %v3613_v26 = vld [vmem:[%s4568_s24 + $0x54] sm:$0xe]  ;;  %v2848_v45 = vrot.slane %v5353_v32, 5  ;;  %v2813_v63 = vrot.slane %v5211_v25, 5  ;;  %v2858_v3 = vrot.slane %v5429_v60, 5 }
  0xad   : > { %4107 = vmatmul.mubr.bf16.vlgmr.msra.gmra.mrb[0].mxu0 %v3593_v52  ;;  %4163 = vmatpush3.bf16.msra.mxu1 %v5366_v54  ;;  %v2556_v52 = vor.u32 %v2555_v57, %v5424_v33  ;;  %v2561_v4 = vrot.slane %v2559_v38, 5  ;;  %v3622_v57 = vrot.slane %v3614_v2, 9 }
  0xae   : > { %4123 = vmatpush3.bf16.msra.mxu0 %v4421_v19  ;;  %4110 = vmatprep.mubr.bf16.mxu0 %v3594_v40  ;;  %v2490_v19 = vsel %vm4613_vm2, %v2485_v47, %v5371_v8  ;;  %v2834_v8 = vrot.slane %v5279_v44, 5  ;;  %v2806_v47 = vrot.slane %v5185_v9, 5  ;;  %v2504_v44 = vsel %vm4613_vm2, %v2499_v30, %v5383_v35  ;;  %v3608_v40 = vld [vmem:[%s4568_s24 + $0x18] sm:$0xe]  ;;  %v3609_v30 = vld [vmem:[%s4568_s24 + $0x24] sm:$0xe] }
  0xaf   : > { %4124 = vmatprep.subr.bf16.mxu0 %v5366_v54  ;;  %4156 = vmatprep.subr.bf16.mxu1 %v5378_v61  ;;  %v3596_v56 = vcombine.low %v2480_v0, %v2490_v19  ;;  %v2514_v9 = vsel %vm4613_vm2, %v2509_v24, %v2513_v20  ;;  %v2837_v35 = vrot.slane %v5321_v15, 5  ;;  %v3616_v41 = vrot.slane %v3608_v40, 9  ;;  %v4433_v0 = vld [vmem:[%s5603_s1 + $0x230] sm:$0xff]   ;;  %v4432_v19 = vld [vmem:[%s4568_s24 + $0x60] sm:$0xff]  }
  0xb0   : > { %3983 = vmatmul.mubr.bf16.gmra.mrb[4].mxu1 %v4424_v17  ;;  %v2836_v14 = vrot.slane %v2834_v8, 4  ;;  %v2841_v17 = vrot.slane %v5336_v6, 5  ;;  %v2808_v23 = vrot.slane %v2806_v47, 4  ;;  %v3597_v15 = vcombine.low %v2504_v44, %v2514_v9 }
  0xb1   : > { %4164 = vmatpush3.bf16.msra.mxu1 %v5378_v61  ;;  %3986 = vmatprep.mubr.bf16.mxu1 %v4427_v13  ;;  %v2547_v13 = vrot.slane %v2546_v55, 4  ;;  %v2557_v59 = vrot.slane %v2556_v52, 4  ;;  %v2835_v42 = vsel %vm4910_vm5, %v3620_v31, %v2834_v8  ;;  %v2807_v22 = vsel %vm4910_vm5, %v3616_v41, %v2806_v47  ;;  %v3610_v8 = vld [vmem:[%s4568_s24 + $0x30] sm:$0xe] }
  0xb2   : > { %4125 = vmatpush3.bf16.msra.mxu0 %v5366_v54  ;;  %4157 = vmatprep.subr.bf16.mxu1 %v5409_v12  ;;  %v2537_v54 = vrot.slane %v2535_v29, 5  ;;  %v2838_v6 = vsel %vm4910_vm5, %v2836_v14, %v2837_v35  ;;  %v2843_v1 = vrot.slane %v2841_v17, 4  ;;  %v2810_v5 = vsel %vm4910_vm5, %v2808_v23, %v2809_v10  ;;  %v3611_v14 = vld [vmem:[%s4568_s24 + $0x3c] sm:$0xe] }
  0xb3   : > { %4126 = vmatprep.subr.bf16.mxu0 %v5378_v61  ;;  %v2552_v32 = vsel %vm4613_vm2, %v2547_v13, %v5424_v33  ;;  %v2562_v29 = vsel %vm4613_vm2, %v2557_v59, %v2561_v4  ;;  %v2851_v24 = vrot.slane %v5400_v58, 5  ;;  %v3617_v33 = vrot.slane %v3609_v30, 9 }
  0xb4   : > { %v3624_v62 = vcombine.low %v2807_v22, %v2810_v5  ;;  %v2855_v58 = vrot.slane %v5388_v18, 5  ;;  %v3618_v47 = vrot.slane %v3610_v8, 9  ;;  %v2822_v44 = vrot.slane %v2820_v36, 4 }
  0xb5   : > { %4111 = vmatmul.mubr.bf16.gmra.mrb[4].mxu0 %v3595_v48  ;;  %4165 = vmatpush3.bf16.msra.mxu1 %v5409_v12  ;;  %v3628_v48 = vcombine.low %v2835_v42, %v2838_v6  ;;  %v2814_v40 = vsel %vm4910_vm5, %v3617_v33, %v2813_v63  ;;  %v2830_v41 = vrot.slane %v5315_v27, 5 }
  0xb6   : > { %4127 = vmatpush3.bf16.msra.mxu0 %v5378_v61  ;;  %4114 = vmatprep.mubr.bf16.mxu0 %v3596_v56  ;;  %v2538_v61 = vsel %vm4613_vm2, %v2533_v39, %v2537_v54  ;;  %v2850_v56 = vrot.slane %v2848_v45, 4  ;;  %v2815_v39 = vrot.slane %v2813_v63, 4  ;;  %v2849_v54 = vsel %vm4910_vm5, %v3622_v57, %v2848_v45 }
  0xb7   : > { %4128 = vmatprep.subr.bf16.mxu0 %v5409_v12  ;;  %4158 = vmatprep.subr.bf16.mxu1 %v4429_v21  ;;  %v3598_v34 = vcombine.low %v2528_v16, %v2538_v61  ;;  %v2857_v38 = vrot.slane %v2855_v58, 4 }
  0xb8   : > { %3987 = vmatmul.mubr.bf16.gmra.mrb[8].mxu1 %v4428_v7  ;;  %v2852_v11 = vsel %vm4910_vm5, %v2850_v56, %v2851_v24  ;;  %v3615_v7 = vld [vmem:[%s4568_s24 + $0x6c] sm:$0xe]  ;;  %v2817_v9 = vsel %vm4910_vm5, %v2815_v39, %v2816_v46  ;;  %s3363_s24 = sshll.u32 %s4461_s12, 3  ;;  %s5634_s12 = smov (!%p211_p7, %s4461_s12), 1 }
  0xb9   : > { %4166 = vmatpush3.bf16.msra.mxu1 %v4429_v21  ;;  %3990 = vmatprep.mubr.bf16.mxu1 %v4431_v49  ;;  %v2823_v49 = vrot.slane %v5253_v37, 5  ;;  %v3630_v18 = vcombine.low %v2849_v54, %v2852_v11  ;;  %v3623_v52 = vrot.slane %v3615_v7, 9  ;;  %v2821_v37 = vsel %vm4910_vm5, %v3618_v47, %v2820_v36  ;;  %p201_p6 = scmp.lt.s32.totalorder %s3363_s24, 15  ;;  %s214_s23 = sadd.s32 %s3367_s22, %s5634_s12 }
  0xba   : > { %4129 = vmatpush3.bf16.msra.mxu0 %v5409_v12  ;;  %4159 = vmatprep.subr.bf16.mxu1 %v4430_v50  ;;  %v2844_v12 = vrot.slane %v5381_v53, 5  ;;  %v3621_v53 = vrot.slane %v3613_v26, 9  ;;  %v3625_v60 = vcombine.low %v2814_v40, %v2817_v9  ;;  %v2859_v16 = vsel %vm4910_vm5, %v2857_v38, %v2858_v3  ;;  %s3368_s25 = sshll.u32 %s214_s23, 1 }
  0xbb   : > { %4130 = vmatprep.subr.bf16.mxu0 %v4429_v21  ;;  %v2824_v31 = vsel %vm4910_vm5, %v2822_v44, %v2823_v49  ;;  %v2856_v35 = vsel %vm4910_vm5, %v3623_v52, %v2855_v58  ;;  %s5632_s24 = smov (!%p201_p6, %s3363_s24), 15  ;;  %s216_s28 = scalar_lea.vmem %s5605_s3, %s3368_s25 }
  0xbc   : > { %v2845_v20 = vsel %vm4910_vm5, %v2843_v1, %v2844_v12  ;;  %v2842_v25 = vsel %vm4910_vm5, %v3621_v53, %v2841_v17  ;;  %v3626_v61 = vcombine.low %v2821_v37, %v2824_v31  ;;  %v3631_v23 = vcombine.low %v2856_v35, %v2859_v16  ;;  %s3364_s8 = sshll.u32 %s5632_s24, 1 }
  0xbd   : > { %4115 = vmatmul.mubr.bf16.gmra.mrb[8].mxu0 %v3597_v15  ;;  %4167 = vmatpush3.bf16.msra.mxu1 %v4430_v50  ;;  %v3629_v55 = vcombine.low %v2842_v25, %v2845_v20  ;;  %s205_s10 = sadd.s32 %s3365_s9, %s3364_s8 }
  0xbe   : > { %4131 = vmatpush3.bf16.msra.mxu0 %v4429_v21  ;;  %4118 = vmatprep.mubr.bf16.mxu0 %v3598_v34  ;;  %v3599_v21 = vcombine.low %v2552_v32, %v2562_v29  ;;  %s3366_s11 = sshll.u32 %s205_s10, 2 }
  0xbf   : > { %4132 = vmatprep.subr.bf16.mxu0 %v4430_v50  ;;  %4160 = vmatprep.subr.bf16.mxu1 %v4433_v0  ;;  %s5543_s21 = scalar_lea.vmem %s5604_s2, %s3366_s11 }
  0xc0   : > { %3991 = vmatmul.mubr.bf16.gmra.mrb[12].mxu1 %v4432_v19 }
  0xc1   : > { %4168 = vmatpush3.bf16.msra.mxu1 %v4433_v0  ;;  %4146 = vmatprep.mubr.bf16.mxu1 %v3628_v48 }
  0xc2   : > { %4133 = vmatpush3.bf16.msra.mxu0 %v4430_v50  ;;  %4161 = vmatprep.subr.bf16.mxu1 %v4434_v51  ;;  %v2827_v50 = vrot.slane %v5261_v43, 5  ;;  %v3619_v43 = vrot.slane %v3611_v14, 9 }
  0xc3   : > { %4134 = vmatprep.subr.bf16.mxu0 %v4433_v0 }
  0xc4   : > { %v2829_v17 = vrot.slane %v2827_v50, 4  ;;  %v2828_v10 = vsel %vm4910_vm5, %v3619_v43, %v2827_v50 }
  0xc5   : > { %4119 = vmatmul.mubr.bf16.gmra.mrb[12].mxu0 %v3599_v21  ;;  %4169 = vmatpush3.bf16.msra.mxu1 %v4434_v51 }
  0xc6   : > { %4135 = vmatpush3.bf16.msra.mxu0 %v4433_v0  ;;  %4138 = vmatprep.mubr.bf16.mxu0 %v3624_v62  ;;  %v2831_v15 = vsel %vm4910_vm5, %v2829_v17, %v2830_v41 }
  0xc7   : > { %4136 = vmatprep.subr.bf16.mxu0 %v4434_v51  ;;  %v3627_v13 = vcombine.low %v2828_v10, %v2831_v15 }
  0xc8   : > { %4147 = vmatmul.mubr.bf16.vlgmr.msra.gmra.mrb[16].mxu1 %v3629_v55 }
  0xc9   : > { %4150 = vmatprep.mubr.bf16.mxu1 %v3630_v18 }
  0xca   : > { %4137 = vmatpush3.bf16.msra.mxu0 %v4434_v51 }
  0xcd   : > { %4139 = vmatmul.mubr.bf16.vlgmr.msra.gmra.mrb[0].mxu0 %v3625_v60 }
  0xce   : > { %4142 = vmatprep.mubr.bf16.mxu0 %v3626_v61 }
  0xd0   : > { %4151 = vmatmul.mubr.bf16.gmra.mrb[20].mxu1 %v3631_v23 }
  0xd5   : > { %4143 = vmatmul.mubr.bf16.gmra.mrb[4].mxu0 %v3627_v13 }
 0x17b   : > { %v3980_v59 = vpop.f32.mrb[0].mxu1 }
 0x17c   : > { %v1301_v4 = vpop.f32.mrb[1].mxu1 }
 0x17d   : > { %v3981_v34 = vpop.f32.mrb[2].mxu1 }
 0x17e   : > { %v1304_v42 = vpop.f32.mrb[3].mxu1 }
 0x183   : > { %v5524_v6 = vpop.f32.mrb[4].mxu1 }
 0x184   : > { %v5526_v27 = vpop.f32.mrb[5].mxu1 }
 0x185   : > { %v5528_v26 = vpop.f32.mrb[6].mxu1 }
 0x186   : > { %v5530_v45 = vpop.f32.mrb[7].mxu1 }
 0x18b   : > { %v3988_v0 = vpop.f32.mrb[8].mxu1 }
 0x18c   : > { %v1333_v2 = vpop.f32.mrb[9].mxu1 }
 0x18d   : > { %v3989_v28 = vpop.f32.mrb[10].mxu1 }
 0x18e   : > { %v1336_v1 = vpop.f32.mrb[11].mxu1 }
 0x190   : > { %v4116_v12 = vpop.f32.mrb[8].mxu0 }
 0x191   : > { %v4178_v19 = vadd.f32 %v4116_v12, %v3988_v0  ;;  %v2725_v22 = vpop.f32.mrb[9].mxu0 }
 0x192   : > { %v4180_v5 = vadd.f32 %v2725_v22, %v1333_v2  ;;  %v4117_v32 = vpop.f32.mrb[10].mxu0 }
 0x193   : > { %v4182_v29 = vadd.f32 %v4117_v32, %v3989_v28  ;;  %v2728_v48 = vpop.f32.mrb[11].mxu0  ;;  %v3992_v30 = vpop.f32.mrb[12].mxu1 }
 0x194   : > { %v4184_v53 = vadd.f32 %v2728_v48, %v1336_v1  ;;  %v1349_v51 = vpop.f32.mrb[13].mxu1 }
 0x195   : > { %v3993_v63 = vpop.f32.mrb[14].mxu1 }
 0x196   : > { %v1352_v57 = vpop.f32.mrb[15].mxu1 }
 0x198   : > { %v4120_v56 = vpop.f32.mrb[12].mxu0 }
 0x199   : > { %v4186_v24 = vadd.f32 %v4120_v56, %v3992_v30  ;;  %v2741_v36 = vpop.f32.mrb[13].mxu0 }
 0x19a   : > { %v4188_v33 = vadd.f32 %v2741_v36, %v1349_v51  ;;  %v4121_v20 = vpop.f32.mrb[14].mxu0 }
 0x19b   : > { %v4190_v8 = vadd.f32 %v4121_v20, %v3993_v63  ;;  %v2744_v21 = vpop.f32.mrb[15].mxu0  ;;  %v4148_v62 = vpop.f32.mrb[16].mxu1 }
 0x19c   : > { %v4192_v25 = vadd.f32 %v2744_v21, %v1352_v57  ;;  %v5534_v58 = vadd.f32 %v4178_v19, %v4148_v62  ;;  %v3022_v39 = vpop.f32.mrb[17].mxu1 }
 0x19d   : > { %v5536_v46 = vadd.f32 %v4180_v5, %v3022_v39  ;;  %v4149_v54 = vpop.f32.mrb[18].mxu1 }
 0x19e   : > { %v5538_v11 = vadd.f32 %v4182_v29, %v4149_v54  ;;  %v3025_v7 = vpop.f32.mrb[19].mxu1 }
 0x19f   : > { %v5545_v47 = vadd.f32 %v4184_v53, %v3025_v7  ;;  %v3178_v21 = vmul.f32 %v5536_v46, %v5536_v46  ;;  %v3180_v7 = vmul.f32 %v5534_v58, %v5534_v58 }
 0x1a0   : > { %v4140_v44 = vpop.f32.mrb[0].mxu0  ;;  %v3703_v49 = vpack.c.bf16 %v5538_v11, %v5534_v58 }
 0x1a1   : > { %v4170_v55 = vadd.f32 %v4140_v44, %v3980_v59  ;;  %v2990_v18 = vpop.f32.mrb[1].mxu0  ;;  %v3698_v52 = vpack.c.bf16 %v5545_v47, %v5536_v46 }
 0x1a2   : > { %v4171_v38 = vadd.f32 %v2990_v18, %v1301_v4  ;;  %v4141_v3 = vpop.f32.mrb[2].mxu0  ;;  %3719 = vst [vmem:[%s5543_s21 + $0x28] sm:$0xff] %v3703_v49  }
 0x1a3   : > { %v4172_v40 = vadd.f32 %v4141_v3, %v3981_v34  ;;  %v2993_v9 = vpop.f32.mrb[3].mxu0  ;;  %3718 = vst [vmem:[%s5543_s21 + $0x20] sm:$0xff] %v3698_v52   ;;  %v4152_v50 = vpop.f32.mrb[20].mxu1  ;;  %v3172_v13 = vmul.f32 %v4170_v55, %v4170_v55 }
 0x1a4   : > { %v4173_v37 = vadd.f32 %v2993_v9, %v1304_v42  ;;  %v5553_v31 = vadd.f32 %v4186_v24, %v4152_v50  ;;  %v3038_v14 = vpop.f32.mrb[21].mxu1  ;;  %v3170_v61 = vmul.f32 %v4171_v38, %v4171_v38 }
 0x1a5   : > { %v3683_v60 = vpack.c.bf16 %v4172_v40, %v4170_v55  ;;  %v4189_v35 = vadd.f32 %v4188_v33, %v3038_v14  ;;  %v4153_v16 = vpop.f32.mrb[22].mxu1  ;;  %v3173_v1 = vmul.f32 %v4172_v40, %v4172_v40 }
 0x1a6   : > { %v3678_v43 = vpack.c.bf16 %v4173_v37, %v4171_v38  ;;  %v3149_v17 = vadd.f32 %v4173_v37, %v4171_v38  ;;  %v3171_v41 = vmul.f32 %v4173_v37, %v4173_v37  ;;  %v3041_v23 = vpop.f32.mrb[23].mxu1  ;;  %v4191_v10 = vadd.f32 %v4190_v8, %v4153_v16 }
 0x1a7   : > { %3715 = vst [vmem:[%s5543_s21 + $0x8] sm:$0xff] %v3683_v60   ;;  %v4193_v15 = vadd.f32 %v4192_v25, %v3041_v23  ;;  %v3182_v52 = vmul.f32 %v4189_v35, %v4189_v35  ;;  %v3184_v50 = vmul.f32 %v5553_v31, %v5553_v31 }
 0x1a8   : > { %3679 = vst [vmem:[%s5543_s21] sm:$0xff] %v3678_v43   ;;  %v3150_v59 = vadd.f32 %v4170_v55, %v3149_v17  ;;  %v3186_v4 = vadd.f32 %v3171_v41, %v3170_v61  ;;  %v4144_v34 = vpop.f32.mrb[4].mxu0  ;;  %v3713_v2 = vpack.c.bf16 %v4191_v10, %v5553_v31  ;;  %v3181_v55 = vmul.f32 %v5538_v11, %v5538_v11 }
 0x1a9   : > { %v4174_v42 = vadd.f32 %v4144_v34, %v5524_v6  ;;  %v3006_v0 = vpop.f32.mrb[5].mxu0  ;;  %v3708_v28 = vpack.c.bf16 %v4193_v15, %v4189_v35  ;;  %v3185_v14 = vmul.f32 %v4191_v10, %v4191_v10 }
 0x1aa   : > { %v3187_v12 = vadd.f32 %v3186_v4, %v3172_v13  ;;  %v4175_v19 = vadd.f32 %v3006_v0, %v5526_v27  ;;  %v3151_v22 = vadd.f32 %v4172_v40, %v3150_v59  ;;  %v4145_v5 = vpop.f32.mrb[6].mxu0  ;;  %3721 = vst [vmem:[%s5543_s21 + $0x38] sm:$0xff] %v3713_v2  }
 0x1ab   : > { %v4176_v32 = vadd.f32 %v4145_v5, %v5528_v26  ;;  %v3009_v29 = vpop.f32.mrb[7].mxu0  ;;  %3720 = vst [vmem:[%s5543_s21 + $0x30] sm:$0xff] %v3708_v28   ;;  %v3176_v27 = vmul.f32 %v4174_v42, %v4174_v42 }
 0x1ac   : > { %v3152_v48 = vadd.f32 %v4175_v19, %v3151_v22  ;;  %v3174_v30 = vmul.f32 %v4175_v19, %v4175_v19  ;;  %v3188_v6 = vadd.f32 %v3187_v12, %v3173_v1  ;;  %v4177_v53 = vadd.f32 %v3009_v29, %v5530_v45 }
 0x1ad   : > { %v3693_v51 = vpack.c.bf16 %v4176_v32, %v4174_v42  ;;  %v3177_v20 = vmul.f32 %v4176_v32, %v4176_v32  ;;  %v3179_v45 = vmul.f32 %v5545_v47, %v5545_v47 }
 0x1ae   : > { %v3189_v63 = vadd.f32 %v3188_v6, %v3174_v30  ;;  %v3688_v57 = vpack.c.bf16 %v4177_v53, %v4175_v19  ;;  %v3153_v56 = vadd.f32 %v4177_v53, %v3152_v48  ;;  %v3175_v24 = vmul.f32 %v4177_v53, %v4177_v53 }
 0x1af   : > { %3717 = vst [vmem:[%s5543_s21 + $0x18] sm:$0xff] %v3693_v51  }
 0x1b0   : > { %3716 = vst [vmem:[%s5543_s21 + $0x10] sm:$0xff] %v3688_v57   ;;  %v3154_v36 = vadd.f32 %v4174_v42, %v3153_v56  ;;  %v3190_v33 = vadd.f32 %v3189_v63, %v3175_v24 }
 0x1b2   : > { %v3155_v26 = vadd.f32 %v4176_v32, %v3154_v36  ;;  %v3191_v8 = vadd.f32 %v3190_v33, %v3176_v27 }
 0x1b4   : > { %v3156_v62 = vadd.f32 %v5536_v46, %v3155_v26  ;;  %v3192_v25 = vadd.f32 %v3191_v8, %v3177_v20 }
 0x1b6   : > { %v3193_v39 = vadd.f32 %v3192_v25, %v3178_v21  ;;  %v3157_v54 = vadd.f32 %v5545_v47, %v3156_v62  ;;  %v3183_v47 = vmul.f32 %v4193_v15, %v4193_v15 }
 0x1b8   : > { %v3158_v44 = vadd.f32 %v5534_v58, %v3157_v54  ;;  %v3194_v49 = vadd.f32 %v3193_v39, %v3179_v45 }
 0x1ba   : > { %v3159_v18 = vadd.f32 %v5538_v11, %v3158_v44  ;;  %v3195_v46 = vadd.f32 %v3194_v49, %v3180_v7 }
 0x1bc   : > { %v3160_v38 = vadd.f32 %v4189_v35, %v3159_v18  ;;  %v3196_v3 = vadd.f32 %v3195_v46, %v3181_v55 }
 0x1be   : > { %v3161_v40 = vadd.f32 %v4193_v15, %v3160_v38  ;;  %v3197_v9 = vadd.f32 %v3196_v3, %v3182_v52 }
 0x1c0   : > { %v3162_v58 = vadd.f32 %v5553_v31, %v3161_v40  ;;  %v3198_v37 = vadd.f32 %v3197_v9, %v3183_v47 }
 0x1c2   : > { %v3163_v60 = vadd.f32 %v4191_v10, %v3162_v58  ;;  %v3199_v16 = vadd.f32 %v3198_v37, %v3184_v50 }
 0x1c4   : > { %v3164_v11 = vrot.slane %v3163_v60, 4  ;;  %v3200_v61 = vadd.f32 %v3199_v16, %v3185_v14 }
 0x1c6   : > { %v3165_v43 = vadd.f32 %v3164_v11, %v3163_v60  ;;  %v3201_v35 = vrot.slane %v3200_v61, 4 }
 0x1c8   : > { %v3166_v17 = vrot.slane %v3165_v43, 2  ;;  %v3202_v41 = vadd.f32 %v3201_v35, %v3200_v61 }
 0x1ca   : > { %v3167_v23 = vadd.f32 %v3166_v17, %v3165_v43  ;;  %v3203_v15 = vrot.slane %v3202_v41, 2 }
 0x1cc   : > { %v3168_v13 = vrot.slane %v3167_v23, 1  ;;  %v3204_v59 = vadd.f32 %v3203_v15, %v3202_v41 }
 0x1ce   : > { %v3205_v31 = vrot.slane %v3204_v59, 1  ;;  %v3169_v10 = vadd.f32 %v3168_v13, %v3167_v23 }
 0x1d0   : > { %v3206_v4 = vadd.f32 %v3205_v31, %v3204_v59 }
 0x1d2   : > { %v3208_v34 = vsel %vm3207_vm6, %v3169_v10, %v3206_v4 }
 0x1d3   : > { %3209 = vst [vmem:[%s216_s28] sm:$0x3] %v3208_v34 }
 0x1d4 PF: > { %s14_s16 = sadd.s32 1, %s4477_s16   ;;  %s5619_s12 = smov %s4469_s14 }
 0x1d5   : > { %p11_p8 = scmp.ge.s32.totalorder %s14_s16, 6   ;;  %s5620_s13 = smov %s4473_s15 }
 0x1d6   : > { %s5621_s14 = smov %s5624_s17  ;;  %s5622_s15 = smov %s5628_s18 }
 0x1d7   :  { %13 = sbr.rel (!%p11_p8) target bundleno = 3 (0x3), region = 73 }

</bundles_post_ra>
